<compile_context>
chip_gen: v6e
topology: v6e:2x2x1
jax: 0.10.0
libtpu: 0.0.40
codegen_flags: <defaults>
</compile_context>

<pallas_src>
import functools
import math

import numpy as np
import jax
import jax.numpy as jnp
from jax import lax
from jax.experimental import pallas as pl
from jax.experimental.pallas import tpu as pltpu


# ----------------------------------------------------------------------------
# small static helpers (host side)
# ----------------------------------------------------------------------------
def _round_up(x, m):
    return (x + m - 1) // m * m


def _tap_masks(H, W):
    """(8, H*W) f32 masks zeroing the 8 non-center conv taps outside the image."""
    idx = np.arange(H * W)
    py, px = idx // W, idx % W
    rows = []
    for oy in (-1, 0, 1):
        for ox in (-1, 0, 1):
            if oy == 0 and ox == 0:
                continue
            m = np.ones(H * W, np.float32)
            if ox == -1:
                m = m * (px >= 1)
            if ox == 1:
                m = m * (px < W - 1)
            if oy == -1:
                m = m * (py >= 1)
            if oy == 1:
                m = m * (py < H - 1)
            rows.append(m.astype(np.float32))
    return jnp.asarray(np.stack(rows, axis=0))


def _pool_sel(H, W, k):
    """(H*W, Ho*Wo) 0/1 matrix selecting the window-anchor columns (lane compaction)."""
    Ho, Wo = H // k, W // k
    q = np.arange(Ho * Wo)
    src = (q // Wo) * (k * W) + (q % Wo) * k
    sel = np.zeros((H * W, Ho * Wo), np.float32)
    sel[src, q] = 1.0
    return jnp.asarray(sel)


def _up_sel(H, W, k):
    """(H*W, Hn*Wn) 0/1 matrix replicating lanes for nearest-neighbour upsampling."""
    Hn, Wn = H * k, W * k
    q = np.arange(Hn * Wn)
    src = ((q // Wn) // k) * W + ((q % Wn) // k)
    sel = np.zeros((H * W, Hn * Wn), np.float32)
    sel[src, q] = 1.0
    return jnp.asarray(sel)


# ----------------------------------------------------------------------------
# in-kernel compute pieces
# ----------------------------------------------------------------------------
def _conv3x3(x, w_ref, m_ref, b, H, W, relu):
    """x: (Cin, H*W) f32 -> (Cout, H*W) f32.

    w_ref : (3, Cout, 3*Cin) bf16, row-group g = ky (oy+1); column = (ox+1)*Cin + ci.
    m_ref : (8, H*W) f32 precomputed border masks (non-center taps, row-major order).
    Three K=3*Cin MXU matmuls accumulated in f32 (no 9x im2col buffer).
    """
    HW = H * W
    m_all = m_ref[...]                                        # (8, HW)
    out = None
    for gi, oy in enumerate((-1, 0, 1)):
        taps = []
        for ox in (-1, 0, 1):
            s = oy * W + ox                                   # flat offset of tap
            t = x if s == 0 else pltpu.roll(x, (-s) % HW, axis=1)   # t[p] = x[p+s]
            tid = 3 * (oy + 1) + (ox + 1)
            if tid != 4:
                r = tid if tid < 4 else tid - 1
                t = t * m_all[r:r + 1]                        # zero out-of-image taps
            taps.append(t)
        grp = jnp.concatenate(taps, axis=0).astype(jnp.bfloat16)    # (3*Cin, HW)
        y = jnp.dot(w_ref[gi], grp, preferred_element_type=jnp.float32)
        out = y if out is None else out + y
    out = out + b                                             # (Cout, 1) broadcast
    return jnp.maximum(out, 0.0) if relu else out


def _maxpool(x, sel_ref, k, H, W):
    """Non-overlapping k x k max pool in (C, H*W) layout (rolls + VPU max + sel dot)."""
    HW = H * W
    m = x
    for d in range(1, k):                                     # horizontal window max
        m = jnp.maximum(m, pltpu.roll(x, (-d) % HW, axis=1))
    v = m
    for d in range(1, k):                                     # vertical window max
        v = jnp.maximum(v, pltpu.roll(m, (-d * W) % HW, axis=1))
    # exact 0/1 selection (f32) -> lane compaction to (C, Ho*Wo)
    return jnp.dot(v, sel_ref[...], preferred_element_type=jnp.float32)


# ----------------------------------------------------------------------------
# fused Pallas kernel: whole Generator forward for one batch element
# ----------------------------------------------------------------------------
def _generator_kernel(*refs, plan, n_conv, n_mask, n_sel):
    """refs = (x, w_0..w_{L-1}, bias_all, mask_0.., sel_0.., o)."""
    x_ref = refs[0]
    w_refs = refs[1:1 + n_conv]
    b_ref = refs[1 + n_conv]
    mask_refs = refs[2 + n_conv:2 + n_conv + n_mask]
    sel_refs = refs[2 + n_conv + n_mask:2 + n_conv + n_mask + n_sel]
    o_ref = refs[-1]

    b_all = b_ref[...]                                        # (Cmax, L) f32, read once
    x = x_ref[0].astype(jnp.float32)                          # (C0p, H0*W0)

    for op in plan:
        kind = op[0]
        if kind == "conv":
            _, ci, mi, relu, coutp, H, W = op
            b = b_all[0:coutp, ci:ci + 1]                     # (Cout, 1)
            x = _conv3x3(x, w_refs[ci], mask_refs[mi], b, H, W, relu)
        elif kind == "pool":
            _, si, k, H, W = op
            x = _maxpool(x, sel_refs[si], k, H, W)
        else:  # "up" — nearest upsample = exact 0/1 lane replication
            _, si = op
            x = jnp.dot(x, sel_refs[si][...], preferred_element_type=jnp.float32)

    o_ref[0] = x.astype(o_ref.dtype)


# ----------------------------------------------------------------------------
# Generator: parameter init + forward (single pallas_call)
# ----------------------------------------------------------------------------
def _init_conv(key, cin, cout):
    """PyTorch-default-like uniform init; weights stored in kernel (row-group) layout.

    Channels zero-padded to multiples of 8 so every sublane concat / matmul / store is
    tile aligned; padded channels stay exactly zero.
    """
    kw, kb = jax.random.split(key)
    bound = 1.0 / math.sqrt(cin * 9)
    cin_p, cout_p = _round_up(cin, 8), _round_up(cout, 8)
    w = jax.random.uniform(kw, (3, 3, cin, cout), jnp.float32, -bound, bound)
    b = jax.random.uniform(kb, (cout,), jnp.float32, -bound, bound)
    w = jnp.pad(w, ((0, 0), (0, 0), (0, cin_p - cin), (0, cout_p - cout)))
    b = jnp.pad(b, ((0, cout_p - cout),))
    # (ky, kx, ci, co) -> (ky, co, kx, ci) -> (3, cout_p, 3*cin_p)
    w3 = jnp.transpose(w, (0, 3, 1, 2)).reshape(3, cout_p, 3 * cin_p)
    return w3, b


def generator_init(key, input_shape, hidden_dims, max_pools):
    del max_pools
    n = len(hidden_dims)
    keys = jax.random.split(key, 2 * n + 1)
    params = {"enc": [], "dec": [], "final": None}
    c = input_shape[0]
    for i, h in enumerate(hidden_dims):
        params["enc"].append(_init_conv(keys[i], c, h))
        c = h
    for i, h in enumerate(hidden_dims[::-1]):
        params["dec"].append(_init_conv(keys[n + i], c, h))
        c = h
    params["final"] = _init_conv(keys[2 * n], c, input_shape[0])
    return params


def generator_forward(params, x_nchw, max_pools):
    """x_nchw: (N, C, H, W) -> (N, C, H, W).  One fused pallas_call."""
    N, C0, H0, W0 = x_nchw.shape
    HW0 = H0 * W0
    C0p = _round_up(C0, 8)

    x_flat = x_nchw.reshape(N, C0, HW0)                 # free view, no transpose
    if C0p != C0:
        x_flat = jnp.pad(x_flat, ((0, 0), (0, C0p - C0), (0, 0)))

    convs = list(params["enc"]) + list(params["dec"]) + [params["final"]]
    n_conv = len(convs)
    cmaxp = max(int(w3.shape[1]) for w3, _ in convs)

    # static op sequence implied by the module
    ops = []
    for mp in max_pools:                                # encoder
        ops.append(("conv", True))
        if mp:
            ops.append(("pool", int(mp)))
    for mp in max_pools[::-1]:                          # decoder
        if mp:
            ops.append(("up", int(mp)))
        ops.append(("conv", True))
    ops.append(("conv", False))                         # final conv, no ReLU
    assert sum(1 for o in ops if o[0] == "conv") == n_conv

    # walk the op sequence: build static plan + host-precomputed constant inputs
    mask_arrays, mask_index, sel_arrays, plan = [], {}, [], []
    H, W = H0, W0
    ci = 0
    for op in ops:
        if op[0] == "conv":
            if (H, W) not in mask_index:
                mask_index[(H, W)] = len(mask_arrays)
                mask_arrays.append(_tap_masks(H, W))
            w3, _ = convs[ci]
            coutp = int(w3.shape[1])
            plan.append(("conv", ci, mask_index[(H, W)], op[1], coutp, H, W))
            ci += 1
        elif op[0] == "pool":
            k = op[1]
            assert H % k == 0 and W % k == 0, "MaxPool requires divisible spatial dims"
            plan.append(("pool", len(sel_arrays), k, H, W))
            sel_arrays.append(_pool_sel(H, W, k))
            H //= k
            W //= k
        else:  # "up"
            k = op[1]
            plan.append(("up", len(sel_arrays)))
            sel_arrays.append(_up_sel(H, W, k))
            H *= k
            W *= k
    assert (H, W) == (H0, W0)

    # all biases as one (Cmax, L) f32 input
    bias_all = jnp.stack(
        [jnp.pad(b, (0, cmaxp - int(b.shape[0]))) for _, b in convs], axis=1)

    args = [x_flat]
    in_specs = [pl.BlockSpec((1, C0p, HW0), lambda n: (n, 0, 0))]
    for w3, _ in convs:
        args.append(w3.astype(jnp.bfloat16))            # bf16 MXU operands
        in_specs.append(pl.BlockSpec(tuple(w3.shape), lambda n: (0, 0, 0)))
    args.append(bias_all)
    in_specs.append(pl.BlockSpec(tuple(bias_all.shape), lambda n: (0, 0)))
    for m in mask_arrays:
        args.append(m)
        in_specs.append(pl.BlockSpec(tuple(m.shape), lambda n: (0, 0)))
    for s in sel_arrays:
        args.append(s)
        in_specs.append(pl.BlockSpec(tuple(s.shape), lambda n: (0, 0)))

    kernel = functools.partial(_generator_kernel, plan=tuple(plan),
                               n_conv=n_conv, n_mask=len(mask_arrays),
                               n_sel=len(sel_arrays))

    # explicit scoped-VMEM budget: resident constants + double-buffered IO + activations
    const_bytes = sum(int(np.prod(a.shape)) * a.dtype.itemsize for a in args[1:])
    io_bytes = 2 * 2 * C0p * HW0 * 4
    act_bytes = 8 * cmaxp * HW0 * 4                     # live activation + 3-tap group + slack
    vmem_bytes = int(min(64 * 2**20,
                         max(32 * 2**20, 2 * (const_bytes + io_bytes + act_bytes))))

    out = pl.pallas_call(
        kernel,
        out_shape=jax.ShapeDtypeStruct((N, C0p, HW0), x_nchw.dtype),
        grid=(N,),
        in_specs=in_specs,
        out_specs=pl.BlockSpec((1, C0p, HW0), lambda n: (n, 0, 0)),
        compiler_params=pltpu.CompilerParams(
            dimension_semantics=("parallel",),
            vmem_limit_bytes=vmem_bytes),
    )(*args)
    return out[:, :C0, :].reshape(N, C0, H0, W0)


# ----------------------------------------------------------------------------
# Pure-JAX reference (numerical sanity check; uses the same bf16-rounded weights)
# ----------------------------------------------------------------------------
def _conv3x3_ref(x_nhwc, w3, b, relu):
    coutp = w3.shape[1]
    cinp = w3.shape[2] // 3
    w_hwio = w3.reshape(3, coutp, 3, cinp).transpose(0, 2, 3, 1)   # (ky,kx,ci,co)
    y = lax.conv_general_dilated(
        x_nhwc, w_hwio, window_strides=(1, 1), padding="SAME",
        dimension_numbers=("NHWC", "HWIO", "NHWC"),
        precision=lax.Precision.HIGHEST)
    y = y + b.reshape(1, 1, 1, -1)
    return jnp.maximum(y, 0.0) if relu else y


def _maxpool_ref(x, k):
    return lax.reduce_window(x, -jnp.inf, lax.max,
                             (1, k, k, 1), (1, k, k, 1), "VALID")


def _upsample_ref(x, k):
    return jnp.repeat(jnp.repeat(x, k, axis=1), k, axis=2)


def generator_forward_ref(params, x_nchw, max_pools):
    N, C0, H, W = x_nchw.shape
    C0p = params["enc"][0][0].shape[2] // 3
    x = jnp.transpose(x_nchw, (0, 2, 3, 1))             # NHWC
    x = jnp.pad(x, ((0, 0), (0, 0), (0, 0), (0, C0p - C0)))

    def rw(w3):  # match the kernel's bf16 weight storage
        return w3.astype(jnp.bfloat16).astype(jnp.float32)

    for (w3, b), mp in zip(params["enc"], max_pools):
        x = _conv3x3_ref(x, rw(w3), b, True)
        if mp:
            x = _maxpool_ref(x, mp)
    for (w3, b), mp in zip(params["dec"], max_pools[::-1]):
        if mp:
            x = _upsample_ref(x, mp)
        x = _conv3x3_ref(x, rw(w3), b, True)
    w3, b = params["final"]
    x = _conv3x3_ref(x, rw(w3), b, False)
    x = x[..., :C0]
    return jnp.transpose(x, (0, 3, 1, 2))


# ----------------------------------------------------------------------------
if __name__ == "__main__":
    key = jax.random.PRNGKey(0)
    k_params, k_x = jax.random.split(key)

    # Small shapes consistent with the module defaults.
    input_shape = (3, 16, 16)          # (C, H, W)
    hidden_dims = (8, 16, 16)
    max_pools = (2, 2, 0)
    batch = 2

    params = generator_init(k_params, input_shape, hidden_dims, max_pools)
    x = jax.random.normal(k_x, (batch,) + input_shape, jnp.float32)   # NCHW

    fwd = jax.jit(functools.partial(generator_forward, max_pools=max_pools))
    out = jax.block_until_ready(fwd(params, x))
    assert out.shape == (batch,) + input_shape, out.shape

    ref = jax.block_until_ready(generator_forward_ref(params, x, max_pools))
    err = float(jnp.max(jnp.abs(out - ref)))
    # bf16 conv operands (f32 accumulate): loose-ish but tight tolerance
    assert jnp.allclose(out, ref, rtol=2e-2, atol=2e-2), err

    print("KERNEL_OK")
</pallas_src>

<mosaic_0001>
module attributes {stable_mosaic.version = 11 : i64} {
  func.func @_generator_kernel(%arg0: i32, %arg1: memref<1x8x256xf32, #tpu.memory_space<vmem>>, %arg2: memref<3x8x24xbf16, #tpu.memory_space<vmem>>, %arg3: memref<3x16x24xbf16, #tpu.memory_space<vmem>>, %arg4: memref<3x16x48xbf16, #tpu.memory_space<vmem>>, %arg5: memref<3x16x48xbf16, #tpu.memory_space<vmem>>, %arg6: memref<3x16x48xbf16, #tpu.memory_space<vmem>>, %arg7: memref<3x8x48xbf16, #tpu.memory_space<vmem>>, %arg8: memref<3x8x24xbf16, #tpu.memory_space<vmem>>, %arg9: memref<16x7xf32, #tpu.memory_space<vmem>>, %arg10: memref<8x256xf32, #tpu.memory_space<vmem>>, %arg11: memref<8x64xf32, #tpu.memory_space<vmem>>, %arg12: memref<8x16xf32, #tpu.memory_space<vmem>>, %arg13: memref<256x64xf32, #tpu.memory_space<vmem>>, %arg14: memref<64x16xf32, #tpu.memory_space<vmem>>, %arg15: memref<16x64xf32, #tpu.memory_space<vmem>>, %arg16: memref<64x256xf32, #tpu.memory_space<vmem>>, %arg17: memref<1x8x256xf32, #tpu.memory_space<vmem>>) attributes {dimension_semantics = [#tpu.dimension_semantics<parallel>], iteration_bounds = array<i64: 2>, scalar_prefetch = 0 : i64, scratch_operands = 0 : i64, tpu.core_type = #tpu.core_type<tc>, window_params = [{transform_indices = @transform_0, window_bounds = array<i64: 1, 8, 256>}, {pipeline_mode = #tpu.pipeline_mode<synchronous>, transform_indices = @transform_1, window_bounds = array<i64: 3, 8, 24>}, {pipeline_mode = #tpu.pipeline_mode<synchronous>, transform_indices = @transform_2, window_bounds = array<i64: 3, 16, 24>}, {pipeline_mode = #tpu.pipeline_mode<synchronous>, transform_indices = @transform_3, window_bounds = array<i64: 3, 16, 48>}, {pipeline_mode = #tpu.pipeline_mode<synchronous>, transform_indices = @transform_4, window_bounds = array<i64: 3, 16, 48>}, {pipeline_mode = #tpu.pipeline_mode<synchronous>, transform_indices = @transform_5, window_bounds = array<i64: 3, 16, 48>}, {pipeline_mode = #tpu.pipeline_mode<synchronous>, transform_indices = @transform_6, window_bounds = array<i64: 3, 8, 48>}, {pipeline_mode = #tpu.pipeline_mode<synchronous>, transform_indices = @transform_7, window_bounds = array<i64: 3, 8, 24>}, {pipeline_mode = #tpu.pipeline_mode<synchronous>, transform_indices = @transform_8, window_bounds = array<i64: 16, 7>}, {pipeline_mode = #tpu.pipeline_mode<synchronous>, transform_indices = @transform_9, window_bounds = array<i64: 8, 256>}, {pipeline_mode = #tpu.pipeline_mode<synchronous>, transform_indices = @transform_10, window_bounds = array<i64: 8, 64>}, {pipeline_mode = #tpu.pipeline_mode<synchronous>, transform_indices = @transform_11, window_bounds = array<i64: 8, 16>}, {pipeline_mode = #tpu.pipeline_mode<synchronous>, transform_indices = @transform_12, window_bounds = array<i64: 256, 64>}, {pipeline_mode = #tpu.pipeline_mode<synchronous>, transform_indices = @transform_13, window_bounds = array<i64: 64, 16>}, {pipeline_mode = #tpu.pipeline_mode<synchronous>, transform_indices = @transform_14, window_bounds = array<i64: 16, 64>}, {pipeline_mode = #tpu.pipeline_mode<synchronous>, transform_indices = @transform_15, window_bounds = array<i64: 64, 256>}, {transform_indices = @transform_16, window_bounds = array<i64: 1, 8, 256>}]} {
    %c0 = arith.constant 0 : index
    %c0_0 = arith.constant 0 : index
    %0 = vector.load %arg9[%c0, %c0_0] : memref<16x7xf32, #tpu.memory_space<vmem>>, vector<16x7xf32>
    %c0_1 = arith.constant 0 : index
    %c0_2 = arith.constant 0 : index
    %c0_3 = arith.constant 0 : index
    %1 = vector.load %arg1[%c0_1, %c0_2, %c0_3] : memref<1x8x256xf32, #tpu.memory_space<vmem>>, vector<1x8x256xf32>
    %2 = vector.shape_cast %1 : vector<1x8x256xf32> to vector<8x256xf32>
    %3 = vector.extract_strided_slice %0 {offsets = [0, 0], sizes = [8, 1], strides = [1, 1]} : vector<16x7xf32> to vector<8x1xf32>
    %c0_4 = arith.constant 0 : index
    %c0_5 = arith.constant 0 : index
    %4 = vector.load %arg10[%c0_4, %c0_5] : memref<8x256xf32, #tpu.memory_space<vmem>>, vector<8x256xf32>
    %c17_i32 = arith.constant 17 : i32
    %5 = tpu.dynamic_rotate %2 by %c17_i32 dim 1 : vector<8x256xf32>, i32 -> vector<8x256xf32>
    %6 = vector.extract_strided_slice %4 {offsets = [0, 0], sizes = [1, 256], strides = [1, 1]} : vector<8x256xf32> to vector<1x256xf32>
    %7 = vector.broadcast %6 : vector<1x256xf32> to vector<8x256xf32>
    %8 = arith.mulf %5, %7 : vector<8x256xf32>
    %c16_i32 = arith.constant 16 : i32
    %9 = tpu.dynamic_rotate %2 by %c16_i32 dim 1 : vector<8x256xf32>, i32 -> vector<8x256xf32>
    %10 = vector.extract_strided_slice %4 {offsets = [1, 0], sizes = [1, 256], strides = [1, 1]} : vector<8x256xf32> to vector<1x256xf32>
    %11 = vector.broadcast %10 : vector<1x256xf32> to vector<8x256xf32>
    %12 = arith.mulf %9, %11 : vector<8x256xf32>
    %c15_i32 = arith.constant 15 : i32
    %13 = tpu.dynamic_rotate %2 by %c15_i32 dim 1 : vector<8x256xf32>, i32 -> vector<8x256xf32>
    %14 = vector.extract_strided_slice %4 {offsets = [2, 0], sizes = [1, 256], strides = [1, 1]} : vector<8x256xf32> to vector<1x256xf32>
    %15 = vector.broadcast %14 : vector<1x256xf32> to vector<8x256xf32>
    %16 = arith.mulf %13, %15 : vector<8x256xf32>
    %17 = tpu.concatenate %8, %12, %16 in 0 : vector<8x256xf32>, vector<8x256xf32>, vector<8x256xf32> -> vector<24x256xf32>
    %18 = arith.truncf %17 : vector<24x256xf32> to vector<24x256xbf16>
    %c0_6 = arith.constant 0 : index
    %c0_7 = arith.constant 0 : index
    %c0_8 = arith.constant 0 : index
    %19 = vector.load %arg2[%c0_6, %c0_7, %c0_8] : memref<3x8x24xbf16, #tpu.memory_space<vmem>>, vector<1x8x24xbf16>
    %20 = vector.shape_cast %19 : vector<1x8x24xbf16> to vector<8x24xbf16>
    %cst = arith.constant dense<0.000000e+00> : vector<8x256xf32>
    %21 = tpu.matmul %20, %18, %cst {dimension_numbers = #tpu.dot_dimension_numbers<[1], [0], [0], [1], [0, 0, 1, 1], [], []>} : vector<8x24xbf16>, vector<24x256xbf16>, vector<8x256xf32> -> vector<8x256xf32>
    %c1_i32 = arith.constant 1 : i32
    %22 = tpu.dynamic_rotate %2 by %c1_i32 dim 1 : vector<8x256xf32>, i32 -> vector<8x256xf32>
    %23 = vector.extract_strided_slice %4 {offsets = [3, 0], sizes = [1, 256], strides = [1, 1]} : vector<8x256xf32> to vector<1x256xf32>
    %24 = vector.broadcast %23 : vector<1x256xf32> to vector<8x256xf32>
    %25 = arith.mulf %22, %24 : vector<8x256xf32>
    %c255_i32 = arith.constant 255 : i32
    %26 = tpu.dynamic_rotate %2 by %c255_i32 dim 1 : vector<8x256xf32>, i32 -> vector<8x256xf32>
    %27 = vector.extract_strided_slice %4 {offsets = [4, 0], sizes = [1, 256], strides = [1, 1]} : vector<8x256xf32> to vector<1x256xf32>
    %28 = vector.broadcast %27 : vector<1x256xf32> to vector<8x256xf32>
    %29 = arith.mulf %26, %28 : vector<8x256xf32>
    %30 = tpu.concatenate %25, %2, %29 in 0 : vector<8x256xf32>, vector<8x256xf32>, vector<8x256xf32> -> vector<24x256xf32>
    %31 = arith.truncf %30 : vector<24x256xf32> to vector<24x256xbf16>
    %c1 = arith.constant 1 : index
    %c0_9 = arith.constant 0 : index
    %c0_10 = arith.constant 0 : index
    %32 = vector.load %arg2[%c1, %c0_9, %c0_10] : memref<3x8x24xbf16, #tpu.memory_space<vmem>>, vector<1x8x24xbf16>
    %33 = vector.shape_cast %32 : vector<1x8x24xbf16> to vector<8x24xbf16>
    %cst_11 = arith.constant dense<0.000000e+00> : vector<8x256xf32>
    %34 = tpu.matmul %33, %31, %cst_11 {dimension_numbers = #tpu.dot_dimension_numbers<[1], [0], [0], [1], [0, 0, 1, 1], [], []>} : vector<8x24xbf16>, vector<24x256xbf16>, vector<8x256xf32> -> vector<8x256xf32>
    %35 = arith.addf %21, %34 : vector<8x256xf32>
    %c241_i32 = arith.constant 241 : i32
    %36 = tpu.dynamic_rotate %2 by %c241_i32 dim 1 : vector<8x256xf32>, i32 -> vector<8x256xf32>
    %37 = vector.extract_strided_slice %4 {offsets = [5, 0], sizes = [1, 256], strides = [1, 1]} : vector<8x256xf32> to vector<1x256xf32>
    %38 = vector.broadcast %37 : vector<1x256xf32> to vector<8x256xf32>
    %39 = arith.mulf %36, %38 : vector<8x256xf32>
    %c240_i32 = arith.constant 240 : i32
    %40 = tpu.dynamic_rotate %2 by %c240_i32 dim 1 : vector<8x256xf32>, i32 -> vector<8x256xf32>
    %41 = vector.extract_strided_slice %4 {offsets = [6, 0], sizes = [1, 256], strides = [1, 1]} : vector<8x256xf32> to vector<1x256xf32>
    %42 = vector.broadcast %41 : vector<1x256xf32> to vector<8x256xf32>
    %43 = arith.mulf %40, %42 : vector<8x256xf32>
    %c239_i32 = arith.constant 239 : i32
    %44 = tpu.dynamic_rotate %2 by %c239_i32 dim 1 : vector<8x256xf32>, i32 -> vector<8x256xf32>
    %45 = vector.extract_strided_slice %4 {offsets = [7, 0], sizes = [1, 256], strides = [1, 1]} : vector<8x256xf32> to vector<1x256xf32>
    %46 = vector.broadcast %45 : vector<1x256xf32> to vector<8x256xf32>
    %47 = arith.mulf %44, %46 : vector<8x256xf32>
    %48 = tpu.concatenate %39, %43, %47 in 0 : vector<8x256xf32>, vector<8x256xf32>, vector<8x256xf32> -> vector<24x256xf32>
    %49 = arith.truncf %48 : vector<24x256xf32> to vector<24x256xbf16>
    %c2 = arith.constant 2 : index
    %c0_12 = arith.constant 0 : index
    %c0_13 = arith.constant 0 : index
    %50 = vector.load %arg2[%c2, %c0_12, %c0_13] : memref<3x8x24xbf16, #tpu.memory_space<vmem>>, vector<1x8x24xbf16>
    %51 = vector.shape_cast %50 : vector<1x8x24xbf16> to vector<8x24xbf16>
    %cst_14 = arith.constant dense<0.000000e+00> : vector<8x256xf32>
    %52 = tpu.matmul %51, %49, %cst_14 {dimension_numbers = #tpu.dot_dimension_numbers<[1], [0], [0], [1], [0, 0, 1, 1], [], []>} : vector<8x24xbf16>, vector<24x256xbf16>, vector<8x256xf32> -> vector<8x256xf32>
    %53 = arith.addf %35, %52 : vector<8x256xf32>
    %54 = vector.broadcast %3 : vector<8x1xf32> to vector<8x256xf32>
    %55 = arith.addf %53, %54 : vector<8x256xf32>
    %cst_15 = arith.constant 0.000000e+00 : f32
    %56 = vector.broadcast %cst_15 : f32 to vector<8x256xf32>
    %57 = arith.maximumf %55, %56 : vector<8x256xf32>
    %c255_i32_16 = arith.constant 255 : i32
    %58 = tpu.dynamic_rotate %57 by %c255_i32_16 dim 1 : vector<8x256xf32>, i32 -> vector<8x256xf32>
    %59 = arith.maximumf %57, %58 : vector<8x256xf32>
    %c240_i32_17 = arith.constant 240 : i32
    %60 = tpu.dynamic_rotate %59 by %c240_i32_17 dim 1 : vector<8x256xf32>, i32 -> vector<8x256xf32>
    %61 = arith.maximumf %59, %60 : vector<8x256xf32>
    %c0_18 = arith.constant 0 : index
    %c0_19 = arith.constant 0 : index
    %62 = vector.load %arg13[%c0_18, %c0_19] : memref<256x64xf32, #tpu.memory_space<vmem>>, vector<256x64xf32>
    %cst_20 = arith.constant dense<0.000000e+00> : vector<8x64xf32>
    %63 = tpu.matmul %61, %62, %cst_20 {dimension_numbers = #tpu.dot_dimension_numbers<[1], [0], [0], [1], [0, 0, 1, 1], [], []>} : vector<8x256xf32>, vector<256x64xf32>, vector<8x64xf32> -> vector<8x64xf32>
    %64 = vector.extract_strided_slice %0 {offsets = [0, 1], sizes = [16, 1], strides = [1, 1]} : vector<16x7xf32> to vector<16x1xf32>
    %c0_21 = arith.constant 0 : index
    %c0_22 = arith.constant 0 : index
    %65 = vector.load %arg11[%c0_21, %c0_22] : memref<8x64xf32, #tpu.memory_space<vmem>>, vector<8x64xf32>
    %c9_i32 = arith.constant 9 : i32
    %66 = tpu.dynamic_rotate %63 by %c9_i32 dim 1 : vector<8x64xf32>, i32 -> vector<8x64xf32>
    %67 = vector.extract_strided_slice %65 {offsets = [0, 0], sizes = [1, 64], strides = [1, 1]} : vector<8x64xf32> to vector<1x64xf32>
    %68 = vector.broadcast %67 : vector<1x64xf32> to vector<8x64xf32>
    %69 = arith.mulf %66, %68 : vector<8x64xf32>
    %c8_i32 = arith.constant 8 : i32
    %70 = tpu.dynamic_rotate %63 by %c8_i32 dim 1 : vector<8x64xf32>, i32 -> vector<8x64xf32>
    %71 = vector.extract_strided_slice %65 {offsets = [1, 0], sizes = [1, 64], strides = [1, 1]} : vector<8x64xf32> to vector<1x64xf32>
    %72 = vector.broadcast %71 : vector<1x64xf32> to vector<8x64xf32>
    %73 = arith.mulf %70, %72 : vector<8x64xf32>
    %c7_i32 = arith.constant 7 : i32
    %74 = tpu.dynamic_rotate %63 by %c7_i32 dim 1 : vector<8x64xf32>, i32 -> vector<8x64xf32>
    %75 = vector.extract_strided_slice %65 {offsets = [2, 0], sizes = [1, 64], strides = [1, 1]} : vector<8x64xf32> to vector<1x64xf32>
    %76 = vector.broadcast %75 : vector<1x64xf32> to vector<8x64xf32>
    %77 = arith.mulf %74, %76 : vector<8x64xf32>
    %78 = tpu.concatenate %69, %73, %77 in 0 : vector<8x64xf32>, vector<8x64xf32>, vector<8x64xf32> -> vector<24x64xf32>
    %79 = arith.truncf %78 : vector<24x64xf32> to vector<24x64xbf16>
    %c0_23 = arith.constant 0 : index
    %c0_24 = arith.constant 0 : index
    %c0_25 = arith.constant 0 : index
    %80 = vector.load %arg3[%c0_23, %c0_24, %c0_25] : memref<3x16x24xbf16, #tpu.memory_space<vmem>>, vector<1x16x24xbf16>
    %81 = vector.shape_cast %80 : vector<1x16x24xbf16> to vector<16x24xbf16>
    %cst_26 = arith.constant dense<0.000000e+00> : vector<16x64xf32>
    %82 = tpu.matmul %81, %79, %cst_26 {dimension_numbers = #tpu.dot_dimension_numbers<[1], [0], [0], [1], [0, 0, 1, 1], [], []>} : vector<16x24xbf16>, vector<24x64xbf16>, vector<16x64xf32> -> vector<16x64xf32>
    %c1_i32_27 = arith.constant 1 : i32
    %83 = tpu.dynamic_rotate %63 by %c1_i32_27 dim 1 : vector<8x64xf32>, i32 -> vector<8x64xf32>
    %84 = vector.extract_strided_slice %65 {offsets = [3, 0], sizes = [1, 64], strides = [1, 1]} : vector<8x64xf32> to vector<1x64xf32>
    %85 = vector.broadcast %84 : vector<1x64xf32> to vector<8x64xf32>
    %86 = arith.mulf %83, %85 : vector<8x64xf32>
    %c63_i32 = arith.constant 63 : i32
    %87 = tpu.dynamic_rotate %63 by %c63_i32 dim 1 : vector<8x64xf32>, i32 -> vector<8x64xf32>
    %88 = vector.extract_strided_slice %65 {offsets = [4, 0], sizes = [1, 64], strides = [1, 1]} : vector<8x64xf32> to vector<1x64xf32>
    %89 = vector.broadcast %88 : vector<1x64xf32> to vector<8x64xf32>
    %90 = arith.mulf %87, %89 : vector<8x64xf32>
    %91 = tpu.concatenate %86, %63, %90 in 0 : vector<8x64xf32>, vector<8x64xf32>, vector<8x64xf32> -> vector<24x64xf32>
    %92 = arith.truncf %91 : vector<24x64xf32> to vector<24x64xbf16>
    %c1_28 = arith.constant 1 : index
    %c0_29 = arith.constant 0 : index
    %c0_30 = arith.constant 0 : index
    %93 = vector.load %arg3[%c1_28, %c0_29, %c0_30] : memref<3x16x24xbf16, #tpu.memory_space<vmem>>, vector<1x16x24xbf16>
    %94 = vector.shape_cast %93 : vector<1x16x24xbf16> to vector<16x24xbf16>
    %cst_31 = arith.constant dense<0.000000e+00> : vector<16x64xf32>
    %95 = tpu.matmul %94, %92, %cst_31 {dimension_numbers = #tpu.dot_dimension_numbers<[1], [0], [0], [1], [0, 0, 1, 1], [], []>} : vector<16x24xbf16>, vector<24x64xbf16>, vector<16x64xf32> -> vector<16x64xf32>
    %96 = arith.addf %82, %95 : vector<16x64xf32>
    %c57_i32 = arith.constant 57 : i32
    %97 = tpu.dynamic_rotate %63 by %c57_i32 dim 1 : vector<8x64xf32>, i32 -> vector<8x64xf32>
    %98 = vector.extract_strided_slice %65 {offsets = [5, 0], sizes = [1, 64], strides = [1, 1]} : vector<8x64xf32> to vector<1x64xf32>
    %99 = vector.broadcast %98 : vector<1x64xf32> to vector<8x64xf32>
    %100 = arith.mulf %97, %99 : vector<8x64xf32>
    %c56_i32 = arith.constant 56 : i32
    %101 = tpu.dynamic_rotate %63 by %c56_i32 dim 1 : vector<8x64xf32>, i32 -> vector<8x64xf32>
    %102 = vector.extract_strided_slice %65 {offsets = [6, 0], sizes = [1, 64], strides = [1, 1]} : vector<8x64xf32> to vector<1x64xf32>
    %103 = vector.broadcast %102 : vector<1x64xf32> to vector<8x64xf32>
    %104 = arith.mulf %101, %103 : vector<8x64xf32>
    %c55_i32 = arith.constant 55 : i32
    %105 = tpu.dynamic_rotate %63 by %c55_i32 dim 1 : vector<8x64xf32>, i32 -> vector<8x64xf32>
    %106 = vector.extract_strided_slice %65 {offsets = [7, 0], sizes = [1, 64], strides = [1, 1]} : vector<8x64xf32> to vector<1x64xf32>
    %107 = vector.broadcast %106 : vector<1x64xf32> to vector<8x64xf32>
    %108 = arith.mulf %105, %107 : vector<8x64xf32>
    %109 = tpu.concatenate %100, %104, %108 in 0 : vector<8x64xf32>, vector<8x64xf32>, vector<8x64xf32> -> vector<24x64xf32>
    %110 = arith.truncf %109 : vector<24x64xf32> to vector<24x64xbf16>
    %c2_32 = arith.constant 2 : index
    %c0_33 = arith.constant 0 : index
    %c0_34 = arith.constant 0 : index
    %111 = vector.load %arg3[%c2_32, %c0_33, %c0_34] : memref<3x16x24xbf16, #tpu.memory_space<vmem>>, vector<1x16x24xbf16>
    %112 = vector.shape_cast %111 : vector<1x16x24xbf16> to vector<16x24xbf16>
    %cst_35 = arith.constant dense<0.000000e+00> : vector<16x64xf32>
    %113 = tpu.matmul %112, %110, %cst_35 {dimension_numbers = #tpu.dot_dimension_numbers<[1], [0], [0], [1], [0, 0, 1, 1], [], []>} : vector<16x24xbf16>, vector<24x64xbf16>, vector<16x64xf32> -> vector<16x64xf32>
    %114 = arith.addf %96, %113 : vector<16x64xf32>
    %115 = vector.broadcast %64 : vector<16x1xf32> to vector<16x64xf32>
    %116 = arith.addf %114, %115 : vector<16x64xf32>
    %cst_36 = arith.constant 0.000000e+00 : f32
    %117 = vector.broadcast %cst_36 : f32 to vector<16x64xf32>
    %118 = arith.maximumf %116, %117 : vector<16x64xf32>
    %c63_i32_37 = arith.constant 63 : i32
    %119 = tpu.dynamic_rotate %118 by %c63_i32_37 dim 1 : vector<16x64xf32>, i32 -> vector<16x64xf32>
    %120 = arith.maximumf %118, %119 : vector<16x64xf32>
    %c56_i32_38 = arith.constant 56 : i32
    %121 = tpu.dynamic_rotate %120 by %c56_i32_38 dim 1 : vector<16x64xf32>, i32 -> vector<16x64xf32>
    %122 = arith.maximumf %120, %121 : vector<16x64xf32>
    %c0_39 = arith.constant 0 : index
    %c0_40 = arith.constant 0 : index
    %123 = vector.load %arg14[%c0_39, %c0_40] : memref<64x16xf32, #tpu.memory_space<vmem>>, vector<64x16xf32>
    %cst_41 = arith.constant dense<0.000000e+00> : vector<16x16xf32>
    %124 = tpu.matmul %122, %123, %cst_41 {dimension_numbers = #tpu.dot_dimension_numbers<[1], [0], [0], [1], [0, 0, 1, 1], [], []>} : vector<16x64xf32>, vector<64x16xf32>, vector<16x16xf32> -> vector<16x16xf32>
    %125 = vector.extract_strided_slice %0 {offsets = [0, 2], sizes = [16, 1], strides = [1, 1]} : vector<16x7xf32> to vector<16x1xf32>
    %c0_42 = arith.constant 0 : index
    %c0_43 = arith.constant 0 : index
    %126 = vector.load %arg12[%c0_42, %c0_43] : memref<8x16xf32, #tpu.memory_space<vmem>>, vector<8x16xf32>
    %c5_i32 = arith.constant 5 : i32
    %127 = tpu.dynamic_rotate %124 by %c5_i32 dim 1 : vector<16x16xf32>, i32 -> vector<16x16xf32>
    %128 = vector.extract_strided_slice %126 {offsets = [0, 0], sizes = [1, 16], strides = [1, 1]} : vector<8x16xf32> to vector<1x16xf32>
    %129 = vector.broadcast %128 : vector<1x16xf32> to vector<16x16xf32>
    %130 = arith.mulf %127, %129 : vector<16x16xf32>
    %c4_i32 = arith.constant 4 : i32
    %131 = tpu.dynamic_rotate %124 by %c4_i32 dim 1 : vector<16x16xf32>, i32 -> vector<16x16xf32>
    %132 = vector.extract_strided_slice %126 {offsets = [1, 0], sizes = [1, 16], strides = [1, 1]} : vector<8x16xf32> to vector<1x16xf32>
    %133 = vector.broadcast %132 : vector<1x16xf32> to vector<16x16xf32>
    %134 = arith.mulf %131, %133 : vector<16x16xf32>
    %c3_i32 = arith.constant 3 : i32
    %135 = tpu.dynamic_rotate %124 by %c3_i32 dim 1 : vector<16x16xf32>, i32 -> vector<16x16xf32>
    %136 = vector.extract_strided_slice %126 {offsets = [2, 0], sizes = [1, 16], strides = [1, 1]} : vector<8x16xf32> to vector<1x16xf32>
    %137 = vector.broadcast %136 : vector<1x16xf32> to vector<16x16xf32>
    %138 = arith.mulf %135, %137 : vector<16x16xf32>
    %139 = tpu.concatenate %130, %134, %138 in 0 : vector<16x16xf32>, vector<16x16xf32>, vector<16x16xf32> -> vector<48x16xf32>
    %140 = arith.truncf %139 : vector<48x16xf32> to vector<48x16xbf16>
    %c0_44 = arith.constant 0 : index
    %c0_45 = arith.constant 0 : index
    %c0_46 = arith.constant 0 : index
    %141 = vector.load %arg4[%c0_44, %c0_45, %c0_46] : memref<3x16x48xbf16, #tpu.memory_space<vmem>>, vector<1x16x48xbf16>
    %142 = vector.shape_cast %141 : vector<1x16x48xbf16> to vector<16x48xbf16>
    %cst_47 = arith.constant dense<0.000000e+00> : vector<16x16xf32>
    %143 = tpu.matmul %142, %140, %cst_47 {dimension_numbers = #tpu.dot_dimension_numbers<[1], [0], [0], [1], [0, 0, 1, 1], [], []>} : vector<16x48xbf16>, vector<48x16xbf16>, vector<16x16xf32> -> vector<16x16xf32>
    %c1_i32_48 = arith.constant 1 : i32
    %144 = tpu.dynamic_rotate %124 by %c1_i32_48 dim 1 : vector<16x16xf32>, i32 -> vector<16x16xf32>
    %145 = vector.extract_strided_slice %126 {offsets = [3, 0], sizes = [1, 16], strides = [1, 1]} : vector<8x16xf32> to vector<1x16xf32>
    %146 = vector.broadcast %145 : vector<1x16xf32> to vector<16x16xf32>
    %147 = arith.mulf %144, %146 : vector<16x16xf32>
    %c15_i32_49 = arith.constant 15 : i32
    %148 = tpu.dynamic_rotate %124 by %c15_i32_49 dim 1 : vector<16x16xf32>, i32 -> vector<16x16xf32>
    %149 = vector.extract_strided_slice %126 {offsets = [4, 0], sizes = [1, 16], strides = [1, 1]} : vector<8x16xf32> to vector<1x16xf32>
    %150 = vector.broadcast %149 : vector<1x16xf32> to vector<16x16xf32>
    %151 = arith.mulf %148, %150 : vector<16x16xf32>
    %152 = tpu.concatenate %147, %124, %151 in 0 : vector<16x16xf32>, vector<16x16xf32>, vector<16x16xf32> -> vector<48x16xf32>
    %153 = arith.truncf %152 : vector<48x16xf32> to vector<48x16xbf16>
    %c1_50 = arith.constant 1 : index
    %c0_51 = arith.constant 0 : index
    %c0_52 = arith.constant 0 : index
    %154 = vector.load %arg4[%c1_50, %c0_51, %c0_52] : memref<3x16x48xbf16, #tpu.memory_space<vmem>>, vector<1x16x48xbf16>
    %155 = vector.shape_cast %154 : vector<1x16x48xbf16> to vector<16x48xbf16>
    %cst_53 = arith.constant dense<0.000000e+00> : vector<16x16xf32>
    %156 = tpu.matmul %155, %153, %cst_53 {dimension_numbers = #tpu.dot_dimension_numbers<[1], [0], [0], [1], [0, 0, 1, 1], [], []>} : vector<16x48xbf16>, vector<48x16xbf16>, vector<16x16xf32> -> vector<16x16xf32>
    %157 = arith.addf %143, %156 : vector<16x16xf32>
    %c13_i32 = arith.constant 13 : i32
    %158 = tpu.dynamic_rotate %124 by %c13_i32 dim 1 : vector<16x16xf32>, i32 -> vector<16x16xf32>
    %159 = vector.extract_strided_slice %126 {offsets = [5, 0], sizes = [1, 16], strides = [1, 1]} : vector<8x16xf32> to vector<1x16xf32>
    %160 = vector.broadcast %159 : vector<1x16xf32> to vector<16x16xf32>
    %161 = arith.mulf %158, %160 : vector<16x16xf32>
    %c12_i32 = arith.constant 12 : i32
    %162 = tpu.dynamic_rotate %124 by %c12_i32 dim 1 : vector<16x16xf32>, i32 -> vector<16x16xf32>
    %163 = vector.extract_strided_slice %126 {offsets = [6, 0], sizes = [1, 16], strides = [1, 1]} : vector<8x16xf32> to vector<1x16xf32>
    %164 = vector.broadcast %163 : vector<1x16xf32> to vector<16x16xf32>
    %165 = arith.mulf %162, %164 : vector<16x16xf32>
    %c11_i32 = arith.constant 11 : i32
    %166 = tpu.dynamic_rotate %124 by %c11_i32 dim 1 : vector<16x16xf32>, i32 -> vector<16x16xf32>
    %167 = vector.extract_strided_slice %126 {offsets = [7, 0], sizes = [1, 16], strides = [1, 1]} : vector<8x16xf32> to vector<1x16xf32>
    %168 = vector.broadcast %167 : vector<1x16xf32> to vector<16x16xf32>
    %169 = arith.mulf %166, %168 : vector<16x16xf32>
    %170 = tpu.concatenate %161, %165, %169 in 0 : vector<16x16xf32>, vector<16x16xf32>, vector<16x16xf32> -> vector<48x16xf32>
    %171 = arith.truncf %170 : vector<48x16xf32> to vector<48x16xbf16>
    %c2_54 = arith.constant 2 : index
    %c0_55 = arith.constant 0 : index
    %c0_56 = arith.constant 0 : index
    %172 = vector.load %arg4[%c2_54, %c0_55, %c0_56] : memref<3x16x48xbf16, #tpu.memory_space<vmem>>, vector<1x16x48xbf16>
    %173 = vector.shape_cast %172 : vector<1x16x48xbf16> to vector<16x48xbf16>
    %cst_57 = arith.constant dense<0.000000e+00> : vector<16x16xf32>
    %174 = tpu.matmul %173, %171, %cst_57 {dimension_numbers = #tpu.dot_dimension_numbers<[1], [0], [0], [1], [0, 0, 1, 1], [], []>} : vector<16x48xbf16>, vector<48x16xbf16>, vector<16x16xf32> -> vector<16x16xf32>
    %175 = arith.addf %157, %174 : vector<16x16xf32>
    %176 = vector.broadcast %125 : vector<16x1xf32> to vector<16x16xf32>
    %177 = arith.addf %175, %176 : vector<16x16xf32>
    %cst_58 = arith.constant 0.000000e+00 : f32
    %178 = vector.broadcast %cst_58 : f32 to vector<16x16xf32>
    %179 = arith.maximumf %177, %178 : vector<16x16xf32>
    %180 = vector.extract_strided_slice %0 {offsets = [0, 3], sizes = [16, 1], strides = [1, 1]} : vector<16x7xf32> to vector<16x1xf32>
    %c0_59 = arith.constant 0 : index
    %c0_60 = arith.constant 0 : index
    %181 = vector.load %arg12[%c0_59, %c0_60] : memref<8x16xf32, #tpu.memory_space<vmem>>, vector<8x16xf32>
    %c5_i32_61 = arith.constant 5 : i32
    %182 = tpu.dynamic_rotate %179 by %c5_i32_61 dim 1 : vector<16x16xf32>, i32 -> vector<16x16xf32>
    %183 = vector.extract_strided_slice %181 {offsets = [0, 0], sizes = [1, 16], strides = [1, 1]} : vector<8x16xf32> to vector<1x16xf32>
    %184 = vector.broadcast %183 : vector<1x16xf32> to vector<16x16xf32>
    %185 = arith.mulf %182, %184 : vector<16x16xf32>
    %c4_i32_62 = arith.constant 4 : i32
    %186 = tpu.dynamic_rotate %179 by %c4_i32_62 dim 1 : vector<16x16xf32>, i32 -> vector<16x16xf32>
    %187 = vector.extract_strided_slice %181 {offsets = [1, 0], sizes = [1, 16], strides = [1, 1]} : vector<8x16xf32> to vector<1x16xf32>
    %188 = vector.broadcast %187 : vector<1x16xf32> to vector<16x16xf32>
    %189 = arith.mulf %186, %188 : vector<16x16xf32>
    %c3_i32_63 = arith.constant 3 : i32
    %190 = tpu.dynamic_rotate %179 by %c3_i32_63 dim 1 : vector<16x16xf32>, i32 -> vector<16x16xf32>
    %191 = vector.extract_strided_slice %181 {offsets = [2, 0], sizes = [1, 16], strides = [1, 1]} : vector<8x16xf32> to vector<1x16xf32>
    %192 = vector.broadcast %191 : vector<1x16xf32> to vector<16x16xf32>
    %193 = arith.mulf %190, %192 : vector<16x16xf32>
    %194 = tpu.concatenate %185, %189, %193 in 0 : vector<16x16xf32>, vector<16x16xf32>, vector<16x16xf32> -> vector<48x16xf32>
    %195 = arith.truncf %194 : vector<48x16xf32> to vector<48x16xbf16>
    %c0_64 = arith.constant 0 : index
    %c0_65 = arith.constant 0 : index
    %c0_66 = arith.constant 0 : index
    %196 = vector.load %arg5[%c0_64, %c0_65, %c0_66] : memref<3x16x48xbf16, #tpu.memory_space<vmem>>, vector<1x16x48xbf16>
    %197 = vector.shape_cast %196 : vector<1x16x48xbf16> to vector<16x48xbf16>
    %cst_67 = arith.constant dense<0.000000e+00> : vector<16x16xf32>
    %198 = tpu.matmul %197, %195, %cst_67 {dimension_numbers = #tpu.dot_dimension_numbers<[1], [0], [0], [1], [0, 0, 1, 1], [], []>} : vector<16x48xbf16>, vector<48x16xbf16>, vector<16x16xf32> -> vector<16x16xf32>
    %c1_i32_68 = arith.constant 1 : i32
    %199 = tpu.dynamic_rotate %179 by %c1_i32_68 dim 1 : vector<16x16xf32>, i32 -> vector<16x16xf32>
    %200 = vector.extract_strided_slice %181 {offsets = [3, 0], sizes = [1, 16], strides = [1, 1]} : vector<8x16xf32> to vector<1x16xf32>
    %201 = vector.broadcast %200 : vector<1x16xf32> to vector<16x16xf32>
    %202 = arith.mulf %199, %201 : vector<16x16xf32>
    %c15_i32_69 = arith.constant 15 : i32
    %203 = tpu.dynamic_rotate %179 by %c15_i32_69 dim 1 : vector<16x16xf32>, i32 -> vector<16x16xf32>
    %204 = vector.extract_strided_slice %181 {offsets = [4, 0], sizes = [1, 16], strides = [1, 1]} : vector<8x16xf32> to vector<1x16xf32>
    %205 = vector.broadcast %204 : vector<1x16xf32> to vector<16x16xf32>
    %206 = arith.mulf %203, %205 : vector<16x16xf32>
    %207 = tpu.concatenate %202, %179, %206 in 0 : vector<16x16xf32>, vector<16x16xf32>, vector<16x16xf32> -> vector<48x16xf32>
    %208 = arith.truncf %207 : vector<48x16xf32> to vector<48x16xbf16>
    %c1_70 = arith.constant 1 : index
    %c0_71 = arith.constant 0 : index
    %c0_72 = arith.constant 0 : index
    %209 = vector.load %arg5[%c1_70, %c0_71, %c0_72] : memref<3x16x48xbf16, #tpu.memory_space<vmem>>, vector<1x16x48xbf16>
    %210 = vector.shape_cast %209 : vector<1x16x48xbf16> to vector<16x48xbf16>
    %cst_73 = arith.constant dense<0.000000e+00> : vector<16x16xf32>
    %211 = tpu.matmul %210, %208, %cst_73 {dimension_numbers = #tpu.dot_dimension_numbers<[1], [0], [0], [1], [0, 0, 1, 1], [], []>} : vector<16x48xbf16>, vector<48x16xbf16>, vector<16x16xf32> -> vector<16x16xf32>
    %212 = arith.addf %198, %211 : vector<16x16xf32>
    %c13_i32_74 = arith.constant 13 : i32
    %213 = tpu.dynamic_rotate %179 by %c13_i32_74 dim 1 : vector<16x16xf32>, i32 -> vector<16x16xf32>
    %214 = vector.extract_strided_slice %181 {offsets = [5, 0], sizes = [1, 16], strides = [1, 1]} : vector<8x16xf32> to vector<1x16xf32>
    %215 = vector.broadcast %214 : vector<1x16xf32> to vector<16x16xf32>
    %216 = arith.mulf %213, %215 : vector<16x16xf32>
    %c12_i32_75 = arith.constant 12 : i32
    %217 = tpu.dynamic_rotate %179 by %c12_i32_75 dim 1 : vector<16x16xf32>, i32 -> vector<16x16xf32>
    %218 = vector.extract_strided_slice %181 {offsets = [6, 0], sizes = [1, 16], strides = [1, 1]} : vector<8x16xf32> to vector<1x16xf32>
    %219 = vector.broadcast %218 : vector<1x16xf32> to vector<16x16xf32>
    %220 = arith.mulf %217, %219 : vector<16x16xf32>
    %c11_i32_76 = arith.constant 11 : i32
    %221 = tpu.dynamic_rotate %179 by %c11_i32_76 dim 1 : vector<16x16xf32>, i32 -> vector<16x16xf32>
    %222 = vector.extract_strided_slice %181 {offsets = [7, 0], sizes = [1, 16], strides = [1, 1]} : vector<8x16xf32> to vector<1x16xf32>
    %223 = vector.broadcast %222 : vector<1x16xf32> to vector<16x16xf32>
    %224 = arith.mulf %221, %223 : vector<16x16xf32>
    %225 = tpu.concatenate %216, %220, %224 in 0 : vector<16x16xf32>, vector<16x16xf32>, vector<16x16xf32> -> vector<48x16xf32>
    %226 = arith.truncf %225 : vector<48x16xf32> to vector<48x16xbf16>
    %c2_77 = arith.constant 2 : index
    %c0_78 = arith.constant 0 : index
    %c0_79 = arith.constant 0 : index
    %227 = vector.load %arg5[%c2_77, %c0_78, %c0_79] : memref<3x16x48xbf16, #tpu.memory_space<vmem>>, vector<1x16x48xbf16>
    %228 = vector.shape_cast %227 : vector<1x16x48xbf16> to vector<16x48xbf16>
    %cst_80 = arith.constant dense<0.000000e+00> : vector<16x16xf32>
    %229 = tpu.matmul %228, %226, %cst_80 {dimension_numbers = #tpu.dot_dimension_numbers<[1], [0], [0], [1], [0, 0, 1, 1], [], []>} : vector<16x48xbf16>, vector<48x16xbf16>, vector<16x16xf32> -> vector<16x16xf32>
    %230 = arith.addf %212, %229 : vector<16x16xf32>
    %231 = vector.broadcast %180 : vector<16x1xf32> to vector<16x16xf32>
    %232 = arith.addf %230, %231 : vector<16x16xf32>
    %cst_81 = arith.constant 0.000000e+00 : f32
    %233 = vector.broadcast %cst_81 : f32 to vector<16x16xf32>
    %234 = arith.maximumf %232, %233 : vector<16x16xf32>
    %c0_82 = arith.constant 0 : index
    %c0_83 = arith.constant 0 : index
    %235 = vector.load %arg15[%c0_82, %c0_83] : memref<16x64xf32, #tpu.memory_space<vmem>>, vector<16x64xf32>
    %cst_84 = arith.constant dense<0.000000e+00> : vector<16x64xf32>
    %236 = tpu.matmul %234, %235, %cst_84 {dimension_numbers = #tpu.dot_dimension_numbers<[1], [0], [0], [1], [0, 0, 1, 1], [], []>} : vector<16x16xf32>, vector<16x64xf32>, vector<16x64xf32> -> vector<16x64xf32>
    %237 = vector.extract_strided_slice %0 {offsets = [0, 4], sizes = [16, 1], strides = [1, 1]} : vector<16x7xf32> to vector<16x1xf32>
    %c0_85 = arith.constant 0 : index
    %c0_86 = arith.constant 0 : index
    %238 = vector.load %arg11[%c0_85, %c0_86] : memref<8x64xf32, #tpu.memory_space<vmem>>, vector<8x64xf32>
    %c9_i32_87 = arith.constant 9 : i32
    %239 = tpu.dynamic_rotate %236 by %c9_i32_87 dim 1 : vector<16x64xf32>, i32 -> vector<16x64xf32>
    %240 = vector.extract_strided_slice %238 {offsets = [0, 0], sizes = [1, 64], strides = [1, 1]} : vector<8x64xf32> to vector<1x64xf32>
    %241 = vector.broadcast %240 : vector<1x64xf32> to vector<16x64xf32>
    %242 = arith.mulf %239, %241 : vector<16x64xf32>
    %c8_i32_88 = arith.constant 8 : i32
    %243 = tpu.dynamic_rotate %236 by %c8_i32_88 dim 1 : vector<16x64xf32>, i32 -> vector<16x64xf32>
    %244 = vector.extract_strided_slice %238 {offsets = [1, 0], sizes = [1, 64], strides = [1, 1]} : vector<8x64xf32> to vector<1x64xf32>
    %245 = vector.broadcast %244 : vector<1x64xf32> to vector<16x64xf32>
    %246 = arith.mulf %243, %245 : vector<16x64xf32>
    %c7_i32_89 = arith.constant 7 : i32
    %247 = tpu.dynamic_rotate %236 by %c7_i32_89 dim 1 : vector<16x64xf32>, i32 -> vector<16x64xf32>
    %248 = vector.extract_strided_slice %238 {offsets = [2, 0], sizes = [1, 64], strides = [1, 1]} : vector<8x64xf32> to vector<1x64xf32>
    %249 = vector.broadcast %248 : vector<1x64xf32> to vector<16x64xf32>
    %250 = arith.mulf %247, %249 : vector<16x64xf32>
    %251 = tpu.concatenate %242, %246, %250 in 0 : vector<16x64xf32>, vector<16x64xf32>, vector<16x64xf32> -> vector<48x64xf32>
    %252 = arith.truncf %251 : vector<48x64xf32> to vector<48x64xbf16>
    %c0_90 = arith.constant 0 : index
    %c0_91 = arith.constant 0 : index
    %c0_92 = arith.constant 0 : index
    %253 = vector.load %arg6[%c0_90, %c0_91, %c0_92] : memref<3x16x48xbf16, #tpu.memory_space<vmem>>, vector<1x16x48xbf16>
    %254 = vector.shape_cast %253 : vector<1x16x48xbf16> to vector<16x48xbf16>
    %cst_93 = arith.constant dense<0.000000e+00> : vector<16x64xf32>
    %255 = tpu.matmul %254, %252, %cst_93 {dimension_numbers = #tpu.dot_dimension_numbers<[1], [0], [0], [1], [0, 0, 1, 1], [], []>} : vector<16x48xbf16>, vector<48x64xbf16>, vector<16x64xf32> -> vector<16x64xf32>
    %c1_i32_94 = arith.constant 1 : i32
    %256 = tpu.dynamic_rotate %236 by %c1_i32_94 dim 1 : vector<16x64xf32>, i32 -> vector<16x64xf32>
    %257 = vector.extract_strided_slice %238 {offsets = [3, 0], sizes = [1, 64], strides = [1, 1]} : vector<8x64xf32> to vector<1x64xf32>
    %258 = vector.broadcast %257 : vector<1x64xf32> to vector<16x64xf32>
    %259 = arith.mulf %256, %258 : vector<16x64xf32>
    %c63_i32_95 = arith.constant 63 : i32
    %260 = tpu.dynamic_rotate %236 by %c63_i32_95 dim 1 : vector<16x64xf32>, i32 -> vector<16x64xf32>
    %261 = vector.extract_strided_slice %238 {offsets = [4, 0], sizes = [1, 64], strides = [1, 1]} : vector<8x64xf32> to vector<1x64xf32>
    %262 = vector.broadcast %261 : vector<1x64xf32> to vector<16x64xf32>
    %263 = arith.mulf %260, %262 : vector<16x64xf32>
    %264 = tpu.concatenate %259, %236, %263 in 0 : vector<16x64xf32>, vector<16x64xf32>, vector<16x64xf32> -> vector<48x64xf32>
    %265 = arith.truncf %264 : vector<48x64xf32> to vector<48x64xbf16>
    %c1_96 = arith.constant 1 : index
    %c0_97 = arith.constant 0 : index
    %c0_98 = arith.constant 0 : index
    %266 = vector.load %arg6[%c1_96, %c0_97, %c0_98] : memref<3x16x48xbf16, #tpu.memory_space<vmem>>, vector<1x16x48xbf16>
    %267 = vector.shape_cast %266 : vector<1x16x48xbf16> to vector<16x48xbf16>
    %cst_99 = arith.constant dense<0.000000e+00> : vector<16x64xf32>
    %268 = tpu.matmul %267, %265, %cst_99 {dimension_numbers = #tpu.dot_dimension_numbers<[1], [0], [0], [1], [0, 0, 1, 1], [], []>} : vector<16x48xbf16>, vector<48x64xbf16>, vector<16x64xf32> -> vector<16x64xf32>
    %269 = arith.addf %255, %268 : vector<16x64xf32>
    %c57_i32_100 = arith.constant 57 : i32
    %270 = tpu.dynamic_rotate %236 by %c57_i32_100 dim 1 : vector<16x64xf32>, i32 -> vector<16x64xf32>
    %271 = vector.extract_strided_slice %238 {offsets = [5, 0], sizes = [1, 64], strides = [1, 1]} : vector<8x64xf32> to vector<1x64xf32>
    %272 = vector.broadcast %271 : vector<1x64xf32> to vector<16x64xf32>
    %273 = arith.mulf %270, %272 : vector<16x64xf32>
    %c56_i32_101 = arith.constant 56 : i32
    %274 = tpu.dynamic_rotate %236 by %c56_i32_101 dim 1 : vector<16x64xf32>, i32 -> vector<16x64xf32>
    %275 = vector.extract_strided_slice %238 {offsets = [6, 0], sizes = [1, 64], strides = [1, 1]} : vector<8x64xf32> to vector<1x64xf32>
    %276 = vector.broadcast %275 : vector<1x64xf32> to vector<16x64xf32>
    %277 = arith.mulf %274, %276 : vector<16x64xf32>
    %c55_i32_102 = arith.constant 55 : i32
    %278 = tpu.dynamic_rotate %236 by %c55_i32_102 dim 1 : vector<16x64xf32>, i32 -> vector<16x64xf32>
    %279 = vector.extract_strided_slice %238 {offsets = [7, 0], sizes = [1, 64], strides = [1, 1]} : vector<8x64xf32> to vector<1x64xf32>
    %280 = vector.broadcast %279 : vector<1x64xf32> to vector<16x64xf32>
    %281 = arith.mulf %278, %280 : vector<16x64xf32>
    %282 = tpu.concatenate %273, %277, %281 in 0 : vector<16x64xf32>, vector<16x64xf32>, vector<16x64xf32> -> vector<48x64xf32>
    %283 = arith.truncf %282 : vector<48x64xf32> to vector<48x64xbf16>
    %c2_103 = arith.constant 2 : index
    %c0_104 = arith.constant 0 : index
    %c0_105 = arith.constant 0 : index
    %284 = vector.load %arg6[%c2_103, %c0_104, %c0_105] : memref<3x16x48xbf16, #tpu.memory_space<vmem>>, vector<1x16x48xbf16>
    %285 = vector.shape_cast %284 : vector<1x16x48xbf16> to vector<16x48xbf16>
    %cst_106 = arith.constant dense<0.000000e+00> : vector<16x64xf32>
    %286 = tpu.matmul %285, %283, %cst_106 {dimension_numbers = #tpu.dot_dimension_numbers<[1], [0], [0], [1], [0, 0, 1, 1], [], []>} : vector<16x48xbf16>, vector<48x64xbf16>, vector<16x64xf32> -> vector<16x64xf32>
    %287 = arith.addf %269, %286 : vector<16x64xf32>
    %288 = vector.broadcast %237 : vector<16x1xf32> to vector<16x64xf32>
    %289 = arith.addf %287, %288 : vector<16x64xf32>
    %cst_107 = arith.constant 0.000000e+00 : f32
    %290 = vector.broadcast %cst_107 : f32 to vector<16x64xf32>
    %291 = arith.maximumf %289, %290 : vector<16x64xf32>
    %c0_108 = arith.constant 0 : index
    %c0_109 = arith.constant 0 : index
    %292 = vector.load %arg16[%c0_108, %c0_109] : memref<64x256xf32, #tpu.memory_space<vmem>>, vector<64x256xf32>
    %cst_110 = arith.constant dense<0.000000e+00> : vector<16x256xf32>
    %293 = tpu.matmul %291, %292, %cst_110 {dimension_numbers = #tpu.dot_dimension_numbers<[1], [0], [0], [1], [0, 0, 1, 1], [], []>} : vector<16x64xf32>, vector<64x256xf32>, vector<16x256xf32> -> vector<16x256xf32>
    %294 = vector.extract_strided_slice %0 {offsets = [0, 5], sizes = [8, 1], strides = [1, 1]} : vector<16x7xf32> to vector<8x1xf32>
    %c0_111 = arith.constant 0 : index
    %c0_112 = arith.constant 0 : index
    %295 = vector.load %arg10[%c0_111, %c0_112] : memref<8x256xf32, #tpu.memory_space<vmem>>, vector<8x256xf32>
    %c17_i32_113 = arith.constant 17 : i32
    %296 = tpu.dynamic_rotate %293 by %c17_i32_113 dim 1 : vector<16x256xf32>, i32 -> vector<16x256xf32>
    %297 = vector.extract_strided_slice %295 {offsets = [0, 0], sizes = [1, 256], strides = [1, 1]} : vector<8x256xf32> to vector<1x256xf32>
    %298 = vector.broadcast %297 : vector<1x256xf32> to vector<16x256xf32>
    %299 = arith.mulf %296, %298 : vector<16x256xf32>
    %c16_i32_114 = arith.constant 16 : i32
    %300 = tpu.dynamic_rotate %293 by %c16_i32_114 dim 1 : vector<16x256xf32>, i32 -> vector<16x256xf32>
    %301 = vector.extract_strided_slice %295 {offsets = [1, 0], sizes = [1, 256], strides = [1, 1]} : vector<8x256xf32> to vector<1x256xf32>
    %302 = vector.broadcast %301 : vector<1x256xf32> to vector<16x256xf32>
    %303 = arith.mulf %300, %302 : vector<16x256xf32>
    %c15_i32_115 = arith.constant 15 : i32
    %304 = tpu.dynamic_rotate %293 by %c15_i32_115 dim 1 : vector<16x256xf32>, i32 -> vector<16x256xf32>
    %305 = vector.extract_strided_slice %295 {offsets = [2, 0], sizes = [1, 256], strides = [1, 1]} : vector<8x256xf32> to vector<1x256xf32>
    %306 = vector.broadcast %305 : vector<1x256xf32> to vector<16x256xf32>
    %307 = arith.mulf %304, %306 : vector<16x256xf32>
    %308 = tpu.concatenate %299, %303, %307 in 0 : vector<16x256xf32>, vector<16x256xf32>, vector<16x256xf32> -> vector<48x256xf32>
    %309 = arith.truncf %308 : vector<48x256xf32> to vector<48x256xbf16>
    %c0_116 = arith.constant 0 : index
    %c0_117 = arith.constant 0 : index
    %c0_118 = arith.constant 0 : index
    %310 = vector.load %arg7[%c0_116, %c0_117, %c0_118] : memref<3x8x48xbf16, #tpu.memory_space<vmem>>, vector<1x8x48xbf16>
    %311 = vector.shape_cast %310 : vector<1x8x48xbf16> to vector<8x48xbf16>
    %cst_119 = arith.constant dense<0.000000e+00> : vector<8x256xf32>
    %312 = tpu.matmul %311, %309, %cst_119 {dimension_numbers = #tpu.dot_dimension_numbers<[1], [0], [0], [1], [0, 0, 1, 1], [], []>} : vector<8x48xbf16>, vector<48x256xbf16>, vector<8x256xf32> -> vector<8x256xf32>
    %c1_i32_120 = arith.constant 1 : i32
    %313 = tpu.dynamic_rotate %293 by %c1_i32_120 dim 1 : vector<16x256xf32>, i32 -> vector<16x256xf32>
    %314 = vector.extract_strided_slice %295 {offsets = [3, 0], sizes = [1, 256], strides = [1, 1]} : vector<8x256xf32> to vector<1x256xf32>
    %315 = vector.broadcast %314 : vector<1x256xf32> to vector<16x256xf32>
    %316 = arith.mulf %313, %315 : vector<16x256xf32>
    %c255_i32_121 = arith.constant 255 : i32
    %317 = tpu.dynamic_rotate %293 by %c255_i32_121 dim 1 : vector<16x256xf32>, i32 -> vector<16x256xf32>
    %318 = vector.extract_strided_slice %295 {offsets = [4, 0], sizes = [1, 256], strides = [1, 1]} : vector<8x256xf32> to vector<1x256xf32>
    %319 = vector.broadcast %318 : vector<1x256xf32> to vector<16x256xf32>
    %320 = arith.mulf %317, %319 : vector<16x256xf32>
    %321 = tpu.concatenate %316, %293, %320 in 0 : vector<16x256xf32>, vector<16x256xf32>, vector<16x256xf32> -> vector<48x256xf32>
    %322 = arith.truncf %321 : vector<48x256xf32> to vector<48x256xbf16>
    %c1_122 = arith.constant 1 : index
    %c0_123 = arith.constant 0 : index
    %c0_124 = arith.constant 0 : index
    %323 = vector.load %arg7[%c1_122, %c0_123, %c0_124] : memref<3x8x48xbf16, #tpu.memory_space<vmem>>, vector<1x8x48xbf16>
    %324 = vector.shape_cast %323 : vector<1x8x48xbf16> to vector<8x48xbf16>
    %cst_125 = arith.constant dense<0.000000e+00> : vector<8x256xf32>
    %325 = tpu.matmul %324, %322, %cst_125 {dimension_numbers = #tpu.dot_dimension_numbers<[1], [0], [0], [1], [0, 0, 1, 1], [], []>} : vector<8x48xbf16>, vector<48x256xbf16>, vector<8x256xf32> -> vector<8x256xf32>
    %326 = arith.addf %312, %325 : vector<8x256xf32>
    %c241_i32_126 = arith.constant 241 : i32
    %327 = tpu.dynamic_rotate %293 by %c241_i32_126 dim 1 : vector<16x256xf32>, i32 -> vector<16x256xf32>
    %328 = vector.extract_strided_slice %295 {offsets = [5, 0], sizes = [1, 256], strides = [1, 1]} : vector<8x256xf32> to vector<1x256xf32>
    %329 = vector.broadcast %328 : vector<1x256xf32> to vector<16x256xf32>
    %330 = arith.mulf %327, %329 : vector<16x256xf32>
    %c240_i32_127 = arith.constant 240 : i32
    %331 = tpu.dynamic_rotate %293 by %c240_i32_127 dim 1 : vector<16x256xf32>, i32 -> vector<16x256xf32>
    %332 = vector.extract_strided_slice %295 {offsets = [6, 0], sizes = [1, 256], strides = [1, 1]} : vector<8x256xf32> to vector<1x256xf32>
    %333 = vector.broadcast %332 : vector<1x256xf32> to vector<16x256xf32>
    %334 = arith.mulf %331, %333 : vector<16x256xf32>
    %c239_i32_128 = arith.constant 239 : i32
    %335 = tpu.dynamic_rotate %293 by %c239_i32_128 dim 1 : vector<16x256xf32>, i32 -> vector<16x256xf32>
    %336 = vector.extract_strided_slice %295 {offsets = [7, 0], sizes = [1, 256], strides = [1, 1]} : vector<8x256xf32> to vector<1x256xf32>
    %337 = vector.broadcast %336 : vector<1x256xf32> to vector<16x256xf32>
    %338 = arith.mulf %335, %337 : vector<16x256xf32>
    %339 = tpu.concatenate %330, %334, %338 in 0 : vector<16x256xf32>, vector<16x256xf32>, vector<16x256xf32> -> vector<48x256xf32>
    %340 = arith.truncf %339 : vector<48x256xf32> to vector<48x256xbf16>
    %c2_129 = arith.constant 2 : index
    %c0_130 = arith.constant 0 : index
    %c0_131 = arith.constant 0 : index
    %341 = vector.load %arg7[%c2_129, %c0_130, %c0_131] : memref<3x8x48xbf16, #tpu.memory_space<vmem>>, vector<1x8x48xbf16>
    %342 = vector.shape_cast %341 : vector<1x8x48xbf16> to vector<8x48xbf16>
    %cst_132 = arith.constant dense<0.000000e+00> : vector<8x256xf32>
    %343 = tpu.matmul %342, %340, %cst_132 {dimension_numbers = #tpu.dot_dimension_numbers<[1], [0], [0], [1], [0, 0, 1, 1], [], []>} : vector<8x48xbf16>, vector<48x256xbf16>, vector<8x256xf32> -> vector<8x256xf32>
    %344 = arith.addf %326, %343 : vector<8x256xf32>
    %345 = vector.broadcast %294 : vector<8x1xf32> to vector<8x256xf32>
    %346 = arith.addf %344, %345 : vector<8x256xf32>
    %cst_133 = arith.constant 0.000000e+00 : f32
    %347 = vector.broadcast %cst_133 : f32 to vector<8x256xf32>
    %348 = arith.maximumf %346, %347 : vector<8x256xf32>
    %349 = vector.extract_strided_slice %0 {offsets = [0, 6], sizes = [8, 1], strides = [1, 1]} : vector<16x7xf32> to vector<8x1xf32>
    %c0_134 = arith.constant 0 : index
    %c0_135 = arith.constant 0 : index
    %350 = vector.load %arg10[%c0_134, %c0_135] : memref<8x256xf32, #tpu.memory_space<vmem>>, vector<8x256xf32>
    %c17_i32_136 = arith.constant 17 : i32
    %351 = tpu.dynamic_rotate %348 by %c17_i32_136 dim 1 : vector<8x256xf32>, i32 -> vector<8x256xf32>
    %352 = vector.extract_strided_slice %350 {offsets = [0, 0], sizes = [1, 256], strides = [1, 1]} : vector<8x256xf32> to vector<1x256xf32>
    %353 = vector.broadcast %352 : vector<1x256xf32> to vector<8x256xf32>
    %354 = arith.mulf %351, %353 : vector<8x256xf32>
    %c16_i32_137 = arith.constant 16 : i32
    %355 = tpu.dynamic_rotate %348 by %c16_i32_137 dim 1 : vector<8x256xf32>, i32 -> vector<8x256xf32>
    %356 = vector.extract_strided_slice %350 {offsets = [1, 0], sizes = [1, 256], strides = [1, 1]} : vector<8x256xf32> to vector<1x256xf32>
    %357 = vector.broadcast %356 : vector<1x256xf32> to vector<8x256xf32>
    %358 = arith.mulf %355, %357 : vector<8x256xf32>
    %c15_i32_138 = arith.constant 15 : i32
    %359 = tpu.dynamic_rotate %348 by %c15_i32_138 dim 1 : vector<8x256xf32>, i32 -> vector<8x256xf32>
    %360 = vector.extract_strided_slice %350 {offsets = [2, 0], sizes = [1, 256], strides = [1, 1]} : vector<8x256xf32> to vector<1x256xf32>
    %361 = vector.broadcast %360 : vector<1x256xf32> to vector<8x256xf32>
    %362 = arith.mulf %359, %361 : vector<8x256xf32>
    %363 = tpu.concatenate %354, %358, %362 in 0 : vector<8x256xf32>, vector<8x256xf32>, vector<8x256xf32> -> vector<24x256xf32>
    %364 = arith.truncf %363 : vector<24x256xf32> to vector<24x256xbf16>
    %c0_139 = arith.constant 0 : index
    %c0_140 = arith.constant 0 : index
    %c0_141 = arith.constant 0 : index
    %365 = vector.load %arg8[%c0_139, %c0_140, %c0_141] : memref<3x8x24xbf16, #tpu.memory_space<vmem>>, vector<1x8x24xbf16>
    %366 = vector.shape_cast %365 : vector<1x8x24xbf16> to vector<8x24xbf16>
    %cst_142 = arith.constant dense<0.000000e+00> : vector<8x256xf32>
    %367 = tpu.matmul %366, %364, %cst_142 {dimension_numbers = #tpu.dot_dimension_numbers<[1], [0], [0], [1], [0, 0, 1, 1], [], []>} : vector<8x24xbf16>, vector<24x256xbf16>, vector<8x256xf32> -> vector<8x256xf32>
    %c1_i32_143 = arith.constant 1 : i32
    %368 = tpu.dynamic_rotate %348 by %c1_i32_143 dim 1 : vector<8x256xf32>, i32 -> vector<8x256xf32>
    %369 = vector.extract_strided_slice %350 {offsets = [3, 0], sizes = [1, 256], strides = [1, 1]} : vector<8x256xf32> to vector<1x256xf32>
    %370 = vector.broadcast %369 : vector<1x256xf32> to vector<8x256xf32>
    %371 = arith.mulf %368, %370 : vector<8x256xf32>
    %c255_i32_144 = arith.constant 255 : i32
    %372 = tpu.dynamic_rotate %348 by %c255_i32_144 dim 1 : vector<8x256xf32>, i32 -> vector<8x256xf32>
    %373 = vector.extract_strided_slice %350 {offsets = [4, 0], sizes = [1, 256], strides = [1, 1]} : vector<8x256xf32> to vector<1x256xf32>
    %374 = vector.broadcast %373 : vector<1x256xf32> to vector<8x256xf32>
    %375 = arith.mulf %372, %374 : vector<8x256xf32>
    %376 = tpu.concatenate %371, %348, %375 in 0 : vector<8x256xf32>, vector<8x256xf32>, vector<8x256xf32> -> vector<24x256xf32>
    %377 = arith.truncf %376 : vector<24x256xf32> to vector<24x256xbf16>
    %c1_145 = arith.constant 1 : index
    %c0_146 = arith.constant 0 : index
    %c0_147 = arith.constant 0 : index
    %378 = vector.load %arg8[%c1_145, %c0_146, %c0_147] : memref<3x8x24xbf16, #tpu.memory_space<vmem>>, vector<1x8x24xbf16>
    %379 = vector.shape_cast %378 : vector<1x8x24xbf16> to vector<8x24xbf16>
    %cst_148 = arith.constant dense<0.000000e+00> : vector<8x256xf32>
    %380 = tpu.matmul %379, %377, %cst_148 {dimension_numbers = #tpu.dot_dimension_numbers<[1], [0], [0], [1], [0, 0, 1, 1], [], []>} : vector<8x24xbf16>, vector<24x256xbf16>, vector<8x256xf32> -> vector<8x256xf32>
    %381 = arith.addf %367, %380 : vector<8x256xf32>
    %c241_i32_149 = arith.constant 241 : i32
    %382 = tpu.dynamic_rotate %348 by %c241_i32_149 dim 1 : vector<8x256xf32>, i32 -> vector<8x256xf32>
    %383 = vector.extract_strided_slice %350 {offsets = [5, 0], sizes = [1, 256], strides = [1, 1]} : vector<8x256xf32> to vector<1x256xf32>
    %384 = vector.broadcast %383 : vector<1x256xf32> to vector<8x256xf32>
    %385 = arith.mulf %382, %384 : vector<8x256xf32>
    %c240_i32_150 = arith.constant 240 : i32
    %386 = tpu.dynamic_rotate %348 by %c240_i32_150 dim 1 : vector<8x256xf32>, i32 -> vector<8x256xf32>
    %387 = vector.extract_strided_slice %350 {offsets = [6, 0], sizes = [1, 256], strides = [1, 1]} : vector<8x256xf32> to vector<1x256xf32>
    %388 = vector.broadcast %387 : vector<1x256xf32> to vector<8x256xf32>
    %389 = arith.mulf %386, %388 : vector<8x256xf32>
    %c239_i32_151 = arith.constant 239 : i32
    %390 = tpu.dynamic_rotate %348 by %c239_i32_151 dim 1 : vector<8x256xf32>, i32 -> vector<8x256xf32>
    %391 = vector.extract_strided_slice %350 {offsets = [7, 0], sizes = [1, 256], strides = [1, 1]} : vector<8x256xf32> to vector<1x256xf32>
    %392 = vector.broadcast %391 : vector<1x256xf32> to vector<8x256xf32>
    %393 = arith.mulf %390, %392 : vector<8x256xf32>
    %394 = tpu.concatenate %385, %389, %393 in 0 : vector<8x256xf32>, vector<8x256xf32>, vector<8x256xf32> -> vector<24x256xf32>
    %395 = arith.truncf %394 : vector<24x256xf32> to vector<24x256xbf16>
    %c2_152 = arith.constant 2 : index
    %c0_153 = arith.constant 0 : index
    %c0_154 = arith.constant 0 : index
    %396 = vector.load %arg8[%c2_152, %c0_153, %c0_154] : memref<3x8x24xbf16, #tpu.memory_space<vmem>>, vector<1x8x24xbf16>
    %397 = vector.shape_cast %396 : vector<1x8x24xbf16> to vector<8x24xbf16>
    %cst_155 = arith.constant dense<0.000000e+00> : vector<8x256xf32>
    %398 = tpu.matmul %397, %395, %cst_155 {dimension_numbers = #tpu.dot_dimension_numbers<[1], [0], [0], [1], [0, 0, 1, 1], [], []>} : vector<8x24xbf16>, vector<24x256xbf16>, vector<8x256xf32> -> vector<8x256xf32>
    %399 = arith.addf %381, %398 : vector<8x256xf32>
    %400 = vector.broadcast %349 : vector<8x1xf32> to vector<8x256xf32>
    %401 = arith.addf %399, %400 : vector<8x256xf32>
    %c0_156 = arith.constant 0 : index
    %c0_157 = arith.constant 0 : index
    %c0_158 = arith.constant 0 : index
    %402 = vector.load %arg17[%c0_156, %c0_157, %c0_158] : memref<1x8x256xf32, #tpu.memory_space<vmem>>, vector<1x8x256xf32>
    %403 = vector.shape_cast %402 : vector<1x8x256xf32> to vector<8x256xf32>
    %404 = vector.shape_cast %401 : vector<8x256xf32> to vector<1x8x256xf32>
    tpu.vector_store %arg17[%c0_156, %c0_157, %c0_158], %404 {strides = array<i32>} : memref<1x8x256xf32, #tpu.memory_space<vmem>>, vector<1x8x256xf32>,
    return
  }
  func.func @transform_0(%arg0: i32) -> (i32, i32, i32) {
    %c0_i32 = arith.constant 0 : i32
    %c0_i32_0 = arith.constant 0 : i32
    %c0_i32_1 = arith.constant 0 : i32
    return %arg0, %c0_i32, %c0_i32_0 : i32, i32, i32
  }
  func.func @transform_1(%arg0: i32) -> (i32, i32, i32) {
    %c0_i32 = arith.constant 0 : i32
    %c0_i32_0 = arith.constant 0 : i32
    %c0_i32_1 = arith.constant 0 : i32
    %c0_i32_2 = arith.constant 0 : i32
    return %c0_i32, %c0_i32_0, %c0_i32_1 : i32, i32, i32
  }
  func.func @transform_2(%arg0: i32) -> (i32, i32, i32) {
    %c0_i32 = arith.constant 0 : i32
    %c0_i32_0 = arith.constant 0 : i32
    %c0_i32_1 = arith.constant 0 : i32
    %c0_i32_2 = arith.constant 0 : i32
    return %c0_i32, %c0_i32_0, %c0_i32_1 : i32, i32, i32
  }
  func.func @transform_3(%arg0: i32) -> (i32, i32, i32) {
    %c0_i32 = arith.constant 0 : i32
    %c0_i32_0 = arith.constant 0 : i32
    %c0_i32_1 = arith.constant 0 : i32
    %c0_i32_2 = arith.constant 0 : i32
    return %c0_i32, %c0_i32_0, %c0_i32_1 : i32, i32, i32
  }
  func.func @transform_4(%arg0: i32) -> (i32, i32, i32) {
    %c0_i32 = arith.constant 0 : i32
    %c0_i32_0 = arith.constant 0 : i32
    %c0_i32_1 = arith.constant 0 : i32
    %c0_i32_2 = arith.constant 0 : i32
    return %c0_i32, %c0_i32_0, %c0_i32_1 : i32, i32, i32
  }
  func.func @transform_5(%arg0: i32) -> (i32, i32, i32) {
    %c0_i32 = arith.constant 0 : i32
    %c0_i32_0 = arith.constant 0 : i32
    %c0_i32_1 = arith.constant 0 : i32
    %c0_i32_2 = arith.constant 0 : i32
    return %c0_i32, %c0_i32_0, %c0_i32_1 : i32, i32, i32
  }
  func.func @transform_6(%arg0: i32) -> (i32, i32, i32) {
    %c0_i32 = arith.constant 0 : i32
    %c0_i32_0 = arith.constant 0 : i32
    %c0_i32_1 = arith.constant 0 : i32
    %c0_i32_2 = arith.constant 0 : i32
    return %c0_i32, %c0_i32_0, %c0_i32_1 : i32, i32, i32
  }
  func.func @transform_7(%arg0: i32) -> (i32, i32, i32) {
    %c0_i32 = arith.constant 0 : i32
    %c0_i32_0 = arith.constant 0 : i32
    %c0_i32_1 = arith.constant 0 : i32
    %c0_i32_2 = arith.constant 0 : i32
    return %c0_i32, %c0_i32_0, %c0_i32_1 : i32, i32, i32
  }
  func.func @transform_8(%arg0: i32) -> (i32, i32) {
    %c0_i32 = arith.constant 0 : i32
    %c0_i32_0 = arith.constant 0 : i32
    %c0_i32_1 = arith.constant 0 : i32
    return %c0_i32, %c0_i32_0 : i32, i32
  }
  func.func @transform_9(%arg0: i32) -> (i32, i32) {
    %c0_i32 = arith.constant 0 : i32
    %c0_i32_0 = arith.constant 0 : i32
    %c0_i32_1 = arith.constant 0 : i32
    return %c0_i32, %c0_i32_0 : i32, i32
  }
  func.func @transform_10(%arg0: i32) -> (i32, i32) {
    %c0_i32 = arith.constant 0 : i32
    %c0_i32_0 = arith.constant 0 : i32
    %c0_i32_1 = arith.constant 0 : i32
    return %c0_i32, %c0_i32_0 : i32, i32
  }
  func.func @transform_11(%arg0: i32) -> (i32, i32) {
    %c0_i32 = arith.constant 0 : i32
    %c0_i32_0 = arith.constant 0 : i32
    %c0_i32_1 = arith.constant 0 : i32
    return %c0_i32, %c0_i32_0 : i32, i32
  }
  func.func @transform_12(%arg0: i32) -> (i32, i32) {
    %c0_i32 = arith.constant 0 : i32
    %c0_i32_0 = arith.constant 0 : i32
    %c0_i32_1 = arith.constant 0 : i32
    return %c0_i32, %c0_i32_0 : i32, i32
  }
  func.func @transform_13(%arg0: i32) -> (i32, i32) {
    %c0_i32 = arith.constant 0 : i32
    %c0_i32_0 = arith.constant 0 : i32
    %c0_i32_1 = arith.constant 0 : i32
    return %c0_i32, %c0_i32_0 : i32, i32
  }
  func.func @transform_14(%arg0: i32) -> (i32, i32) {
    %c0_i32 = arith.constant 0 : i32
    %c0_i32_0 = arith.constant 0 : i32
    %c0_i32_1 = arith.constant 0 : i32
    return %c0_i32, %c0_i32_0 : i32, i32
  }
  func.func @transform_15(%arg0: i32) -> (i32, i32) {
    %c0_i32 = arith.constant 0 : i32
    %c0_i32_0 = arith.constant 0 : i32
    %c0_i32_1 = arith.constant 0 : i32
    return %c0_i32, %c0_i32_0 : i32, i32
  }
  func.func @transform_16(%arg0: i32) -> (i32, i32, i32) {
    %c0_i32 = arith.constant 0 : i32
    %c0_i32_0 = arith.constant 0 : i32
    %c0_i32_1 = arith.constant 0 : i32
    return %arg0, %c0_i32, %c0_i32_0 : i32, i32, i32
  }
}

</mosaic_0001>

<bundles_post_ra>
// kernel: generator_forward.1
= control target key start
LH: loop header
LB: loop body
LE: loop exit
PB: predicated region body
PF: predicated region fallthrough
CT: control target
= control target key end

     0   :  { %s3739_s21 = smov 0   ;;  %s4877_s0 = inlined_call_operand.vmem [shape: f32[2,8,256], index: 0, kind: input, shape index: {}]   ;;  %s4878_s1 = inlined_call_operand.vmem [shape: bf16[3,8,24], index: 1, kind: input, shape index: {}]   ;;  %s4879_s2 = inlined_call_operand.vmem [shape: bf16[3,16,24], index: 2, kind: input, shape index: {}]   ;;  %s4880_s3 = inlined_call_operand.vmem [shape: bf16[3,16,48], index: 3, kind: input, shape index: {}]   ;;  %s4881_s4 = inlined_call_operand.vmem [shape: bf16[3,16,48], index: 4, kind: input, shape index: {}]   ;;  %s4882_s5 = inlined_call_operand.vmem [shape: bf16[3,16,48], index: 5, kind: input, shape index: {}]   ;;  %s4883_s6 = inlined_call_operand.vmem [shape: bf16[3,8,48], index: 6, kind: input, shape index: {}]   ;;  %s4884_s7 = inlined_call_operand.vmem [shape: bf16[3,8,24], index: 7, kind: input, shape index: {}]   ;;  %s4885_s8 = inlined_call_operand.vmem [shape: f32[16,7], index: 8, kind: input, shape index: {}]   ;;  %s4886_s9 = inlined_call_operand.vmem [shape: f32[8,256], index: 9, kind: input, shape index: {}]   ;;  %s4887_s10 = inlined_call_operand.vmem [shape: f32[8,64], index: 10, kind: input, shape index: {}]   ;;  %s4888_s11 = inlined_call_operand.vmem [shape: f32[8,16], index: 11, kind: input, shape index: {}]   ;;  %s4889_s12 = inlined_call_operand.vmem [shape: f32[256,64], index: 12, kind: input, shape index: {}]   ;;  %s4890_s13 = inlined_call_operand.vmem [shape: f32[64,16], index: 13, kind: input, shape index: {}]   ;;  %s4891_s14 = inlined_call_operand.vmem [shape: f32[16,64], index: 14, kind: input, shape index: {}]   ;;  %s4892_s15 = inlined_call_operand.vmem [shape: f32[64,256], index: 15, kind: input, shape index: {}]   ;;  %s4893_s16 = inlined_call_operand.vmem [shape: f32[2,8,256], index: 16, kind: output, shape index: {}]  }
   0x1   :  { %4919 = sst [smem:[#allocation2_spill]] %s4877_s0 }
   0x2 LB: > { %s3118_s22 = sadd.s32 4294967295, %s3612_s21   ;;  %p3122_p0 = scmp.ge.s32.totalorder %s3612_s21, 1  ;;  %s3612_s21 = sphi %s3739_s21, %s26_s21  }
   0x3   : > { %p462_p1 = scmp.lt.s32.totalorder %s3612_s21, 3 }
   0x5   : > { %p463_p2 = pnand %p3122_p0, %p462_p1 }
   0x6   : > { %p512_p3 = scmp.lt.s32.totalorder (!%p463_p2), %s3118_s22, 1  ;;  %s4920_s26 = sld [smem:[#allocation2_spill]] (!%p463_p2) }
   0x7   : > { %466 = sbr.rel (%p463_p2) target bundleno = 5615 (0x15ef), region = 84  ;;  %s4914_s28 = smov (!%p463_p2), 1  }
   0x8   : > { %s4917_s29 = smov (!%p463_p2), 127   ;;  %s4901_s30 = smov (!%p463_p2), 15  }
   0x9   : > { %s4897_s0 = smov (!%p463_p2), 111   ;;  %s4895_s17 = smov (!%p463_p2), 17  }
   0xa   : > { %s4903_s18 = smov (!%p463_p2), 16   ;;  %s4899_s19 = smov (!%p463_p2), 113  }
   0xb   : > { %s4905_s20 = smov (!%p463_p2), 112   ;;  %s3623_s24 = smov (!%p463_p2), 64  }
   0xc   : > { %s4936_s22 = smov (!%p512_p3, %s3118_s22), 1  ;;  %v3616_v2 = vmov 0   ;;  %v3797_v3 = vld [vmem:[%s4885_s8] sm:$0xff]  ;;  %v533_v4 = vlaneseq  ;;  %v3818_v10 = vld [vmem:[%s4886_s9 + $0x8] sm:$0xff]  ;;  %vm631_vm3 = vcmask 1043456   ;;  %vm627_vm5 = vcmask 195584  }
   0xd   : > { %s4894_s23 = sshll.u32 %s4936_s22, 4  ;;  %670 = vmatprep.mubr.bf16.mxu0 %v3616_v2  ;;  %720 = vmatprep.mubr.bf16.mxu1 %v3616_v2  ;;  %v3813_v9 = vld [vmem:[%s4886_s9] sm:$0xff]  ;;  %s3624_s25 = smov 56   ;;  %vm966_vm10 = vcmask 1048064   ;;  %vm3634_vm11 = vmmov 0   ;;  %vm1327_vm12 = vcmask 523264  }
   0xe   : > { %s516_s27 = scalar_lea.vmem %s4920_s26, %s4894_s23  ;;  %3480 = vset.pattern.permute.xlu0 %v3616_v2  ;;  %v3800_v5 = vshrl.u32 %v533_v4, 7  ;;  %v3802_v6 = vand.u32 127, %v533_v4  ;;  %v3127_v55 = vld [vmem:[%s4878_s1 + $0x4] sm:$0xf]  ;;  %s3625_s26 = smov 8   ;;  %vm1410_vm13 = vcmask 1047680  }
   0xf   : > { %v3755_v0 = vld [vmem:[%s516_s27] sm:$0xff]  ;;  %v3757_v1 = vld [vmem:[%s516_s27 + $0x8] sm:$0xff]  ;;  %s4916_s27 = smov 63   ;;  %s3627_s23 = smov 57   ;;  %vm1533_vm14 = vcmask 392192   ;;  %vm2058_vm15 = vcmask 130048  }
  0x10   : > { %587 = vrot.lane.b32.xlu1 %v3755_v0, %s4914_s28  ;;  %604 = vrot.lane.b32.xlu0 %v3755_v0, %s4917_s29  ;;  %v3805_v7 = vsub.s32 3, %v3800_v5  ;;  %v3808_v8 = vsub.s32 4, %v3800_v5  ;;  %v3821_v13 = vsub.s32 2, %v3800_v5  ;;  %vm591_vm0 = vcmp.lt.s32.totalorder %v3802_v6, 1 }
  0x11   : > { %vm608_vm1 = vcmp.lt.s32.totalorder %v3802_v6, 127  ;;  %vm569_vm2 = vcmp.lt.s32.totalorder %v3802_v6, 15  ;;  %v3843_v20 = vsub.s32 7, %v3800_v5  ;;  %vm767_vm4 = vcmp.lt.s32.totalorder %v3802_v6, 111 }
  0x12   : > { %v3826_v14 = vrot.slane %v3818_v10, %v3805_v7  ;;  %v3831_v15 = vrot.slane %v3818_v10, %v3808_v8  ;;  %v3835_v16 = vrot.slane %v3813_v9, %v3808_v8  ;;  %v3839_v17 = vrot.slane %v3813_v9, %v3805_v7 }
  0x13   : > { %v3847_v21 = vrot.slane %v3818_v10, %v3821_v13  ;;  %v3857_v25 = vrot.slane %v3813_v9, %v3821_v13  ;;  %v3867_v34 = vrot.slane %v3813_v9, %v3843_v20  ;;  %v3874_v37 = vrot.slane %v3818_v10, %v3843_v20 }
  0x14   : > { %589 = vrot.lane.b32.xlu1 %v3757_v1, %s4914_s28  ;;  %606 = vrot.lane.b32.xlu0 %v3757_v1, %s4917_s29  ;;  %v3889_v50 = vsub.s32 0, %v3800_v5  ;;  %v3896_v54 = vsub.s32 1, %v3800_v5  ;;  %vm535_vm6 = vcmp.lt.s32.totalorder %v3802_v6, 17  ;;  %vm552_vm7 = vcmp.lt.s32.totalorder %v3802_v6, 16 }
  0x15   : > { %vm733_vm8 = vcmp.lt.s32.totalorder %v3802_v6, 113  ;;  %vm750_vm9 = vcmp.lt.s32.totalorder %v3802_v6, 112  ;;  %v3191_v6 = vld [vmem:[%s4884_s7 + $0x8] sm:$0xf] }
  0x16   : > { %v3904_v60 = vrot.slane %v3813_v9, %v3889_v50  ;;  %v3908_v61 = vrot.slane %v3818_v10, %v3889_v50  ;;  %v3916_v63 = vrot.slane %v3813_v9, %v3896_v54 }
  0x18   : > { %567 = vrot.lane.b32.xlu1 %v3757_v1, %s4901_s30  ;;  %565 = vrot.lane.b32.xlu0 %v3755_v0, %s4901_s30  ;;  %s3631_s30 = smov 55  }
  0x1c   : > { %765 = vrot.lane.b32.xlu1 %v3757_v1, %s4897_s0  ;;  %763 = vrot.lane.b32.xlu0 %v3755_v0, %s4897_s0  ;;  %s3628_s0 = smov 9  }
  0x20   : > { %531 = vrot.lane.b32.xlu1 %v3757_v1, %s4895_s17  ;;  %529 = vrot.lane.b32.xlu0 %v3755_v0, %s4895_s17  ;;  %s4913_s17 = smov 62  }
  0x24   : > { %550 = vrot.lane.b32.xlu1 %v3757_v1, %s4903_s18  ;;  %548 = vrot.lane.b32.xlu0 %v3755_v0, %s4903_s18  ;;  %s3632_s18 = smov 7  }
  0x28   : > { %731 = vrot.lane.b32.xlu1 %v3757_v1, %s4899_s19  ;;  %729 = vrot.lane.b32.xlu0 %v3755_v0, %s4899_s19  ;;  %s3630_s19 = smov 126  }
  0x2c   : > { %748 = vrot.lane.b32.xlu1 %v3757_v1, %s4905_s20  ;;  %746 = vrot.lane.b32.xlu0 %v3755_v0, %s4905_s20 }
  0x30   : > { %840 = vperm.xlu0 %3480, %v3797_v3  }
  0x82   : > { %v588_v11 = vpop.permute.xlu1 %587  ;;  %v605_v12 = vpop.permute.xlu0 %604 }
  0x86   : > { %v590_v18 = vpop.permute.xlu1 %589  ;;  %v607_v19 = vpop.permute.xlu0 %606 }
  0x87   : > { %v592_v22 = vsel %vm591_vm0, %v588_v11, %v590_v18  ;;  %v609_v23 = vsel %vm608_vm1, %v605_v12, %v607_v19  ;;  %v610_v24 = vsel %vm608_vm1, %v607_v19, %v605_v12  ;;  %v593_v26 = vsel %vm591_vm0, %v590_v18, %v588_v11 }
  0x88   : > { %v603_v27 = vmul.f32 %v3826_v14, %v592_v22  ;;  %v620_v28 = vmul.f32 %v3831_v15, %v610_v24  ;;  %v619_v29 = vmul.f32 %v3835_v16, %v609_v23  ;;  %v602_v35 = vmul.f32 %v3839_v17, %v593_v26 }
  0x89   : > { %v3932_v22 = vsub.s32 5, %v3800_v5  ;;  %v3935_v23 = vsub.s32 6, %v3800_v5 }
  0x8a   : > { %v568_v30 = vpop.permute.xlu1 %567  ;;  %v566_v31 = vpop.permute.xlu0 %565  ;;  %v624_v32 = vpack.c.bf16 %v620_v28, %v620_v28  ;;  %v623_v33 = vpack.c.bf16 %v619_v29, %v619_v29  ;;  %v622_v40 = vpack.c.bf16 %v3757_v1, %v603_v27  ;;  %v621_v49 = vpack.c.bf16 %v3755_v0, %v602_v35 }
  0x8b   : > { %v571_v36 = vsel %vm569_vm2, %v568_v30, %v566_v31  ;;  %v570_v38 = vsel %vm569_vm2, %v566_v31, %v568_v30  ;;  %v3920_v0 = vrot.slane %v3818_v10, %v3896_v54  ;;  %v3948_v5 = vrot.slane %v3818_v10, %v3932_v22 }
  0x8c   : > { %3128 = vmatprep.subr.msk.bf16.mxu0 %vm631_vm3, %v624_v32  ;;  %v633_v39 = vsel %vm631_vm3, %v623_v33, 0  ;;  %v581_v41 = vmul.f32 %v3847_v21, %v570_v38  ;;  %v580_v42 = vmul.f32 %v3857_v25, %v571_v36  ;;  %v3944_v33 = vrot.slane %v3813_v9, %v3932_v22 }
  0x8d   : > { %651 = vmatpush1.bf16.msra.mxu0 %v633_v39  ;;  %v3953_v35 = vrot.slane %v3813_v9, %v3935_v23  ;;  %v3957_v36 = vrot.slane %v3818_v10, %v3935_v23 }
  0x8e   : > { %v766_v43 = vpop.permute.xlu1 %765  ;;  %652 = vmatprep.subr.bf16.mxu0 %v622_v40  ;;  %v764_v44 = vpop.permute.xlu0 %763  ;;  %v585_v45 = vpack.c.bf16 %v581_v41, %v581_v41  ;;  %v584_v46 = vpack.c.bf16 %v580_v42, %v580_v42  ;;  %v586_v40 = vld [vmem:[%s4878_s1] sm:$0xf] }
  0x8f   : > { %v768_v47 = vsel %vm767_vm4, %v764_v44, %v766_v43  ;;  %v769_v48 = vsel %vm767_vm4, %v766_v43, %v764_v44 }
  0x90   : > { %v778_v51 = vmul.f32 %v3867_v34, %v768_v47  ;;  %v779_v52 = vmul.f32 %v3874_v37, %v769_v48  ;;  %3130 = vmatprep.subr.msk.bf16.mxu1 %vm631_vm3, %v585_v45  ;;  %v683_v53 = vsel %vm631_vm3, %v584_v46, 0 }
  0x91   : > { %653 = vmatpush1.bf16.msra.mxu0 %v621_v49  ;;  %701 = vmatpush1.bf16.msra.mxu1 %v683_v53  ;;  %v3132_v49 = vld [vmem:[%s4878_s1 + $0x8] sm:$0xf] }
  0x92   : > { %v782_v56 = vpack.c.bf16 %v778_v51, %v778_v51  ;;  %v783_v57 = vpack.c.bf16 %v779_v52, %v779_v52  ;;  %v532_v58 = vpop.permute.xlu1 %531  ;;  %v530_v59 = vpop.permute.xlu0 %529 }
  0x93   : > { %v536_v1 = vsel %vm535_vm6, %v530_v59, %v532_v58  ;;  %v537_v4 = vsel %vm535_vm6, %v532_v58, %v530_v59 }
  0x94   : > { %3133 = vmatprep.subr.msk.bf16.mxu0 %vm631_vm3, %v783_v57  ;;  %3129 = vmatmul.mubr.msk.bf16.vlgmr.msra.gmra.mxu0 %vm627_vm5, %v3127_v55  ;;  %v790_v62 = vsel %vm631_vm3, %v782_v56, 0  ;;  %v546_v24 = vmul.f32 %v3904_v60, %v537_v4  ;;  %v547_v26 = vmul.f32 %v3908_v61, %v536_v1 }
  0x95   : > { %808 = vmatpush1.bf16.msra.mxu0 %v790_v62  ;;  %827 = vmatprep.mubr.bf16.mxu0 %v3616_v2 }
  0x96   : > { %v551_v11 = vpop.permute.xlu1 %550  ;;  %v549_v12 = vpop.permute.xlu0 %548 }
  0x97   : > { %v553_v18 = vsel %vm552_vm7, %v549_v12, %v551_v11  ;;  %v554_v19 = vsel %vm552_vm7, %v551_v11, %v549_v12 }
  0x98   : > { %v563_v27 = vmul.f32 %v3916_v63, %v554_v19  ;;  %v564_v28 = vmul.f32 %v3920_v0, %v553_v18 }
  0x9a   : > { %v732_v29 = vpop.permute.xlu1 %731  ;;  %v730_v30 = vpop.permute.xlu0 %729  ;;  %v583_v31 = vpack.c.bf16 %v564_v28, %v547_v26  ;;  %v582_v32 = vpack.c.bf16 %v563_v27, %v546_v24  ;;  %v894_v28 = vld [vmem:[%s4889_s12 + $0xf8] sm:$0xff] }
  0x9b   : > { %v734_v38 = vsel %vm733_vm8, %v730_v30, %v732_v29  ;;  %v735_v39 = vsel %vm733_vm8, %v732_v29, %v730_v30  ;;  %v878_v29 = vld [vmem:[%s4889_s12 + $0x78] sm:$0xff]  ;;  %v893_v30 = vld [vmem:[%s4889_s12 + $0xf0] sm:$0xff] }
  0x9c   : > { %702 = vmatprep.subr.bf16.mxu1 %v583_v31  ;;  %v744_v43 = vmul.f32 %v3944_v33, %v734_v38  ;;  %v745_v44 = vmul.f32 %v3948_v5, %v735_v39 }
  0x9d   : > { %703 = vmatpush1.bf16.msra.mxu1 %v582_v32  ;;  %v877_v32 = vld [vmem:[%s4889_s12 + $0x70] sm:$0xff] }
  0x9e   : > { %v749_v41 = vpop.permute.xlu1 %748  ;;  %v747_v42 = vpop.permute.xlu0 %746  ;;  %3198 = vmatprep.subr.mxu1 %v894_v28  ;;  %v863_v28 = vld [vmem:[%s4889_s12] sm:$0xff] }
  0x9f   : > { %v751_v9 = vsel %vm750_vm9, %v747_v42, %v749_v41  ;;  %v752_v10 = vsel %vm750_vm9, %v749_v41, %v747_v42  ;;  %v876_v41 = vld [vmem:[%s4889_s12 + $0x68] sm:$0xff] }
  0xa0   : > { %v761_v45 = vmul.f32 %v3953_v35, %v751_v9  ;;  %v762_v46 = vmul.f32 %v3957_v36, %v752_v10  ;;  %3131 = vmatmul.mubr.msk.bf16.vlgmr.msra.gmra.mxu1 %vm627_vm5, %v586_v40  ;;  %v892_v40 = vld [vmem:[%s4889_s12 + $0xe8] sm:$0xff]  ;;  %v891_v9 = vld [vmem:[%s4889_s12 + $0xe0] sm:$0xff] }
  0xa1   : > { %3199 = vmatpush3.msra.mxu1 %v878_v29  ;;  %v875_v10 = vld [vmem:[%s4889_s12 + $0x60] sm:$0xff] }
  0xa2   : > { %v780_v47 = vpack.c.bf16 %v761_v45, %v744_v43  ;;  %v781_v48 = vpack.c.bf16 %v762_v46, %v745_v44  ;;  %3200 = vmatprep.subr.mxu1 %v893_v30  ;;  %v890_v43 = vld [vmem:[%s4889_s12 + $0xd8] sm:$0xff]  ;;  %v889_v45 = vld [vmem:[%s4889_s12 + $0xd0] sm:$0xff] }
  0xa3   : > { %3201 = vmatpush3.msra.mxu1 %v877_v32  ;;  %v874_v44 = vld [vmem:[%s4889_s12 + $0x58] sm:$0xff]  ;;  %v873_v46 = vld [vmem:[%s4889_s12 + $0x50] sm:$0xff] }
  0xa4   : > { %809 = vmatprep.subr.bf16.mxu0 %v781_v48  ;;  %3202 = vmatprep.subr.mxu1 %v892_v40  ;;  %v872_v48 = vld [vmem:[%s4889_s12 + $0x48] sm:$0xff] }
  0xa5   : > { %810 = vmatpush1.bf16.msra.mxu0 %v780_v47  ;;  %3203 = vmatpush3.msra.mxu1 %v876_v41  ;;  %v888_v47 = vld [vmem:[%s4889_s12 + $0xc8] sm:$0xff] }
  0xa6   : > { %3204 = vmatprep.subr.mxu1 %v891_v9 }
  0xa7   : > { %3205 = vmatpush3.msra.mxu1 %v875_v10 }
  0xa8   : > { %3134 = vmatmul.mubr.msk.bf16.vlgmr.msra.gmra.mxu0 %vm627_vm5, %v3132_v49  ;;  %3206 = vmatprep.subr.mxu1 %v890_v43  ;;  %v887_v49 = vld [vmem:[%s4889_s12 + $0xc0] sm:$0xff] }
  0xa9   : > { %3207 = vmatpush3.msra.mxu1 %v874_v44 }
  0xaa   : > { %3208 = vmatprep.subr.mxu1 %v889_v45 }
  0xab   : > { %v841_v4 = vpop.permute.xlu0 %840  ;;  %3209 = vmatpush3.msra.mxu1 %v873_v46 }
  0xac   : > { %3210 = vmatprep.subr.mxu1 %v888_v47 }
  0xad   : > { %3211 = vmatpush3.msra.mxu1 %v872_v48 }
  0xae   : > { %3212 = vmatprep.subr.mxu1 %v887_v49 }
 0x154   : > { %v672_v51 = vpop.f32.mrf.mxu0 }
 0x156   : > { %v674_v52 = vpop.f32.mrf.mxu0 }
 0x158   : > { %v676_v53 = vpop.f32.mrf.mxu0 }
 0x159   : > { %v870_v53 = vld [vmem:[%s4889_s12 + $0x38] sm:$0xff] }
 0x15a   : > { %v677_v55 = vpop.f32.mrf.mxu0 }
 0x15b   : > { %v885_v55 = vld [vmem:[%s4889_s12 + $0xb0] sm:$0xff] }
 0x160   : > { %v722_v56 = vpop.f32.mrf.mxu1 }
 0x161   : > { %v723_v62 = vadd.f32 %v722_v56, %v672_v51  ;;  %v871_v51 = vld [vmem:[%s4889_s12 + $0x40] sm:$0xff]  ;;  %v869_v56 = vld [vmem:[%s4889_s12 + $0x30] sm:$0xff] }
 0x162   : > { %v724_v57 = vpop.f32.mrf.mxu1  ;;  %3213 = vmatpush3.msra.mxu1 %v871_v51 }
 0x163   : > { %v725_v11 = vadd.f32 %v724_v57, %v674_v52  ;;  %v886_v52 = vld [vmem:[%s4889_s12 + $0xb8] sm:$0xff]  ;;  %v884_v57 = vld [vmem:[%s4889_s12 + $0xa8] sm:$0xff] }
 0x164   : > { %v726_v58 = vpop.f32.mrf.mxu1  ;;  %3214 = vmatprep.subr.mxu1 %v886_v52 }
 0x165   : > { %3215 = vmatpush3.msra.mxu1 %v870_v53  ;;  %v868_v58 = vld [vmem:[%s4889_s12 + $0x28] sm:$0xff] }
 0x166   : > { %v727_v59 = vpop.f32.mrf.mxu1  ;;  %3216 = vmatprep.subr.mxu1 %v885_v55 }
 0x167   : > { %3217 = vmatpush3.msra.mxu1 %v869_v56  ;;  %v883_v59 = vld [vmem:[%s4889_s12 + $0xa0] sm:$0xff] }
 0x168   : > { %v829_v1 = vpop.f32.mrf.mxu0  ;;  %3218 = vmatprep.subr.mxu1 %v884_v57 }
 0x169   : > { %v836_v12 = vadd.f32 %v829_v1, %v723_v62  ;;  %v867_v62 = vld [vmem:[%s4889_s12 + $0x20] sm:$0xff]  ;;  %3219 = vmatpush3.msra.mxu1 %v868_v58  ;;  %v882_v1 = vld [vmem:[%s4889_s12 + $0x98] sm:$0xff] }
 0x16a   : > { %v831_v18 = vpop.f32.mrf.mxu0  ;;  %3220 = vmatprep.subr.mxu1 %v883_v59 }
 0x16b   : > { %v837_v19 = vadd.f32 %v831_v18, %v725_v11  ;;  %v3979_v24 = vadd.f32 %v841_v4, %v836_v12  ;;  %3221 = vmatpush3.msra.mxu1 %v867_v62  ;;  %v881_v11 = vld [vmem:[%s4889_s12 + $0x90] sm:$0xff]  ;;  %v880_v18 = vld [vmem:[%s4889_s12 + $0x88] sm:$0xff] }
 0x16c   : > { %v833_v26 = vpop.f32.mrf.mxu0  ;;  %3222 = vmatprep.subr.mxu1 %v882_v1  ;;  %v865_v12 = vld [vmem:[%s4889_s12 + $0x10] sm:$0xff] }
 0x16d   : > { %v3981_v27 = vadd.f32 %v841_v4, %v837_v19  ;;  %v845_v38 = vmax.f32 %v3979_v24, 0.0  ;;  %v866_v4 = vld [vmem:[%s4889_s12 + $0x18] sm:$0xff]  ;;  %v864_v19 = vld [vmem:[%s4889_s12 + $0x8] sm:$0xff]  ;;  %v879_v26 = vld [vmem:[%s4889_s12 + $0x80] sm:$0xff] }
 0x16e   : > { %v834_v31 = vpop.f32.mrf.mxu0  ;;  %3223 = vmatpush3.msra.mxu1 %v866_v4 }
 0x16f   : > { %v846_v39 = vmax.f32 %v3981_v27, 0.0  ;;  %3224 = vmatprep.subr.mxu1 %v881_v11  ;;  %v965_v27 = vld [vmem:[%s4887_s10] sm:$0xff] }
 0x170   : > { %3225 = vmatpush3.msra.mxu1 %v865_v12  ;;  %v1024_v49 = vrot.slane %v965_v27, %v3808_v8  ;;  %v985_v51 = vrot.slane %v965_v27, %v3896_v54  ;;  %v1173_v52 = vrot.slane %v965_v27, %v3935_v23  ;;  %v1015_v53 = vrot.slane %v965_v27, %v3805_v7 }
 0x171   : > { %v3481_v42 = vpack.i.bf16 %v846_v39, %v845_v38  ;;  %3226 = vmatprep.subr.mxu1 %v880_v18  ;;  %v994_v57 = vrot.slane %v965_v27, %v3821_v13  ;;  %v1182_v58 = vrot.slane %v965_v27, %v3843_v20 }
 0x172   : > { %3227 = vmatpush3.msra.mxu1 %v864_v19  ;;  %v976_v19 = vrot.slane %v965_v27, %v3889_v50 }
 0x173   : > { %3482 = vrot.lane.b32.xlu1 %v3481_v42, %s4917_s29  ;;  %3228 = vmatprep.subr.mxu1 %v879_v26 }
 0x174   : > { %3229 = vmatpush3.msra.mxu1 %v863_v28 }
 0x1e5   : > { %v3483_v29 = vpop.permute.xlu1 %3482 }
 0x1e6   : > { %v3485_v30 = vunpack.i.h.bf16 %v3483_v29  ;;  %v3484_v31 = vunpack.i.l.bf16 %v3483_v29  ;;  %v1164_v29 = vrot.slane %v965_v27, %v3932_v22 }
 0x1e8   : > { %v851_v32 = vsel %vm608_vm1, %v3484_v31, %v3485_v30  ;;  %v852_v40 = vsel %vm608_vm1, %v3485_v30, %v3484_v31 }
 0x1e9   : > { %v853_v41 = vmax.f32 %v845_v38, %v851_v32  ;;  %v854_v42 = vmax.f32 %v846_v39, %v852_v40  ;;  %v3633_v40 = vmov 0.0  }
 0x1ea   : > { %3292 = vmatprep.subr.bf16.mxu0 %v3633_v40  ;;  %3335 = vmatprep.subr.bf16.mxu1 %v3633_v40 }
 0x1eb   : > { %v3486_v9 = vpack.i.bf16 %v854_v42, %v853_v41  ;;  %3296 = vmatprep.mubr.msk.bf16.mxu0 %vm3634_vm11, %v3633_v40 }
 0x1ed   : > { %3487 = vrot.lane.b32.xlu1 %v3486_v9, %s4905_s20  ;;  %s3642_s20 = smov 5  }
 0x25f   : > { %v3488_v10 = vpop.permute.xlu1 %3487 }
 0x260   : > { %v3490_v43 = vunpack.i.h.bf16 %v3488_v10  ;;  %v3489_v44 = vunpack.i.l.bf16 %v3488_v10 }
 0x262   : > { %v859_v45 = vsel %vm750_vm9, %v3489_v44, %v3490_v43  ;;  %v860_v46 = vsel %vm750_vm9, %v3490_v43, %v3489_v44 }
 0x263   : > { %v862_v47 = vmax.f32 %v854_v42, %v860_v46  ;;  %v861_v48 = vmax.f32 %v853_v41, %v859_v45 }
 0x265   : > { %959 = vmatprep.mubr.f32.mxu1 %v862_v47 }
 0x266   : > { %960 = vmatmul.mubr.f32.vlgmr.msra.gmra.mxu1 %v861_v48 }
 0x267   : > { %3341 = vmatprep.mubr.msk.bf16.mxu1 %vm3634_vm11, %v3633_v40 }
 0x326   : > { %v3230_v24 = vpop.f32.mrf.mxu1 }
 0x328   : > { %v3231_v38 = vpop.f32.mrf.mxu1 }
 0x329   : > { %v3232_v39 = vadd.f32 %v3231_v38, %v3230_v24 }
 0x32b   : > { %967 = vrot.lane.b32.xlu0 %v3232_v39, %s3623_s24 }
 0x32f   : > { %1026 = vrot.lane.b32.xlu0 %v1024_v49, %s4914_s28 }
 0x333   : > { %987 = vrot.lane.b32.xlu0 %v985_v51, %s3624_s25  ;;  %s4911_s25 = smov 65  }
 0x337   : > { %1175 = vrot.lane.b32.xlu0 %v1173_v52, %s3625_s26  ;;  %s4909_s26 = smov 73   ;;  %v3638_v52 = vmov 1  }
 0x338   : > { %3492 = vset.pattern.permute.xlu1 %v3638_v52  ;;  %3491 = vset.pattern.permute.xlu0 %v3638_v52 }
 0x33b   : > { %1017 = vrot.lane.b32.xlu0 %v1015_v53, %s4916_s27 }
 0x39d   : > { %v968_v55 = vpop.permute.xlu0 %967 }
 0x39e   : > { %v969_v56 = vsel %vm966_vm10, %v968_v55, %v3232_v39 }
 0x39f   : > { %970 = vrot.lane.b32.xlu1 %v969_v56, %s3623_s24  ;;  %v4162_v56 = vld [vmem:[%s4885_s8 + $0x8] sm:$0xff] }
 0x3a1   : > { %v4113_v62 = vpop.permute.xlu0 %1026 }
 0x3a3   : > { %996 = vrot.lane.b32.xlu1 %v994_v57, %s3627_s23  ;;  %s4907_s23 = smov 121  }
 0x3a5   : > { %v4122_v18 = vpop.permute.xlu0 %987 }
 0x3a7   : > { %1184 = vrot.lane.b32.xlu1 %v1182_v58, %s3628_s0  ;;  %s3639_s0 = smov 120  }
 0x3a9   : > { %v4133_v31 = vpop.permute.xlu0 %1175 }
 0x3ad   : > { %v4143_v41 = vpop.permute.xlu0 %1017 }
 0x411   : > { %v971_v59 = vpop.permute.xlu1 %970 }
 0x412   : > { %v972_v1 = vsel %vm966_vm10, %v971_v59, %v3232_v39 }
 0x413   : > { %v1029_v4 = vmul.f32 %v4113_v62, %v972_v1  ;;  %v990_v26 = vmul.f32 %v4122_v18, %v972_v1  ;;  %v1178_v32 = vmul.f32 %v4133_v31, %v972_v1  ;;  %v1020_v43 = vmul.f32 %v4143_v41, %v972_v1 }
 0x415   : > { %v4117_v11 = vpop.permute.xlu1 %996  ;;  %1035 = vrot.lane.b32.xlu1 %v1029_v4, %s4913_s17  ;;  %s3644_s17 = smov 14  }
 0x416   : > { %v999_v12 = vmul.f32 %v4117_v11, %v972_v1 }
 0x418   : > { %1005 = vrot.lane.b32.xlu0 %v999_v12, %s3630_s19 }
 0x419   : > { %1031 = vrot.lane.b32.xlu1 %v3232_v39, %s4916_s27  ;;  %v4127_v28 = vpop.permute.xlu1 %1184  ;;  %s4926_s27 = smov 65  }
 0x41a   : > { %v1187_v30 = vmul.f32 %v4127_v28, %v972_v1 }
 0x41c   : > { %1001 = vrot.lane.b32.xlu0 %v990_v26, %s4917_s29 }
 0x41d   : > { %978 = vrot.lane.b32.xlu1 %v976_v19, %s3631_s30  ;;  %v3592_v19 = vld [vmem:[%s4879_s2] sm:$0xff]   ;;  %s4921_s30 = smov 16  }
 0x420   : > { %1166 = vrot.lane.b32.xlu0 %v1164_v29, %s3632_s18  ;;  %s3643_s18 = smov 4  }
 0x421   : > { %1193 = vrot.lane.b32.xlu1 %v1187_v30, %s3630_s19 }
 0x425   : > { %1189 = vrot.lane.b32.xlu1 %v1178_v32, %s4917_s29  ;;  %v3593_v32 = vld [vmem:[%s4879_s2 + $0x10] sm:$0xff]  }
 0x487   : > { %v1036_v42 = vpop.permute.xlu1 %1035 }
 0x488   : > { %v1039_v9 = vpack.c.bf16 %v1036_v42, %v1036_v42 }
 0x48a   : > { %1052 = vrot.lane.b32.xlu0 %v1039_v9, %s4911_s25  ;;  %v1006_v10 = vpop.permute.xlu0 %1005 }
 0x48b   : > { %v1009_v44 = vpack.c.bf16 %v1006_v10, %v1006_v10  ;;  %v1032_v45 = vpop.permute.xlu1 %1031 }
 0x48c   : > { %v1038_v46 = vpack.c.bf16 %v1032_v45, %v1020_v43 }
 0x48e   : > { %1050 = vrot.lane.b32.xlu1 %v1038_v46, %s4911_s25  ;;  %1111 = vrot.lane.b32.xlu0 %v1009_v44, %s4909_s26  ;;  %v1002_v47 = vpop.permute.xlu0 %1001  ;;  %s3645_s25 = smov 11  }
 0x48f   : > { %v4149_v48 = vpop.permute.xlu1 %978 }
 0x490   : > { %v981_v24 = vmul.f32 %v4149_v48, %v972_v1 }
 0x492   : > { %v1008_v38 = vpack.c.bf16 %v1002_v47, %v981_v24  ;;  %v4152_v27 = vpop.permute.xlu0 %1166 }
 0x493   : > { %v1194_v39 = vpop.permute.xlu1 %1193  ;;  %v1169_v51 = vmul.f32 %v4152_v27, %v972_v1  ;;  %v3591_v1 = vld [vmem:[%s4879_s2 + $0x8] sm:$0xff]  }
 0x494   : > { %v1197_v49 = vpack.c.bf16 %v1194_v39, %v1194_v39  ;;  %1109 = vrot.lane.b32.xlu1 %v1008_v38, %s4909_s26  ;;  %s3640_s26 = smov 13  }
 0x496   : > { %1210 = vrot.lane.b32.xlu0 %v1197_v49, %s4907_s23 }
 0x497   : > { %v1190_v53 = vpop.permute.xlu1 %1189 }
 0x498   : > { %v1196_v55 = vpack.c.bf16 %v1190_v53, %v1169_v51 }
 0x49a   : > { %1208 = vrot.lane.b32.xlu1 %v1196_v55, %s4907_s23  ;;  %1263 = vperm.xlu0 %3491, %v3797_v3   ;;  %s3641_s23 = smov 12  }
 0x49e   : > { %1268 = vperm.xlu1 %3492, %v4162_v56  }
 0x4fc   : > { %v1053_v57 = vpop.permute.xlu0 %1052 }
 0x4fd   : > { %v1059_v58 = vsel %vm631_vm3, %v1053_v57, 0 }
 0x4fe   : > { %3293 = vmatpush3.bf16.msra.mxu0 %v1059_v58 }
 0x4ff   : > { %3294 = vmatprep.subr.bf16.mxu0 %v3633_v40 }
 0x500   : > { %v1051_v59 = vpop.permute.xlu1 %1050  ;;  %v1112_v4 = vpop.permute.xlu0 %1111 }
 0x501   : > { %v1118_v3 = vsel %vm631_vm3, %v1112_v4, 0 }
 0x502   : > { %3295 = vmatpush3.bf16.msra.mxu0 %v1051_v59 }
 0x503   : > { %3300 = vmatprep.subr.bf16.mxu0 %v3633_v40 }
 0x505   : > { %3297 = vmatmul.mubr.msk.bf16.vlgmr.msra.gmra.mxu0 %vm627_vm5, %v3591_v1 }
 0x506   : > { %3301 = vmatpush3.bf16.msra.mxu0 %v1118_v3  ;;  %3304 = vmatprep.mubr.msk.bf16.mxu0 %vm3634_vm11, %v3633_v40  ;;  %v1110_v12 = vpop.permute.xlu1 %1109 }
 0x507   : > { %3302 = vmatprep.subr.bf16.mxu0 %v3633_v40 }
 0x508   : > { %v1211_v26 = vpop.permute.xlu0 %1210 }
 0x509   : > { %v1217_v29 = vsel %vm631_vm3, %v1211_v26, 0 }
 0x50a   : > { %3303 = vmatpush3.bf16.msra.mxu0 %v1110_v12 }
 0x50b   : > { %3308 = vmatprep.subr.bf16.mxu0 %v3633_v40 }
 0x50c   : > { %v1209_v30 = vpop.permute.xlu1 %1208 }
 0x50d   : > { %3305 = vmatmul.mubr.msk.bf16.vlgmr.msra.gmra.mxu0 %vm627_vm5, %v3592_v19 }
 0x50e   : > { %3309 = vmatpush3.bf16.msra.mxu0 %v1217_v29  ;;  %3312 = vmatprep.mubr.msk.bf16.mxu0 %vm3634_vm11, %v3633_v40 }
 0x50f   : > { %3310 = vmatprep.subr.bf16.mxu0 %v3633_v40 }
 0x512   : > { %3311 = vmatpush3.bf16.msra.mxu0 %v1209_v30 }
 0x515   : > { %3313 = vmatmul.mubr.msk.bf16.vlgmr.msra.gmra.mxu0 %vm627_vm5, %v3593_v32  ;;  %v1264_v39 = vpop.permute.xlu0 %1263 }
 0x519   : > { %v1269_v57 = vpop.permute.xlu1 %1268 }
 0x5c5   : > { %v1095_v42 = vpop.f32.mrf.mxu0 }
 0x5c7   : > { %v3298_v9 = vpop.f32.mrf.mxu0 }
 0x5c9   : > { %v1098_v10 = vpop.f32.mrf.mxu0 }
 0x5cb   : > { %v3299_v43 = vpop.f32.mrf.mxu0 }
 0x5cd   : > { %v1154_v44 = vpop.f32.mrf.mxu0 }
 0x5ce   : > { %v1155_v24 = vadd.f32 %v1154_v44, %v1095_v42 }
 0x5cf   : > { %v3306_v45 = vpop.f32.mrf.mxu0 }
 0x5d1   : > { %v1157_v46 = vpop.f32.mrf.mxu0 }
 0x5d2   : > { %v1158_v52 = vadd.f32 %v1157_v46, %v1098_v10  ;;  %v1326_v46 = vld [vmem:[%s4890_s13 + $0x38] sm:$0xff] }
 0x5d3   : > { %v3307_v47 = vpop.f32.mrf.mxu0  ;;  %3316 = vmatprep.subr.mxu0 %v1326_v46 }
 0x5d4   : > { %v1325_v47 = vld [vmem:[%s4890_s13 + $0x30] sm:$0xff]  ;;  %3317 = vmatpush3.msra.mxu0 %v1326_v46 }
 0x5d5   : > { %v1253_v38 = vpop.f32.mrf.mxu0  ;;  %3318 = vmatprep.subr.mxu0 %v1325_v47 }
 0x5d6   : > { %v1260_v49 = vadd.f32 %v1253_v38, %v1155_v24  ;;  %v1324_v24 = vld [vmem:[%s4890_s13 + $0x28] sm:$0xff]  ;;  %3319 = vmatpush3.msra.mxu0 %v1325_v47  ;;  %v1323_v38 = vld [vmem:[%s4890_s13 + $0x20] sm:$0xff] }
 0x5d7   : > { %v3314_v51 = vpop.f32.mrf.mxu0  ;;  %3320 = vmatprep.subr.mxu0 %v1324_v24 }
 0x5d8   : > { %v1271_v53 = vadd.f32 %v1264_v39, %v1260_v49  ;;  %3321 = vmatpush3.msra.mxu0 %v1324_v24  ;;  %v1322_v49 = vld [vmem:[%s4890_s13 + $0x18] sm:$0xff] }
 0x5d9   : > { %v1256_v55 = vpop.f32.mrf.mxu0  ;;  %3322 = vmatprep.subr.mxu0 %v1323_v38 }
 0x5da   : > { %v1273_v58 = vmax.f32 %v1271_v53, 0.0  ;;  %v1261_v59 = vadd.f32 %v1256_v55, %v1158_v52  ;;  %3323 = vmatpush3.msra.mxu0 %v1323_v38  ;;  %v1321_v55 = vld [vmem:[%s4890_s13 + $0x10] sm:$0xff] }
 0x5db   : > { %v3315_v1 = vpop.f32.mrf.mxu0  ;;  %3324 = vmatprep.subr.mxu0 %v1322_v49 }
 0x5dc   : > { %v1272_v4 = vadd.f32 %v1269_v57, %v1261_v59  ;;  %1275 = vrot.lane.b32.xlu1 %v1273_v58, %s3623_s24  ;;  %3325 = vmatpush3.msra.mxu0 %v1322_v49  ;;  %v1320_v57 = vld [vmem:[%s4890_s13 + $0x8] sm:$0xff] }
 0x5dd   : > { %3326 = vmatprep.subr.mxu0 %v1321_v55 }
 0x5de   : > { %v1274_v3 = vmax.f32 %v1272_v4, 0.0  ;;  %3327 = vmatpush3.msra.mxu0 %v1321_v55 }
 0x5df   : > { %3328 = vmatprep.subr.mxu0 %v1320_v57 }
 0x5e0   : > { %1278 = vrot.lane.b32.xlu0 %v1274_v3, %s3623_s24  ;;  %3329 = vmatpush3.msra.mxu0 %v1320_v57 }
 0x64e   : > { %v1276_v12 = vpop.permute.xlu1 %1275 }
 0x64f   : > { %v1277_v19 = vsel %vm966_vm10, %v1276_v12, %v1273_v58 }
 0x650   : > { %1281 = vrot.lane.b32.xlu1 %v1277_v19, %s3623_s24 }
 0x652   : > { %v1279_v26 = vpop.permute.xlu0 %1278 }
 0x653   : > { %v1280_v29 = vsel %vm966_vm10, %v1279_v26, %v1274_v3 }
 0x654   : > { %1283 = vrot.lane.b32.xlu0 %v1280_v29, %s3623_s24 }
 0x6c2   : > { %v1282_v30 = vpop.permute.xlu1 %1281 }
 0x6c3   : > { %v1285_v32 = vsel %vm966_vm10, %v1282_v30, %v1273_v58 }
 0x6c4   : > { %1289 = vrot.lane.b32.xlu1 %v1285_v32, %s4917_s29 }
 0x6c6   : > { %v1284_v42 = vpop.permute.xlu0 %1283 }
 0x6c7   : > { %v1286_v9 = vsel %vm966_vm10, %v1284_v42, %v1274_v3  ;;  %v4241_v42 = vld [vmem:[%s4888_s11] sm:$0xff] }
 0x6c8   : > { %1291 = vrot.lane.b32.xlu0 %v1286_v9, %s4917_s29  ;;  %v1487_v46 = vrot.slane %v4241_v42, %v3808_v8  ;;  %v1436_v47 = vrot.slane %v4241_v42, %v3896_v54  ;;  %v1662_v24 = vrot.slane %v4241_v42, %v3843_v20 }
 0x736   : > { %v1290_v10 = vpop.permute.xlu1 %1289 }
 0x737   : > { %v1295_v43 = vmax.f32 %v1273_v58, %v1290_v10  ;;  %v1319_v58 = vld [vmem:[%s4890_s13] sm:$0xff] }
 0x738   : > { %3330 = vmatprep.subr.mxu0 %v1319_v58 }
 0x739   : > { %1297 = vrot.lane.b32.xlu1 %v1295_v43, %s3623_s24  ;;  %3331 = vmatpush3.msra.mxu0 %v1319_v58 }
 0x73a   : > { %v1292_v44 = vpop.permute.xlu0 %1291  ;;  %3355 = vmatprep.subr.bf16.mxu0 %v3633_v40 }
 0x73b   : > { %v1296_v45 = vmax.f32 %v1274_v3, %v1292_v44  ;;  %v1446_v44 = vrot.slane %v4241_v42, %v3821_v13  ;;  %v1652_v13 = vrot.slane %v4241_v42, %v3935_v23 }
 0x73d   : > { %1300 = vrot.lane.b32.xlu0 %v1296_v45, %s3623_s24 }
 0x7ab   : > { %v1298_v39 = vpop.permute.xlu1 %1297 }
 0x7ac   : > { %v1299_v51 = vsel %vm966_vm10, %v1298_v39, %v1295_v43 }
 0x7ad   : > { %1303 = vrot.lane.b32.xlu1 %v1299_v51, %s3623_s24 }
 0x7af   : > { %v1301_v52 = vpop.permute.xlu0 %1300 }
 0x7b0   : > { %v1302_v53 = vsel %vm966_vm10, %v1301_v52, %v1296_v45 }
 0x7b1   : > { %1305 = vrot.lane.b32.xlu0 %v1302_v53, %s3623_s24 }
 0x81f   : > { %v1304_v59 = vpop.permute.xlu1 %1303 }
 0x820   : > { %v1307_v1 = vsel %vm966_vm10, %v1304_v59, %v1295_v43 }
 0x821   : > { %1311 = vrot.lane.b32.xlu1 %v1307_v1, %s3639_s0 }
 0x823   : > { %v1306_v4 = vpop.permute.xlu0 %1305 }
 0x824   : > { %v1308_v3 = vsel %vm966_vm10, %v1306_v4, %v1296_v45 }
 0x825   : > { %1313 = vrot.lane.b32.xlu0 %v1308_v3, %s3639_s0  ;;  %s4922_s0 = smov 15  }
 0x893   : > { %v1312_v12 = vpop.permute.xlu1 %1311 }
 0x894   : > { %v1317_v19 = vmax.f32 %v1295_v43, %v1312_v12 }
 0x896   : > { %3332 = vmatprep.mubr.msk.f32.mxu0 %vm1327_vm12, %v1317_v19  ;;  %v1477_v19 = vrot.slane %v4241_v42, %v3805_v7 }
 0x897   : > { %v1314_v26 = vpop.permute.xlu0 %1313 }
 0x898   : > { %v1318_v29 = vmax.f32 %v1296_v45, %v1314_v26 }
 0x89a   : > { %3333 = vmatmul.mubr.msk.f32.vlgmr.msra.gmra.mxu0 %vm1327_vm12, %v1318_v29 }
 0x89b   : > { %3361 = vmatprep.mubr.msk.bf16.mxu0 %vm3634_vm11, %v3633_v40 }
 0x95a   : > { %v3334_v30 = vpop.f32.mrf.mxu0 }
 0x95b   : > { %1414 = vrot.lane.b32.xlu0 %v3334_v30, %s4921_s30 }
 0x95c   : > { %v1400_v32 = vpop.f32.mrf.mxu0 }
 0x95d   : > { %1411 = vrot.lane.b32.xlu1 %v1400_v32, %s4921_s30  ;;  %v3498_v8 = vpack.i.bf16 %v3334_v30, %v1400_v32 }
 0x9cd   : > { %v1415_v9 = vpop.permute.xlu0 %1414 }
 0x9ce   : > { %v1416_v10 = vsel %vm1410_vm13, %v1415_v9, %v3334_v30 }
 0x9cf   : > { %1419 = vrot.lane.b32.xlu0 %v1416_v10, %s4921_s30  ;;  %v1412_v43 = vpop.permute.xlu1 %1411 }
 0x9d0   : > { %v1413_v45 = vsel %vm1410_vm13, %v1412_v43, %v1400_v32  ;;  %v1426_v43 = vrot.slane %v4241_v42, %v3889_v50 }
 0x9d1   : > { %1417 = vrot.lane.b32.xlu1 %v1413_v45, %s4921_s30  ;;  %v1642_v45 = vrot.slane %v4241_v42, %v3932_v22 }
 0x9d3   : > { %1448 = vrot.lane.b32.xlu0 %v1446_v44, %s3640_s26  ;;  %s3646_s26 = smov 3  }
 0x9d5   : > { %1489 = vrot.lane.b32.xlu1 %v1487_v46, %s4914_s28  ;;  %s4924_s28 = smov 63  }
 0x9d7   : > { %1438 = vrot.lane.b32.xlu0 %v1436_v47, %s3641_s23  ;;  %s4923_s23 = smov 113  }
 0x9d9   : > { %1664 = vrot.lane.b32.xlu1 %v1662_v24, %s3642_s20  ;;  %s3647_s20 = smov 117  }
 0x9dd   : > { %1654 = vrot.lane.b32.xlu1 %v1652_v13, %s3643_s18  ;;  %s3648_s18 = smov 125  }
 0x9e1   : > { %3499 = vrot.lane.b32.xlu1 %v3498_v8, %s4922_s0 }
 0xa41   : > { %v1420_v38 = vpop.permute.xlu0 %1419 }
 0xa42   : > { %v4263_v49 = vsel %vm1410_vm13, %v1420_v38, %v3334_v30 }
 0xa43   : > { %v1418_v39 = vpop.permute.xlu1 %1417 }
 0xa44   : > { %v4260_v54 = vsel %vm1410_vm13, %v1418_v39, %v1400_v32 }
 0xa45   : > { %v4265_v20 = vpop.permute.xlu0 %1448 }
 0xa46   : > { %v1451_v51 = vmul.f32 %v4265_v20, %v4260_v54  ;;  %v1452_v23 = vmul.f32 %v4265_v20, %v4263_v49 }
 0xa47   : > { %v4271_v52 = vpop.permute.xlu1 %1489 }
 0xa48   : > { %v3503_v53 = vpack.i.bf16 %v1452_v23, %v1451_v51  ;;  %v1492_v55 = vmul.f32 %v4271_v52, %v4260_v54  ;;  %v1493_v57 = vmul.f32 %v4271_v52, %v4263_v49 }
 0xa49   : > { %v4277_v58 = vpop.permute.xlu0 %1438 }
 0xa4a   : > { %3504 = vrot.lane.b32.xlu1 %v3503_v53, %s3630_s19  ;;  %v3493_v59 = vpack.i.bf16 %v1493_v57, %v1492_v55  ;;  %v1441_v1 = vmul.f32 %v4277_v58, %v4260_v54  ;;  %v1442_v4 = vmul.f32 %v4277_v58, %v4263_v49 }
 0xa4b   : > { %v4284_v3 = vpop.permute.xlu1 %1664 }
 0xa4c   : > { %3494 = vrot.lane.b32.xlu0 %v3493_v59, %s3644_s17  ;;  %v3513_v12 = vpack.i.bf16 %v1442_v4, %v1441_v1  ;;  %v1667_v26 = vmul.f32 %v4284_v3, %v4260_v54  ;;  %v1668_v29 = vmul.f32 %v4284_v3, %v4263_v49 }
 0xa4e   : > { %3514 = vrot.lane.b32.xlu1 %v3513_v12, %s4917_s29  ;;  %v3508_v10 = vpack.i.bf16 %v1668_v29, %v1667_v26 }
 0xa4f   : > { %v4294_v30 = vpop.permute.xlu1 %1654 }
 0xa50   : > { %1479 = vrot.lane.b32.xlu0 %v1477_v19, %s4922_s0  ;;  %v1657_v32 = vmul.f32 %v4294_v30, %v4260_v54  ;;  %v1658_v9 = vmul.f32 %v4294_v30, %v4263_v49 }
 0xa52   : > { %v3518_v7 = vpack.i.bf16 %v1658_v9, %v1657_v32 }
 0xa53   : > { %v3500_v44 = vpop.permute.xlu1 %3499 }
 0xa54   : > { %3509 = vrot.lane.b32.xlu0 %v3508_v10, %s3630_s19  ;;  %3519 = vrot.lane.b32.xlu1 %v3518_v7, %s4917_s29  ;;  %v3502_v46 = vunpack.i.h.bf16 %v3500_v44  ;;  %v3501_v47 = vunpack.i.l.bf16 %v3500_v44 }
 0xa56   : > { %v1511_v24 = vpack.c.bf16 %v3502_v46, %v3501_v47 }
 0xa58   : > { %1428 = vrot.lane.b32.xlu0 %v1426_v43, %s3645_s25  ;;  %s4928_s25 = smov 121  }
 0xa5c   : > { %1644 = vrot.lane.b32.xlu0 %v1642_v45, %s3646_s26 }
 0xa60   : > { %1526 = vrot.lane.b32.xlu0 %v1511_v24, %s4923_s23 }
 0xabc   : > { %v3505_v13 = vpop.permute.xlu1 %3504 }
 0xabd   : > { %v3507_v8 = vunpack.i.h.bf16 %v3505_v13  ;;  %v3506_v38 = vunpack.i.l.bf16 %v3505_v13  ;;  %v3649_v13 = vmov 2  }
 0xabe   : > { %v3495_v39 = vpop.permute.xlu0 %3494  ;;  %3523 = vset.pattern.permute.xlu0 %v3649_v13  ;;  %3524 = vset.pattern.permute.xlu1 %v3649_v13 }
 0xabf   : > { %v3497_v51 = vunpack.i.h.bf16 %v3495_v39  ;;  %v3496_v23 = vunpack.i.l.bf16 %v3495_v39  ;;  %v1471_v50 = vpack.c.bf16 %v3507_v8, %v3506_v38 }
 0xac0   : > { %v3515_v53 = vpop.permute.xlu1 %3514 }
 0xac1   : > { %v3517_v55 = vunpack.i.h.bf16 %v3515_v53  ;;  %v3516_v57 = vunpack.i.l.bf16 %v3515_v53  ;;  %1590 = vrot.lane.b32.xlu0 %v1471_v50, %s3647_s20  ;;  %v1512_v22 = vpack.c.bf16 %v3497_v51, %v3496_v23  ;;  %v4337_v51 = vld [vmem:[%s4885_s8] sm:$0xff]  ;;  %v3594_v53 = vld [vmem:[%s4880_s3 + $0x8] sm:$0xff]  }
 0xac2   : > { %v4309_v42 = vpop.permute.xlu0 %1479 }
 0xac3   : > { %1528 = vrot.lane.b32.xlu1 %v1512_v22, %s4923_s23  ;;  %v1470_v59 = vpack.c.bf16 %v3517_v55, %v3516_v57  ;;  %v1482_v1 = vmul.f32 %v4309_v42, %v4260_v54  ;;  %v1483_v4 = vmul.f32 %v4309_v42, %v4263_v49 }
 0xac5   : > { %1588 = vrot.lane.b32.xlu0 %v1470_v59, %s3647_s20  ;;  %v1510_v12 = vpack.c.bf16 %v1483_v4, %v1482_v1  ;;  %v3595_v1 = vld [vmem:[%s4880_s3 + $0x10] sm:$0xff]  }
 0xac6   : > { %v3510_v19 = vpop.permute.xlu0 %3509  ;;  %v3520_v26 = vpop.permute.xlu1 %3519 }
 0xac7   : > { %v3512_v29 = vunpack.i.h.bf16 %v3510_v19  ;;  %v3511_v32 = vunpack.i.l.bf16 %v3510_v19  ;;  %1524 = vrot.lane.b32.xlu1 %v1510_v12, %s4923_s23  ;;  %v3522_v9 = vunpack.i.h.bf16 %v3520_v26  ;;  %v3521_v10 = vunpack.i.l.bf16 %v3520_v26  ;;  %v3596_v12 = vld [vmem:[%s4880_s3] sm:$0xff]  }
 0xac9   : > { %v1687_v7 = vpack.c.bf16 %v3512_v29, %v3511_v32  ;;  %v1686_v46 = vpack.c.bf16 %v3522_v9, %v3521_v10 }
 0xaca   : > { %v4318_v43 = vpop.permute.xlu0 %1428 }
 0xacb   : > { %1703 = vrot.lane.b32.xlu1 %v1687_v7, %s3648_s18  ;;  %v1431_v44 = vmul.f32 %v4318_v43, %v4260_v54  ;;  %v1432_v45 = vmul.f32 %v4318_v43, %v4263_v49 }
 0xacd   : > { %v1469_v47 = vpack.c.bf16 %v1432_v45, %v1431_v44 }
 0xace   : > { %v4325_v24 = vpop.permute.xlu0 %1644 }
 0xacf   : > { %1701 = vrot.lane.b32.xlu1 %v1686_v46, %s3648_s18  ;;  %1586 = vrot.lane.b32.xlu0 %v1469_v47, %s3647_s20  ;;  %v1647_v8 = vmul.f32 %v4325_v24, %v4260_v54  ;;  %v1648_v38 = vmul.f32 %v4325_v24, %v4263_v49 }
 0xad1   : > { %v1685_v39 = vpack.c.bf16 %v1648_v38, %v1647_v8 }
 0xad2   : > { %v1527_v54 = vpop.permute.xlu0 %1526 }
 0xad3   : > { %1699 = vrot.lane.b32.xlu1 %v1685_v39, %s3648_s18  ;;  %1755 = vperm.xlu0 %3523, %v4337_v51  }
 0xad7   : > { %1759 = vperm.xlu1 %3524, %v4162_v56  }
 0xb33   : > { %v1591_v55 = vpop.permute.xlu0 %1590 }
 0xb35   : > { %v1529_v23 = vpop.permute.xlu1 %1528 }
 0xb36   : > { %3336 = vmatpush3.bf16.msra.mxu1 %v1529_v23 }
 0xb37   : > { %3337 = vmatprep.subr.bf16.mxu1 %v3633_v40  ;;  %v1589_v22 = vpop.permute.xlu0 %1588 }
 0xb39   : > { %v1525_v50 = vpop.permute.xlu1 %1524 }
 0xb3a   : > { %3338 = vmatpush3.bf16.msra.mxu1 %v1527_v54 }
 0xb3b   : > { %3339 = vmatprep.subr.bf16.mxu1 %v3633_v40 }
 0xb3d   : > { %v1704_v49 = vpop.permute.xlu1 %1703 }
 0xb3e   : > { %3340 = vmatpush3.bf16.msra.mxu1 %v1525_v50  ;;  %3356 = vmatpush3.bf16.msra.mxu0 %v1704_v49 }
 0xb3f   : > { %3357 = vmatprep.subr.bf16.mxu0 %v3633_v40  ;;  %3345 = vmatprep.subr.bf16.mxu1 %v3633_v40 }
 0xb41   : > { %v1702_v57 = vpop.permute.xlu1 %1701  ;;  %3342 = vmatmul.mubr.msk.bf16.vlgmr.msra.gmra.mxu1 %vm1533_vm14, %v3594_v53  ;;  %v1587_v4 = vpop.permute.xlu0 %1586 }
 0xb42   : > { %3346 = vmatpush3.bf16.msra.mxu1 %v1591_v55  ;;  %3358 = vmatpush3.bf16.msra.mxu0 %v1702_v57 }
 0xb43   : > { %3359 = vmatprep.subr.bf16.mxu0 %v3633_v40  ;;  %3347 = vmatprep.subr.bf16.mxu1 %v3633_v40 }
 0xb44   : > { %3351 = vmatprep.mubr.msk.bf16.mxu1 %vm3634_vm11, %v3633_v40 }
 0xb45   : > { %v1700_v59 = vpop.permute.xlu1 %1699 }
 0xb46   : > { %3348 = vmatpush3.bf16.msra.mxu1 %v1589_v22  ;;  %3360 = vmatpush3.bf16.msra.mxu0 %v1700_v59 }
 0xb47   : > { %3349 = vmatprep.subr.bf16.mxu1 %v3633_v40  ;;  %3375 = vmatprep.subr.bf16.mxu0 %v3633_v40 }
 0xb49   : > { %3362 = vmatmul.mubr.msk.bf16.vlgmr.msra.gmra.mxu0 %vm1533_vm14, %v3595_v1 }
 0xb4a   : > { %3350 = vmatpush3.bf16.msra.mxu1 %v1587_v4  ;;  %3381 = vmatprep.mubr.msk.bf16.mxu0 %vm3634_vm11, %v3633_v40 }
 0xb4b   : > { %3365 = vmatprep.subr.bf16.mxu1 %v3633_v40 }
 0xb4d   : > { %3352 = vmatmul.mubr.msk.bf16.vlgmr.msra.gmra.mxu1 %vm1533_vm14, %v3596_v12 }
 0xb4e   : > { %3371 = vmatprep.mubr.msk.bf16.mxu1 %vm3634_vm11, %v3633_v40  ;;  %v1756_v46 = vpop.permute.xlu0 %1755 }
 0xb52   : > { %v1760_v50 = vpop.permute.xlu1 %1759 }
 0xc01   : > { %v1571_v19 = vpop.f32.mrf.mxu1 }
 0xc03   : > { %v3343_v26 = vpop.f32.mrf.mxu1 }
 0xc05   : > { %v1574_v29 = vpop.f32.mrf.mxu1 }
 0xc07   : > { %v3344_v32 = vpop.f32.mrf.mxu1 }
 0xc09   : > { %v1745_v9 = vpop.f32.mrf.mxu0 }
 0xc0b   : > { %v3363_v10 = vpop.f32.mrf.mxu0 }
 0xc0d   : > { %v1632_v7 = vpop.f32.mrf.mxu1  ;;  %v1748_v44 = vpop.f32.mrf.mxu0 }
 0xc0e   : > { %v1633_v45 = vadd.f32 %v1632_v7, %v1571_v19 }
 0xc0f   : > { %v3353_v47 = vpop.f32.mrf.mxu1  ;;  %v3364_v13 = vpop.f32.mrf.mxu0 }
 0xc10   : > { %v1752_v8 = vadd.f32 %v1745_v9, %v1633_v45 }
 0xc11   : > { %v1635_v38 = vpop.f32.mrf.mxu1 }
 0xc12   : > { %v1636_v39 = vadd.f32 %v1635_v38, %v1574_v29  ;;  %v1762_v23 = vadd.f32 %v1756_v46, %v1752_v8 }
 0xc13   : > { %v3354_v54 = vpop.f32.mrf.mxu1 }
 0xc14   : > { %v1764_v49 = vmax.f32 %v1762_v23, 0.0  ;;  %v1753_v53 = vadd.f32 %v1748_v44, %v1636_v39 }
 0xc16   : > { %v1763_v55 = vadd.f32 %v1760_v50, %v1753_v53  ;;  %1766 = vrot.lane.b32.xlu1 %v1764_v49, %s4921_s30 }
 0xc18   : > { %v1765_v57 = vmax.f32 %v1763_v55, 0.0 }
 0xc1a   : > { %1769 = vrot.lane.b32.xlu0 %v1765_v57, %s4921_s30  ;;  %v3530_v12 = vpack.i.bf16 %v1765_v57, %v1764_v49 }
 0xc88   : > { %v1767_v22 = vpop.permute.xlu1 %1766 }
 0xc89   : > { %v1768_v59 = vsel %vm1410_vm13, %v1767_v22, %v1764_v49 }
 0xc8a   : > { %1772 = vrot.lane.b32.xlu1 %v1768_v59, %s4921_s30 }
 0xc8c   : > { %v1770_v1 = vpop.permute.xlu0 %1769 }
 0xc8d   : > { %v1771_v4 = vsel %vm1410_vm13, %v1770_v1, %v1765_v57 }
 0xc8e   : > { %1774 = vrot.lane.b32.xlu0 %v1771_v4, %s4921_s30 }
 0xc92   : > { %3531 = vrot.lane.b32.xlu0 %v3530_v12, %s4922_s0 }
 0xcfc   : > { %v1773_v19 = vpop.permute.xlu1 %1772 }
 0xcfd   : > { %v1776_v26 = vsel %vm1410_vm13, %v1773_v19, %v1764_v49 }
 0xcfe   : > { %v1957_v9 = vmul.f32 %v1776_v26, %v4284_v3  ;;  %v1807_v10 = vmul.f32 %v1776_v26, %v4271_v52  ;;  %v1805_v45 = vmul.f32 %v1776_v26, %v4309_v42  ;;  %v1778_v46 = vmul.f32 %v1776_v26, %v4318_v43 }
 0xcff   : > { %v1953_v8 = vmul.f32 %v1776_v26, %v4325_v24 }
 0xd00   : > { %v1775_v29 = vpop.permute.xlu0 %1774 }
 0xd01   : > { %v1777_v32 = vsel %vm1410_vm13, %v1775_v29, %v1765_v57 }
 0xd02   : > { %v1958_v7 = vmul.f32 %v1777_v32, %v4284_v3  ;;  %v1808_v44 = vmul.f32 %v1777_v32, %v4271_v52  ;;  %v1806_v47 = vmul.f32 %v1777_v32, %v4309_v42  ;;  %v1779_v13 = vmul.f32 %v1777_v32, %v4318_v43 }
 0xd03   : > { %v1954_v38 = vmul.f32 %v1777_v32, %v4325_v24  ;;  %v1956_v54 = vmul.f32 %v1777_v32, %v4294_v30  ;;  %v1783_v3 = vmul.f32 %v1777_v32, %v4265_v20  ;;  %v1955_v52 = vmul.f32 %v1776_v26, %v4294_v30 }
 0xd04   : > { %v3540_v39 = vpack.i.bf16 %v1958_v7, %v1957_v9  ;;  %v3525_v23 = vpack.i.bf16 %v1808_v44, %v1807_v10  ;;  %v3532_v50 = vpop.permute.xlu0 %3531  ;;  %v1825_v49 = vpack.c.bf16 %v1806_v47, %v1805_v45  ;;  %v1782_v42 = vmul.f32 %v1776_v26, %v4265_v20 }
 0xd05   : > { %v1800_v43 = vpack.c.bf16 %v1779_v13, %v1778_v46  ;;  %v1975_v53 = vpack.c.bf16 %v1954_v38, %v1953_v8  ;;  %v1781_v24 = vmul.f32 %v1777_v32, %v4277_v58  ;;  %v3534_v55 = vunpack.i.h.bf16 %v3532_v50 }
 0xd06   : > { %3541 = vrot.lane.b32.xlu0 %v3540_v39, %s3630_s19  ;;  %3526 = vrot.lane.b32.xlu1 %v3525_v23, %s3644_s17  ;;  %v3533_v57 = vunpack.i.l.bf16 %v3532_v50  ;;  %v3550_v22 = vpack.i.bf16 %v1956_v54, %v1955_v52  ;;  %v3535_v59 = vpack.i.bf16 %v1783_v3, %v1782_v42  ;;  %v1780_v30 = vmul.f32 %v1776_v26, %v4277_v58  ;;  %s4929_s17 = smov 127  }
 0xd07   : > { %v3650_v3 = vmov 3  }
 0xd08   : > { %v1826_v1 = vpack.c.bf16 %v3534_v55, %v3533_v57  ;;  %v3545_v4 = vpack.i.bf16 %v1781_v24, %v1780_v30  ;;  %3555 = vset.pattern.permute.xlu0 %v3650_v3  ;;  %3556 = vset.pattern.permute.xlu1 %v3650_v3  ;;  %v3598_v55 = vld [vmem:[%s4881_s4] sm:$0xff]   ;;  %v2057_v30 = vld [vmem:[%s4891_s14 + $0x8] sm:$0xff] }
 0xd0a   : > { %3551 = vrot.lane.b32.xlu0 %v3550_v22, %s4917_s29  ;;  %3536 = vrot.lane.b32.xlu1 %v3535_v59, %s3630_s19  ;;  %v3599_v59 = vld [vmem:[%s4881_s4 + $0x10] sm:$0xff]  }
 0xd0e   : > { %3546 = vrot.lane.b32.xlu1 %v3545_v4, %s4917_s29  ;;  %1841 = vrot.lane.b32.xlu0 %v1826_v1, %s4923_s23  ;;  %v2056_v1 = vld [vmem:[%s4891_s14] sm:$0xff] }
 0xd78   : > { %v3527_v20 = vpop.permute.xlu1 %3526  ;;  %v3542_v29 = vpop.permute.xlu0 %3541 }
 0xd79   : > { %v3529_v12 = vunpack.i.h.bf16 %v3527_v20  ;;  %v3528_v19 = vunpack.i.l.bf16 %v3527_v20  ;;  %v3544_v44 = vunpack.i.h.bf16 %v3542_v29  ;;  %v3543_v45 = vunpack.i.l.bf16 %v3542_v29 }
 0xd7b   : > { %v1827_v32 = vpack.c.bf16 %v3529_v12, %v3528_v19  ;;  %v1977_v8 = vpack.c.bf16 %v3544_v44, %v3543_v45 }
 0xd7c   : > { %v3537_v9 = vpop.permute.xlu1 %3536  ;;  %v3552_v58 = vpop.permute.xlu0 %3551 }
 0xd7d   : > { %v3539_v10 = vunpack.i.h.bf16 %v3537_v9  ;;  %v3538_v7 = vunpack.i.l.bf16 %v3537_v9  ;;  %1843 = vrot.lane.b32.xlu1 %v1827_v32, %s4923_s23  ;;  %v3554_v38 = vunpack.i.h.bf16 %v3552_v58  ;;  %v3553_v39 = vunpack.i.l.bf16 %v3552_v58 }
 0xd7f   : > { %v1802_v46 = vpack.c.bf16 %v3539_v10, %v3538_v7  ;;  %v1976_v54 = vpack.c.bf16 %v3554_v38, %v3553_v39 }
 0xd80   : > { %v3547_v26 = vpop.permute.xlu1 %3546  ;;  %v1842_v50 = vpop.permute.xlu0 %1841 }
 0xd81   : > { %v3549_v47 = vunpack.i.h.bf16 %v3547_v26  ;;  %v3548_v13 = vunpack.i.l.bf16 %v3547_v26  ;;  %1839 = vrot.lane.b32.xlu1 %v1825_v49, %s4923_s23  ;;  %1904 = vrot.lane.b32.xlu0 %v1802_v46, %s3647_s20 }
 0xd83   : > { %v1801_v23 = vpack.c.bf16 %v3549_v47, %v3548_v13 }
 0xd85   : > { %1993 = vrot.lane.b32.xlu1 %v1977_v8, %s3648_s18  ;;  %1902 = vrot.lane.b32.xlu0 %v1801_v23, %s3647_s20 }
 0xd89   : > { %1991 = vrot.lane.b32.xlu1 %v1976_v54, %s3648_s18  ;;  %1900 = vrot.lane.b32.xlu0 %v1800_v43, %s3647_s20  ;;  %s4930_s20 = smov 1  }
 0xd8d   : > { %1989 = vrot.lane.b32.xlu1 %v1975_v53, %s3648_s18  ;;  %2045 = vperm.xlu0 %3555, %v4337_v51   ;;  %v3597_v53 = vld [vmem:[%s4881_s4 + $0x8] sm:$0xff]   ;;  %s4931_s18 = smov 111  }
 0xd91   : > { %2049 = vperm.xlu1 %3556, %v4162_v56  }
 0xdef   : > { %v1844_v52 = vpop.permute.xlu1 %1843 }
 0xdf0   : > { %3366 = vmatpush3.bf16.msra.mxu1 %v1844_v52 }
 0xdf1   : > { %3367 = vmatprep.subr.bf16.mxu1 %v3633_v40 }
 0xdf3   : > { %v1840_v49 = vpop.permute.xlu1 %1839  ;;  %v1905_v42 = vpop.permute.xlu0 %1904 }
 0xdf4   : > { %3368 = vmatpush3.bf16.msra.mxu1 %v1842_v50  ;;  %3376 = vmatpush3.bf16.msra.mxu0 %v1905_v42 }
 0xdf5   : > { %3369 = vmatprep.subr.bf16.mxu1 %v3633_v40  ;;  %3377 = vmatprep.subr.bf16.mxu0 %v3633_v40 }
 0xdf7   : > { %v1994_v43 = vpop.permute.xlu1 %1993  ;;  %v1903_v24 = vpop.permute.xlu0 %1902 }
 0xdf8   : > { %3370 = vmatpush3.bf16.msra.mxu1 %v1840_v49  ;;  %3378 = vmatpush3.bf16.msra.mxu0 %v1903_v24 }
 0xdf9   : > { %3379 = vmatprep.subr.bf16.mxu0 %v3633_v40  ;;  %3385 = vmatprep.subr.bf16.mxu1 %v3633_v40 }
 0xdfb   : > { %3372 = vmatmul.mubr.msk.bf16.vlgmr.msra.gmra.mxu1 %vm1533_vm14, %v3597_v53  ;;  %v1901_v56 = vpop.permute.xlu0 %1900  ;;  %v1992_v57 = vpop.permute.xlu1 %1991 }
 0xdfc   : > { %3380 = vmatpush3.bf16.msra.mxu0 %v1901_v56  ;;  %3386 = vmatpush3.bf16.msra.mxu1 %v1994_v43 }
 0xdfd   : > { %3387 = vmatprep.subr.bf16.mxu1 %v3633_v40  ;;  %3391 = vmatprep.mubr.msk.bf16.mxu1 %vm3634_vm11, %v3633_v40 }
 0xdfe   : > { %3395 = vmatprep.subr.mxu0 %v2057_v30 }
 0xdff   : > { %3382 = vmatmul.mubr.msk.bf16.vlgmr.msra.gmra.mxu0 %vm1533_vm14, %v3598_v55  ;;  %v1990_v22 = vpop.permute.xlu1 %1989 }
 0xe00   : > { %3388 = vmatpush3.bf16.msra.mxu1 %v1992_v57  ;;  %3396 = vmatpush3.msra.mxu0 %v2057_v30 }
 0xe01   : > { %3389 = vmatprep.subr.bf16.mxu1 %v3633_v40  ;;  %3397 = vmatprep.subr.mxu0 %v2056_v1 }
 0xe02   : > { %3398 = vmatpush3.msra.mxu0 %v2056_v1 }
 0xe03   : > { %3402 = vmatprep.subr.bf16.mxu0 %v3633_v40 }
 0xe04   : > { %3390 = vmatpush3.bf16.msra.mxu1 %v1990_v22 }
 0xe05   : > { %3412 = vmatprep.subr.bf16.mxu1 %v3633_v40 }
 0xe07   : > { %3392 = vmatmul.mubr.msk.bf16.vlgmr.msra.gmra.mxu1 %vm1533_vm14, %v3599_v59 }
 0xe08   : > { %3418 = vmatprep.mubr.msk.bf16.mxu1 %vm3634_vm11, %v3633_v40  ;;  %v2046_v45 = vpop.permute.xlu0 %2045 }
 0xe0c   : > { %v2050_v8 = vpop.permute.xlu1 %2049 }
 0xebb   : > { %v1885_v4 = vpop.f32.mrf.mxu1 }
 0xebd   : > { %v3373_v20 = vpop.f32.mrf.mxu1 }
 0xebf   : > { %v1888_v12 = vpop.f32.mrf.mxu1  ;;  %v1946_v19 = vpop.f32.mrf.mxu0 }
 0xec0   : > { %v1947_v7 = vadd.f32 %v1946_v19, %v1885_v4 }
 0xec1   : > { %v3374_v29 = vpop.f32.mrf.mxu1  ;;  %v3383_v32 = vpop.f32.mrf.mxu0 }
 0xec3   : > { %v1949_v9 = vpop.f32.mrf.mxu0 }
 0xec4   : > { %v1950_v26 = vadd.f32 %v1949_v9, %v1888_v12 }
 0xec5   : > { %v3384_v10 = vpop.f32.mrf.mxu0 }
 0xec7   : > { %v2035_v44 = vpop.f32.mrf.mxu1 }
 0xec8   : > { %v2042_v46 = vadd.f32 %v2035_v44, %v1947_v7 }
 0xec9   : > { %v3393_v58 = vpop.f32.mrf.mxu1 }
 0xeca   : > { %v2052_v47 = vadd.f32 %v2046_v45, %v2042_v46 }
 0xecb   : > { %v2038_v13 = vpop.f32.mrf.mxu1 }
 0xecc   : > { %v2054_v38 = vmax.f32 %v2052_v47, 0.0  ;;  %v2043_v39 = vadd.f32 %v2038_v13, %v1950_v26 }
 0xecd   : > { %v3394_v23 = vpop.f32.mrf.mxu1 }
 0xece   : > { %v2053_v54 = vadd.f32 %v2050_v8, %v2043_v39  ;;  %3399 = vmatprep.mubr.msk.f32.mxu0 %vm2058_vm15, %v2054_v38 }
 0xed0   : > { %v2055_v3 = vmax.f32 %v2053_v54, 0.0 }
 0xed2   : > { %3400 = vmatmul.mubr.msk.f32.vlgmr.msra.gmra.mxu0 %vm2058_vm15, %v2055_v3 }
 0xed3   : > { %3408 = vmatprep.mubr.msk.bf16.mxu0 %vm3634_vm11, %v3633_v40 }
 0xf92   : > { %v3401_v50 = vpop.f32.mrf.mxu0 }
 0xf93   : > { %2143 = vrot.lane.b32.xlu0 %v3401_v50, %s3623_s24 }
 0xf94   : > { %v2131_v52 = vpop.f32.mrf.mxu0 }
 0xf95   : > { %2140 = vrot.lane.b32.xlu1 %v2131_v52, %s3623_s24  ;;  %v3562_v53 = vpack.i.bf16 %v3401_v50, %v2131_v52 }
0x1005   : > { %v2144_v49 = vpop.permute.xlu0 %2143 }
0x1006   : > { %v2145_v42 = vsel %vm966_vm10, %v2144_v49, %v3401_v50 }
0x1007   : > { %2148 = vrot.lane.b32.xlu0 %v2145_v42, %s3623_s24  ;;  %v2141_v43 = vpop.permute.xlu1 %2140 }
0x1008   : > { %v2142_v24 = vsel %vm966_vm10, %v2141_v43, %v2131_v52 }
0x1009   : > { %2146 = vrot.lane.b32.xlu1 %v2142_v24, %s3623_s24  ;;  %s4925_s24 = smov 62  }
0x100b   : > { %3563 = vrot.lane.b32.xlu0 %v3562_v53, %s4924_s28  ;;  %s4932_s28 = smov 112  }
0x1079   : > { %v2149_v56 = vpop.permute.xlu0 %2148 }
0x107a   : > { %v2151_v55 = vsel %vm966_vm10, %v2149_v56, %v3401_v50 }
0x107b   : > { %v2147_v57 = vpop.permute.xlu1 %2146  ;;  %v2332_v30 = vmul.f32 %v2151_v55, %v4127_v28  ;;  %v2182_v4 = vmul.f32 %v2151_v55, %v4113_v62  ;;  %v2180_v12 = vmul.f32 %v2151_v55, %v4143_v41  ;;  %v2330_v7 = vmul.f32 %v2151_v55, %v4133_v31 }
0x107c   : > { %v2150_v22 = vsel %vm966_vm10, %v2147_v57, %v2131_v52  ;;  %v2153_v45 = vmul.f32 %v2151_v55, %v4149_v48  ;;  %v2328_v46 = vmul.f32 %v2151_v55, %v4152_v27 }
0x107d   : > { %v2331_v59 = vmul.f32 %v2150_v22, %v4127_v28  ;;  %v2181_v1 = vmul.f32 %v2150_v22, %v4113_v62  ;;  %v2179_v20 = vmul.f32 %v2150_v22, %v4143_v41  ;;  %v3564_v19 = vpop.permute.xlu0 %3563  ;;  %v2329_v9 = vmul.f32 %v2150_v22, %v4133_v31 }
0x107e   : > { %v2156_v10 = vmul.f32 %v2150_v22, %v4117_v11  ;;  %v2152_v28 = vmul.f32 %v2150_v22, %v4149_v48  ;;  %v2157_v62 = vmul.f32 %v2151_v55, %v4117_v11  ;;  %v2327_v41 = vmul.f32 %v2150_v22, %v4152_v27 }
0x107f   : > { %v3572_v29 = vpack.i.bf16 %v2332_v30, %v2331_v59  ;;  %v3557_v32 = vpack.i.bf16 %v2182_v4, %v2181_v1  ;;  %v2199_v44 = vpack.c.bf16 %v2180_v12, %v2179_v20  ;;  %v3566_v58 = vunpack.i.h.bf16 %v3564_v19  ;;  %v3604_v12 = vld [vmem:[%s4885_s8 + $0x8] sm:$0xff] }
0x1080   : > { %v3565_v26 = vunpack.i.l.bf16 %v3564_v19  ;;  %v2174_v47 = vpack.c.bf16 %v2153_v45, %v2152_v28  ;;  %v3582_v13 = vpack.i.bf16 %v2330_v7, %v2329_v9  ;;  %v3567_v31 = vpack.i.bf16 %v2157_v62, %v2156_v10  ;;  %v3601_v45 = vld [vmem:[%s4882_s5] sm:$0xff]  }
0x1081   : > { %3573 = vrot.lane.b32.xlu0 %v3572_v29, %s3630_s19  ;;  %3558 = vrot.lane.b32.xlu1 %v3557_v32, %s4925_s24  ;;  %v2154_v8 = vmul.f32 %v2150_v22, %v4122_v18  ;;  %v2349_v38 = vpack.c.bf16 %v2328_v46, %v2327_v41  ;;  %v2155_v48 = vmul.f32 %v2151_v55, %v4122_v18  ;;  %v3651_v20 = vmov 4   ;;  %v3602_v46 = vld [vmem:[%s4882_s5 + $0x10] sm:$0xff]   ;;  %s4933_s24 = smov 17  }
0x1082   : > { %v2200_v39 = vpack.c.bf16 %v3566_v58, %v3565_v26  ;;  %3587 = vset.pattern.permute.xlu0 %v3651_v20  ;;  %3588 = vset.pattern.permute.xlu1 %v3651_v20  ;;  %v2445_v58 = vld [vmem:[%s4892_s15 + $0x78] sm:$0xff]  ;;  %v2444_v26 = vld [vmem:[%s4892_s15 + $0x70] sm:$0xff] }
0x1083   : > { %v3577_v11 = vpack.i.bf16 %v2155_v48, %v2154_v8  ;;  %v2440_v8 = vld [vmem:[%s4892_s15 + $0x50] sm:$0xff]  ;;  %v2438_v48 = vld [vmem:[%s4892_s15 + $0x40] sm:$0xff] }
0x1085   : > { %3583 = vrot.lane.b32.xlu0 %v3582_v13, %s4917_s29  ;;  %3568 = vrot.lane.b32.xlu1 %v3567_v31, %s3630_s19  ;;  %s4927_s19 = smov 73   ;;  %v2442_v13 = vld [vmem:[%s4892_s15 + $0x60] sm:$0xff]  ;;  %v2441_v31 = vld [vmem:[%s4892_s15 + $0x58] sm:$0xff] }
0x1089   : > { %2215 = vrot.lane.b32.xlu0 %v2200_v39, %s4926_s27  ;;  %3578 = vrot.lane.b32.xlu1 %v3577_v11, %s4917_s29  ;;  %v2437_v39 = vld [vmem:[%s4892_s15 + $0x38] sm:$0xff]  ;;  %v2436_v11 = vld [vmem:[%s4892_s15 + $0x30] sm:$0xff]  ;;  %s4934_s29 = sshll.u32 %s4936_s22, 4 }
0x108a   : > { %s521_s26 = scalar_lea.vmem %s4893_s16, %s4934_s29 }
0x10f3   : > { %v3559_v27 = vpop.permute.xlu1 %3558  ;;  %v3574_v3 = vpop.permute.xlu0 %3573 }
0x10f4   : > { %v3561_v23 = vunpack.i.h.bf16 %v3559_v27  ;;  %v3560_v54 = vunpack.i.l.bf16 %v3559_v27  ;;  %v3576_v43 = vunpack.i.h.bf16 %v3574_v3  ;;  %v3575_v24 = vunpack.i.l.bf16 %v3574_v3  ;;  %v2435_v27 = vld [vmem:[%s4892_s15 + $0x28] sm:$0xff]  ;;  %v2432_v3 = vld [vmem:[%s4892_s15 + $0x10] sm:$0xff] }
0x10f6   : > { %v2201_v50 = vpack.c.bf16 %v3561_v23, %v3560_v54  ;;  %v2351_v22 = vpack.c.bf16 %v3576_v43, %v3575_v24  ;;  %v2434_v23 = vld [vmem:[%s4892_s15 + $0x20] sm:$0xff]  ;;  %v2433_v54 = vld [vmem:[%s4892_s15 + $0x18] sm:$0xff] }
0x10f7   : > { %v3569_v52 = vpop.permute.xlu1 %3568  ;;  %v3584_v18 = vpop.permute.xlu0 %3583 }
0x10f8   : > { %v3571_v49 = vunpack.i.h.bf16 %v3569_v52  ;;  %v3570_v42 = vunpack.i.l.bf16 %v3569_v52  ;;  %2217 = vrot.lane.b32.xlu1 %v2201_v50, %s4926_s27  ;;  %v3586_v59 = vunpack.i.h.bf16 %v3584_v18  ;;  %v3585_v30 = vunpack.i.l.bf16 %v3584_v18  ;;  %v2431_v50 = vld [vmem:[%s4892_s15 + $0x8] sm:$0xff]  ;;  %v2430_v52 = vld [vmem:[%s4892_s15] sm:$0xff] }
0x10fa   : > { %v2176_v53 = vpack.c.bf16 %v3571_v49, %v3570_v42  ;;  %v2350_v4 = vpack.c.bf16 %v3586_v59, %v3585_v30 }
0x10fb   : > { %v3579_v56 = vpop.permute.xlu1 %3578  ;;  %v2216_v19 = vpop.permute.xlu0 %2215 }
0x10fc   : > { %v3581_v55 = vunpack.i.h.bf16 %v3579_v56  ;;  %v3580_v57 = vunpack.i.l.bf16 %v3579_v56  ;;  %2278 = vrot.lane.b32.xlu0 %v2176_v53, %s4927_s19  ;;  %2213 = vrot.lane.b32.xlu1 %v2199_v44, %s4926_s27  ;;  %v3600_v44 = vld [vmem:[%s4882_s5 + $0x8] sm:$0xff]  }
0x10fe   : > { %v2175_v1 = vpack.c.bf16 %v3581_v55, %v3580_v57 }
0x1100   : > { %2367 = vrot.lane.b32.xlu1 %v2351_v22, %s4928_s25  ;;  %2276 = vrot.lane.b32.xlu0 %v2175_v1, %s4927_s19 }
0x1104   : > { %2365 = vrot.lane.b32.xlu1 %v2350_v4, %s4928_s25  ;;  %2274 = vrot.lane.b32.xlu0 %v2174_v47, %s4927_s19  ;;  %v2443_v47 = vld [vmem:[%s4892_s15 + $0x68] sm:$0xff] }
0x1108   : > { %2363 = vrot.lane.b32.xlu1 %v2349_v38, %s4928_s25  ;;  %2419 = vperm.xlu0 %3587, %v4337_v51   ;;  %v2439_v38 = vld [vmem:[%s4892_s15 + $0x48] sm:$0xff] }
0x110c   : > { %2423 = vperm.xlu1 %3588, %v3604_v12  }
0x116a   : > { %v2218_v29 = vpop.permute.xlu1 %2217 }
0x116b   : > { %3403 = vmatpush3.bf16.msra.mxu0 %v2218_v29 }
0x116c   : > { %3404 = vmatprep.subr.bf16.mxu0 %v3633_v40 }
0x116e   : > { %v2279_v32 = vpop.permute.xlu0 %2278  ;;  %v2214_v9 = vpop.permute.xlu1 %2213 }
0x116f   : > { %3405 = vmatpush3.bf16.msra.mxu0 %v2216_v19  ;;  %3413 = vmatpush3.bf16.msra.mxu1 %v2279_v32 }
0x1170   : > { %3406 = vmatprep.subr.bf16.mxu0 %v3633_v40  ;;  %3414 = vmatprep.subr.bf16.mxu1 %v3633_v40 }
0x1172   : > { %v2368_v10 = vpop.permute.xlu1 %2367  ;;  %v2277_v7 = vpop.permute.xlu0 %2276 }
0x1173   : > { %3407 = vmatpush3.bf16.msra.mxu0 %v2214_v9  ;;  %3415 = vmatpush3.bf16.msra.mxu1 %v2277_v7 }
0x1174   : > { %3422 = vmatprep.subr.bf16.mxu0 %v3633_v40  ;;  %3416 = vmatprep.subr.bf16.mxu1 %v3633_v40 }
0x1176   : > { %3409 = vmatmul.mubr.msk.bf16.vlgmr.msra.gmra.mxu0 %vm1533_vm14, %v3600_v44  ;;  %v2275_v28 = vpop.permute.xlu0 %2274  ;;  %v2366_v62 = vpop.permute.xlu1 %2365 }
0x1177   : > { %3417 = vmatpush3.bf16.msra.mxu1 %v2275_v28  ;;  %3423 = vmatpush3.bf16.msra.mxu0 %v2368_v10 }
0x1178   : > { %3424 = vmatprep.subr.bf16.mxu0 %v3633_v40  ;;  %3428 = vmatprep.mubr.msk.bf16.mxu0 %vm3634_vm11, %v3633_v40 }
0x1179   : > { %2468 = vmatprep.subr.mxu1 %v2445_v58 }
0x117a   : > { %3419 = vmatmul.mubr.msk.bf16.vlgmr.msra.gmra.mxu1 %vm1533_vm14, %v3601_v45  ;;  %v2364_v41 = vpop.permute.xlu1 %2363 }
0x117b   : > { %3425 = vmatpush3.bf16.msra.mxu0 %v2366_v62  ;;  %2516 = vmatprep.mubr.f32.mxu1 %v3633_v40 }
0x117c   : > { %3426 = vmatprep.subr.bf16.mxu0 %v3633_v40  ;;  %2469 = vmatpush1.msra.mxu1 %v2444_v26 }
0x117d   : > { %2470 = vmatprep.subr.mxu1 %v2443_v47 }
0x117e   : > { %2471 = vmatpush1.msra.mxu1 %v2442_v13 }
0x117f   : > { %3427 = vmatpush3.bf16.msra.mxu0 %v2364_v41  ;;  %2472 = vmatprep.subr.mxu1 %v2441_v31  ;;  %v3652_v41 = vmov 5  }
0x1180   : > { %2473 = vmatpush1.msra.mxu1 %v2440_v8  ;;  %3589 = vset.pattern.permute.xlu1 %v3652_v41 }
0x1181   : > { %2474 = vmatprep.subr.mxu1 %v2439_v38 }
0x1182   : > { %3429 = vmatmul.mubr.msk.bf16.vlgmr.msra.gmra.mxu0 %vm1533_vm14, %v3602_v46  ;;  %2475 = vmatpush1.msra.mxu1 %v2438_v48 }
0x1183   : > { %2659 = vmatprep.mubr.bf16.mxu0 %v3616_v2  ;;  %2476 = vmatprep.subr.mxu1 %v2437_v39  ;;  %v2420_v59 = vpop.permute.xlu0 %2419 }
0x1184   : > { %2477 = vmatpush1.msra.mxu1 %v2436_v11 }
0x1185   : > { %2478 = vmatprep.subr.mxu1 %v2435_v27 }
0x1186   : > { %2479 = vmatpush1.msra.mxu1 %v2434_v23 }
0x1187   : > { %2480 = vmatprep.subr.mxu1 %v2433_v54  ;;  %v2424_v19 = vpop.permute.xlu1 %2423 }
0x1188   : > { %2481 = vmatpush1.msra.mxu1 %v2432_v3 }
0x1189   : > { %2482 = vmatprep.subr.mxu1 %v2431_v50 }
0x118a   : > { %2483 = vmatpush1.msra.mxu1 %v2430_v52 }
0x1236   : > { %v2259_v49 = vpop.f32.mrf.mxu0 }
0x1238   : > { %v3410_v42 = vpop.f32.mrf.mxu0 }
0x123a   : > { %v2262_v43 = vpop.f32.mrf.mxu0  ;;  %v2320_v24 = vpop.f32.mrf.mxu1 }
0x123b   : > { %v2321_v57 = vadd.f32 %v2320_v24, %v2259_v49 }
0x123c   : > { %v3411_v53 = vpop.f32.mrf.mxu0  ;;  %v3420_v18 = vpop.f32.mrf.mxu1 }
0x123e   : > { %v2323_v56 = vpop.f32.mrf.mxu1 }
0x123f   : > { %v2324_v4 = vadd.f32 %v2323_v56, %v2262_v43 }
0x1240   : > { %v3421_v55 = vpop.f32.mrf.mxu1 }
0x1242   : > { %v2409_v22 = vpop.f32.mrf.mxu0 }
0x1243   : > { %v2416_v30 = vadd.f32 %v2409_v22, %v2321_v57 }
0x1244   : > { %v3430_v1 = vpop.f32.mrf.mxu0 }
0x1245   : > { %v2426_v20 = vadd.f32 %v2420_v59, %v2416_v30 }
0x1246   : > { %v2412_v12 = vpop.f32.mrf.mxu0 }
0x1247   : > { %v2428_v29 = vmax.f32 %v2426_v20, 0.0  ;;  %v2417_v32 = vadd.f32 %v2412_v12, %v2324_v4 }
0x1248   : > { %v3431_v9 = vpop.f32.mrf.mxu0 }
0x1249   : > { %v2427_v10 = vadd.f32 %v2424_v19, %v2417_v32  ;;  %3179 = vmatmul.mubr.msk.f32.vlgmr.msra.gmra.mxu1 %vm1327_vm12, %v2428_v29 }
0x124a   : > { %2522 = vmatprep.mubr.f32.mxu1 %v3633_v40 }
0x124b   : > { %v2429_v7 = vmax.f32 %v2427_v10, 0.0 }
0x124d   : > { %3180 = vmatmul.mubr.msk.f32.gmra.mxu1 %vm1327_vm12, %v2429_v7 }
0x124e   : > { %2703 = vmatprep.mubr.bf16.mxu1 %v3616_v2 }
0x1309   : > { %v4560_v44 = vpop.f32.mrf.mxu1 }
0x130a   : > { %2600 = vrot.lane.b32.xlu1 %v4560_v44, %s4929_s17 }
0x130b   : > { %v4564_v28 = vpop.f32.mrf.mxu1 }
0x130d   : > { %v4566_v45 = vpop.f32.mrf.mxu1 }
0x130e   : > { %2584 = vrot.lane.b32.xlu1 %v4560_v44, %s4930_s20  ;;  %2602 = vrot.lane.b32.xlu0 %v4566_v45, %s4929_s17  ;;  %v2618_v40 = vpack.c.bf16 %v4566_v45, %v4560_v44 }
0x130f   : > { %v4602_v62 = vpop.f32.mrf.mxu1 }
0x1310   : > { %v2619_v32 = vpack.c.bf16 %v4602_v62, %v4564_v28 }
0x1312   : > { %2561 = vrot.lane.b32.xlu1 %v4560_v44, %s4922_s0  ;;  %2586 = vrot.lane.b32.xlu0 %v4566_v45, %s4930_s20 }
0x1316   : > { %2744 = vrot.lane.b32.xlu1 %v4560_v44, %s4931_s18  ;;  %2563 = vrot.lane.b32.xlu0 %v4566_v45, %s4922_s0 }
0x131a   : > { %2545 = vrot.lane.b32.xlu1 %v4560_v44, %s4921_s30  ;;  %2746 = vrot.lane.b32.xlu0 %v4566_v45, %s4931_s18 }
0x131e   : > { %2728 = vrot.lane.b32.xlu1 %v4560_v44, %s4932_s28  ;;  %2547 = vrot.lane.b32.xlu0 %v4566_v45, %s4921_s30 }
0x1322   : > { %2529 = vrot.lane.b32.xlu1 %v4560_v44, %s4933_s24  ;;  %2730 = vrot.lane.b32.xlu0 %v4566_v45, %s4932_s28 }
0x1326   : > { %2712 = vrot.lane.b32.xlu1 %v4560_v44, %s4923_s23  ;;  %2531 = vrot.lane.b32.xlu0 %v4566_v45, %s4933_s24 }
0x132a   : > { %2604 = vrot.lane.b32.xlu1 %v4564_v28, %s4929_s17  ;;  %2714 = vrot.lane.b32.xlu0 %v4566_v45, %s4923_s23 }
0x132e   : > { %2588 = vrot.lane.b32.xlu1 %v4564_v28, %s4930_s20  ;;  %2606 = vrot.lane.b32.xlu0 %v4602_v62, %s4929_s17 }
0x1332   : > { %2565 = vrot.lane.b32.xlu1 %v4564_v28, %s4922_s0  ;;  %2590 = vrot.lane.b32.xlu0 %v4602_v62, %s4930_s20 }
0x1336   : > { %2748 = vrot.lane.b32.xlu1 %v4564_v28, %s4931_s18  ;;  %2567 = vrot.lane.b32.xlu0 %v4602_v62, %s4922_s0 }
0x133a   : > { %2549 = vrot.lane.b32.xlu1 %v4564_v28, %s4921_s30  ;;  %2750 = vrot.lane.b32.xlu0 %v4602_v62, %s4931_s18 }
0x133e   : > { %2732 = vrot.lane.b32.xlu1 %v4564_v28, %s4932_s28  ;;  %2551 = vrot.lane.b32.xlu0 %v4602_v62, %s4921_s30 }
0x1342   : > { %2533 = vrot.lane.b32.xlu1 %v4564_v28, %s4933_s24  ;;  %2734 = vrot.lane.b32.xlu0 %v4602_v62, %s4932_s28 }
0x1346   : > { %2716 = vrot.lane.b32.xlu1 %v4564_v28, %s4923_s23  ;;  %2535 = vrot.lane.b32.xlu0 %v4602_v62, %s4933_s24 }
0x134a   : > { %2718 = vrot.lane.b32.xlu0 %v4602_v62, %s4923_s23  ;;  %2815 = vperm.xlu1 %3589, %v4337_v51  }
0x137c   : > { %v2601_v46 = vpop.permute.xlu1 %2600 }
0x1380   : > { %v2585_v58 = vpop.permute.xlu1 %2584  ;;  %v2603_v26 = vpop.permute.xlu0 %2602 }
0x1384   : > { %v2562_v47 = vpop.permute.xlu1 %2561  ;;  %v2587_v13 = vpop.permute.xlu0 %2586 }
0x1388   : > { %v2745_v31 = vpop.permute.xlu1 %2744  ;;  %v2564_v8 = vpop.permute.xlu0 %2563 }
0x138c   : > { %v4635_v38 = vpop.permute.xlu1 %2545  ;;  %v2747_v48 = vpop.permute.xlu0 %2746 }
0x1390   : > { %v4637_v39 = vpop.permute.xlu1 %2728  ;;  %v4639_v11 = vpop.permute.xlu0 %2547 }
0x1394   : > { %v4641_v27 = vpop.permute.xlu1 %2529  ;;  %v4643_v23 = vpop.permute.xlu0 %2730 }
0x1398   : > { %v4645_v54 = vpop.permute.xlu1 %2712  ;;  %v4647_v51 = vpop.permute.xlu0 %2531 }
0x139c   : > { %v2605_v3 = vpop.permute.xlu1 %2604  ;;  %v4649_v50 = vpop.permute.xlu0 %2714 }
0x139d   : > { %v2608_v52 = vsel %vm608_vm1, %v2601_v46, %v2605_v3  ;;  %v2610_v49 = vsel %vm608_vm1, %v2605_v3, %v2601_v46 }
0x139e   : > { %v2612_v18 = vmul.f32 %v2608_v52, %v3835_v16  ;;  %v2613_v56 = vmul.f32 %v2610_v49, %v3831_v15 }
0x13a0   : > { %v2589_v42 = vpop.permute.xlu1 %2588  ;;  %v2607_v43 = vpop.permute.xlu0 %2606 }
0x13a1   : > { %v2609_v24 = vsel %vm608_vm1, %v2603_v26, %v2607_v43  ;;  %v2611_v53 = vsel %vm608_vm1, %v2607_v43, %v2603_v26  ;;  %v2592_v4 = vsel %vm591_vm0, %v2585_v58, %v2589_v42  ;;  %v2594_v10 = vsel %vm591_vm0, %v2589_v42, %v2585_v58 }
0x13a2   : > { %v2614_v55 = vmul.f32 %v2609_v24, %v3835_v16  ;;  %v2615_v57 = vmul.f32 %v2611_v53, %v3831_v15  ;;  %v2597_v7 = vmul.f32 %v2592_v4, %v3826_v14  ;;  %v2596_v49 = vmul.f32 %v2594_v10, %v3839_v17 }
0x13a4   : > { %v2620_v22 = vpack.c.bf16 %v2614_v55, %v2612_v18  ;;  %v2566_v59 = vpop.permute.xlu1 %2565  ;;  %v2591_v30 = vpop.permute.xlu0 %2590  ;;  %v2621_v1 = vpack.c.bf16 %v2615_v57, %v2613_v56 }
0x13a5   : > { %v2593_v20 = vsel %vm591_vm0, %v2587_v13, %v2591_v30  ;;  %v2571_v12 = vsel %vm569_vm2, %v2566_v59, %v2562_v47  ;;  %v2595_v19 = vsel %vm591_vm0, %v2591_v30, %v2587_v13  ;;  %v2569_v9 = vsel %vm569_vm2, %v2562_v47, %v2566_v59 }
0x13a6   : > { %v2599_v29 = vmul.f32 %v2593_v20, %v3826_v14  ;;  %2637 = vmatprep.subr.bf16.mxu0 %v2621_v1  ;;  %v2573_v26 = vmul.f32 %v2571_v12, %v3857_v25  ;;  %v2598_v13 = vmul.f32 %v2595_v19, %v3839_v17  ;;  %v2574_v62 = vmul.f32 %v2569_v9, %v3847_v21  ;;  %v3181_v20 = vld [vmem:[%s4883_s6 + $0x4] sm:$0xf] }
0x13a7   : > { %2638 = vmatpush1.bf16.msra.mxu0 %v2620_v22 }
0x13a8   : > { %v2749_v41 = vpop.permute.xlu1 %2748  ;;  %v2568_v46 = vpop.permute.xlu0 %2567  ;;  %2639 = vmatprep.subr.bf16.mxu0 %v2619_v32  ;;  %v2617_v52 = vpack.c.bf16 %v2599_v29, %v2597_v7  ;;  %v2616_v56 = vpack.c.bf16 %v2598_v13, %v2596_v49 }
0x13a9   : > { %v2570_v3 = vsel %vm569_vm2, %v2564_v8, %v2568_v46  ;;  %v2572_v28 = vsel %vm569_vm2, %v2568_v46, %v2564_v8  ;;  %v2752_v42 = vsel %vm767_vm4, %v2745_v31, %v2749_v41  ;;  %v2754_v43 = vsel %vm767_vm4, %v2749_v41, %v2745_v31 }
0x13aa   : > { %v2575_v47 = vmul.f32 %v2572_v28, %v3857_v25  ;;  %v2576_v58 = vmul.f32 %v2570_v3, %v3847_v21  ;;  %v2756_v22 = vmul.f32 %v2752_v42, %v3867_v34  ;;  %v2757_v31 = vmul.f32 %v2754_v43, %v3874_v37 }
0x13ab   : > { %2640 = vmatpush1.bf16.msra.mxu0 %v2618_v40 }
0x13ac   : > { %v2581_v8 = vpack.c.bf16 %v2575_v47, %v2573_v26  ;;  %v2550_v24 = vpop.permute.xlu1 %2549  ;;  %v2751_v53 = vpop.permute.xlu0 %2750  ;;  %2641 = vmatprep.subr.bf16.mxu0 %v2617_v52  ;;  %v2582_v18 = vpack.c.bf16 %v2576_v58, %v2574_v62 }
0x13ad   : > { %v2753_v55 = vsel %vm767_vm4, %v2747_v48, %v2751_v53  ;;  %v2755_v57 = vsel %vm767_vm4, %v2751_v53, %v2747_v48  ;;  %v2553_v45 = vsel %vm552_vm7, %v4635_v38, %v2550_v24  ;;  %v2555_v40 = vsel %vm552_vm7, %v2550_v24, %v4635_v38 }
0x13ae   : > { %v2758_v59 = vmul.f32 %v2753_v55, %v3867_v34  ;;  %v2759_v44 = vmul.f32 %v2755_v57, %v3874_v37  ;;  %2681 = vmatprep.subr.bf16.mxu1 %v2582_v18  ;;  %v2557_v38 = vmul.f32 %v2555_v40, %v3916_v63  ;;  %v2558_v29 = vmul.f32 %v2553_v45, %v3920_v0 }
0x13af   : > { %2642 = vmatpush1.bf16.msra.mxu0 %v2616_v56  ;;  %2682 = vmatpush1.bf16.msra.mxu1 %v2581_v8 }
0x13b0   : > { %v2764_v48 = vpack.c.bf16 %v2758_v59, %v2756_v22  ;;  %v2733_v30 = vpop.permute.xlu1 %2732  ;;  %v2552_v1 = vpop.permute.xlu0 %2551  ;;  %v2765_v4 = vpack.c.bf16 %v2759_v44, %v2757_v31 }
0x13b1   : > { %v2554_v12 = vsel %vm552_vm7, %v4639_v11, %v2552_v1  ;;  %v2556_v19 = vsel %vm552_vm7, %v2552_v1, %v4639_v11  ;;  %v2736_v10 = vsel %vm750_vm9, %v4637_v39, %v2733_v30  ;;  %v2738_v7 = vsel %vm750_vm9, %v2733_v30, %v4637_v39  ;;  %v2583_v30 = vld [vmem:[%s4883_s6] sm:$0xf] }
0x13b2   : > { %v2559_v32 = vmul.f32 %v2556_v19, %v3916_v63  ;;  %v2560_v9 = vmul.f32 %v2554_v12, %v3920_v0  ;;  %2781 = vmatprep.subr.bf16.mxu0 %v2765_v4  ;;  %3182 = vmatmul.mubr.msk.bf16.vlgmr.msra.gmra.mxu0 %vm1533_vm14, %v3181_v20  ;;  %v2740_v28 = vmul.f32 %v2736_v10, %v3953_v35 }
0x13b3   : > { %2782 = vmatpush1.bf16.msra.mxu0 %v2764_v48  ;;  %2803 = vmatprep.mubr.bf16.mxu0 %v3616_v2  ;;  %v2741_v39 = vmul.f32 %v2738_v7, %v3957_v36 }
0x13b4   : > { %v2579_v11 = vpack.c.bf16 %v2559_v32, %v2557_v38  ;;  %v2534_v41 = vpop.permute.xlu1 %2533  ;;  %v2735_v46 = vpop.permute.xlu0 %2734  ;;  %v2580_v26 = vpack.c.bf16 %v2560_v9, %v2558_v29 }
0x13b5   : > { %v2737_v13 = vsel %vm750_vm9, %v4643_v23, %v2735_v46  ;;  %v2739_v3 = vsel %vm750_vm9, %v2735_v46, %v4643_v23  ;;  %v2537_v58 = vsel %vm535_vm6, %v4641_v27, %v2534_v41  ;;  %v2539_v52 = vsel %vm535_vm6, %v2534_v41, %v4641_v27 }
0x13b6   : > { %v2742_v62 = vmul.f32 %v2737_v13, %v3953_v35  ;;  %v2743_v47 = vmul.f32 %v2739_v3, %v3957_v36  ;;  %2683 = vmatprep.subr.bf16.mxu1 %v2580_v26  ;;  %v2541_v53 = vmul.f32 %v2539_v52, %v3904_v60  ;;  %v2542_v18 = vmul.f32 %v2537_v58, %v3908_v61 }
0x13b7   : > { %2684 = vmatpush1.bf16.msra.mxu1 %v2579_v11 }
0x13b8   : > { %v2762_v49 = vpack.c.bf16 %v2742_v62, %v2740_v28  ;;  %v2717_v23 = vpop.permute.xlu1 %2716  ;;  %v2536_v42 = vpop.permute.xlu0 %2535  ;;  %v2763_v43 = vpack.c.bf16 %v2743_v47, %v2741_v39 }
0x13b9   : > { %v2538_v8 = vsel %vm535_vm6, %v4647_v51, %v2536_v42  ;;  %v2540_v24 = vsel %vm535_vm6, %v2536_v42, %v4647_v51  ;;  %v2720_v55 = vsel %vm733_vm8, %v4645_v54, %v2717_v23  ;;  %v2722_v57 = vsel %vm733_vm8, %v2717_v23, %v4645_v54  ;;  %v3605_v23 = vld [vmem:[%s4885_s8] sm:$0xff] }
0x13ba   : > { %v2543_v56 = vmul.f32 %v2540_v24, %v3904_v60  ;;  %v2544_v27 = vmul.f32 %v2538_v8, %v3908_v61  ;;  %2783 = vmatprep.subr.bf16.mxu0 %v2763_v43  ;;  %v2724_v45 = vmul.f32 %v2720_v55, %v3944_v33  ;;  %v2725_v40 = vmul.f32 %v2722_v57, %v3948_v5 }
0x13bb   : > { %2784 = vmatpush1.bf16.msra.mxu0 %v2762_v49  ;;  %v3653_v49 = vmov 6  }
0x13bc   : > { %v2577_v22 = vpack.c.bf16 %v2543_v56, %v2541_v53  ;;  %v2719_v51 = vpop.permute.xlu0 %2718  ;;  %v2578_v31 = vpack.c.bf16 %v2544_v27, %v2542_v18  ;;  %3590 = vset.pattern.permute.xlu0 %v3653_v49 }
0x13bd   : > { %v2721_v59 = vsel %vm733_vm8, %v4649_v50, %v2719_v51  ;;  %v2723_v44 = vsel %vm733_vm8, %v2719_v51, %v4649_v50  ;;  %v3184_v50 = vld [vmem:[%s4883_s6 + $0x8] sm:$0xf] }
0x13be   : > { %v2726_v48 = vmul.f32 %v2721_v59, %v3944_v33  ;;  %v2727_v54 = vmul.f32 %v2723_v44, %v3948_v5  ;;  %2685 = vmatprep.subr.bf16.mxu1 %v2578_v31 }
0x13bf   : > { %2686 = vmatpush1.bf16.msra.mxu1 %v2577_v22 }
0x13c0   : > { %v2760_v1 = vpack.c.bf16 %v2726_v48, %v2724_v45  ;;  %v2761_v4 = vpack.c.bf16 %v2727_v54, %v2725_v40 }
0x13c2   : > { %3183 = vmatmul.mubr.msk.bf16.vlgmr.msra.gmra.mxu1 %vm1533_vm14, %v2583_v30  ;;  %2785 = vmatprep.subr.bf16.mxu0 %v2761_v4 }
0x13c3   : > { %2786 = vmatpush1.bf16.msra.mxu0 %v2760_v1  ;;  %2914 = vmatprep.mubr.bf16.mxu1 %v3616_v2  ;;  %v3186_v1 = vld [vmem:[%s4884_s7 + $0x4] sm:$0xf] }
0x13c5   : > { %v2816_v10 = vpop.permute.xlu1 %2815 }
0x13c6   : > { %3185 = vmatmul.mubr.msk.bf16.vlgmr.msra.gmra.mxu0 %vm1533_vm14, %v3184_v50 }
0x13c7   : > { %2964 = vmatprep.mubr.bf16.mxu0 %v3616_v2 }
0x1472   : > { %v2661_v20 = vpop.f32.mrf.mxu0 }
0x1474   : > { %v2663_v12 = vpop.f32.mrf.mxu0 }
0x1476   : > { %v2665_v19 = vpop.f32.mrf.mxu0 }
0x1478   : > { %v2666_v38 = vpop.f32.mrf.mxu0 }
0x1482   : > { %v2705_v29 = vpop.f32.mrf.mxu1 }
0x1483   : > { %v2706_v9 = vadd.f32 %v2705_v29, %v2661_v20 }
0x1484   : > { %v2707_v32 = vpop.f32.mrf.mxu1 }
0x1485   : > { %v2708_v41 = vadd.f32 %v2707_v32, %v2663_v12 }
0x1486   : > { %v2709_v7 = vpop.f32.mrf.mxu1  ;;  %v2805_v11 = vpop.f32.mrf.mxu0 }
0x1487   : > { %v2812_v46 = vadd.f32 %v2805_v11, %v2706_v9 }
0x1488   : > { %v2710_v26 = vpop.f32.mrf.mxu1  ;;  %v2807_v13 = vpop.f32.mrf.mxu0 }
0x1489   : > { %v2818_v3 = vadd.f32 %v2816_v10, %v2812_v46  ;;  %v2813_v28 = vadd.f32 %v2807_v13, %v2708_v41 }
0x148a   : > { %v2809_v39 = vpop.f32.mrf.mxu0 }
0x148b   : > { %v2820_v62 = vmax.f32 %v2818_v3, 0.0  ;;  %v2819_v47 = vadd.f32 %v2816_v10, %v2813_v28 }
0x148c   : > { %v2810_v58 = vpop.f32.mrf.mxu0 }
0x148d   : > { %v2821_v52 = vmax.f32 %v2819_v47, 0.0  ;;  %2859 = vrot.lane.b32.xlu0 %v2820_v62, %s4929_s17 }
0x148f   : > { %2861 = vrot.lane.b32.xlu1 %v2821_v52, %s4929_s17 }
0x1491   : > { %2851 = vrot.lane.b32.xlu0 %v2820_v62, %s4930_s20 }
0x1493   : > { %2853 = vrot.lane.b32.xlu1 %v2821_v52, %s4930_s20 }
0x1495   : > { %2838 = vrot.lane.b32.xlu0 %v2820_v62, %s4922_s0 }
0x1497   : > { %2840 = vrot.lane.b32.xlu1 %v2821_v52, %s4922_s0 }
0x1499   : > { %2989 = vrot.lane.b32.xlu0 %v2820_v62, %s4931_s18 }
0x149b   : > { %2991 = vrot.lane.b32.xlu1 %v2821_v52, %s4931_s18 }
0x149d   : > { %2822 = vrot.lane.b32.xlu0 %v2820_v62, %s4933_s24 }
0x149f   : > { %2824 = vrot.lane.b32.xlu1 %v2821_v52, %s4933_s24 }
0x14a1   : > { %2830 = vrot.lane.b32.xlu0 %v2820_v62, %s4921_s30 }
0x14a3   : > { %2832 = vrot.lane.b32.xlu1 %v2821_v52, %s4921_s30 }
0x14a5   : > { %2973 = vrot.lane.b32.xlu0 %v2820_v62, %s4923_s23 }
0x14a7   : > { %2975 = vrot.lane.b32.xlu1 %v2821_v52, %s4923_s23 }
0x14a9   : > { %2981 = vrot.lane.b32.xlu0 %v2820_v62, %s4932_s28 }
0x14ab   : > { %2983 = vrot.lane.b32.xlu1 %v2821_v52, %s4932_s28 }
0x14ad   : > { %3056 = vperm.xlu0 %3590, %v3605_v23  }
0x14ff   : > { %v2860_v42 = vpop.permute.xlu0 %2859 }
0x1501   : > { %v2862_v43 = vpop.permute.xlu1 %2861 }
0x1502   : > { %v2863_v8 = vsel %vm608_vm1, %v2860_v42, %v2862_v43  ;;  %v2864_v24 = vsel %vm608_vm1, %v2862_v43, %v2860_v42 }
0x1503   : > { %v2865_v53 = vmul.f32 %v2863_v8, %v3835_v16  ;;  %v2866_v18 = vmul.f32 %v2864_v24, %v3831_v15  ;;  %v2852_v56 = vpop.permute.xlu0 %2851 }
0x1505   : > { %v2869_v27 = vpack.c.bf16 %v2865_v53, %v2865_v53  ;;  %v2870_v55 = vpack.c.bf16 %v2866_v18, %v2866_v18  ;;  %v2854_v57 = vpop.permute.xlu1 %2853 }
0x1506   : > { %v2855_v22 = vsel %vm591_vm0, %v2852_v56, %v2854_v57  ;;  %v2856_v51 = vsel %vm591_vm0, %v2854_v57, %v2852_v56 }
0x1507   : > { %v2857_v31 = vmul.f32 %v2856_v51, %v3839_v17  ;;  %v2858_v59 = vmul.f32 %v2855_v22, %v3826_v14  ;;  %v2839_v44 = vpop.permute.xlu0 %2838  ;;  %3187 = vmatprep.subr.msk.bf16.mxu1 %vm631_vm3, %v2870_v55  ;;  %v2877_v16 = vsel %vm631_vm3, %v2869_v27, 0 }
0x1508   : > { %2895 = vmatpush1.bf16.msra.mxu1 %v2877_v16 }
0x1509   : > { %v2867_v15 = vpack.c.bf16 %v2820_v62, %v2857_v31  ;;  %v2841_v45 = vpop.permute.xlu1 %2840  ;;  %v2868_v40 = vpack.c.bf16 %v2821_v52, %v2858_v59 }
0x150a   : > { %v2842_v48 = vsel %vm569_vm2, %v2839_v44, %v2841_v45  ;;  %v2843_v54 = vsel %vm569_vm2, %v2841_v45, %v2839_v44 }
0x150b   : > { %v2844_v30 = vmul.f32 %v2843_v54, %v3857_v25  ;;  %v2845_v17 = vmul.f32 %v2842_v48, %v3847_v21  ;;  %v2990_v14 = vpop.permute.xlu0 %2989  ;;  %2896 = vmatprep.subr.bf16.mxu1 %v2868_v40 }
0x150c   : > { %2897 = vmatpush1.bf16.msra.mxu1 %v2867_v15 }
0x150d   : > { %v2848_v4 = vpack.c.bf16 %v2844_v30, %v2844_v30  ;;  %v2849_v50 = vpack.c.bf16 %v2845_v17, %v2845_v17  ;;  %v2992_v20 = vpop.permute.xlu1 %2991 }
0x150e   : > { %v2993_v12 = vsel %vm767_vm4, %v2990_v14, %v2992_v20  ;;  %v2994_v19 = vsel %vm767_vm4, %v2992_v20, %v2990_v14 }
0x150f   : > { %v2995_v25 = vmul.f32 %v2993_v12, %v3867_v34  ;;  %v2996_v21 = vmul.f32 %v2994_v19, %v3874_v37  ;;  %v2823_v38 = vpop.permute.xlu0 %2822  ;;  %3189 = vmatprep.subr.msk.bf16.mxu0 %vm631_vm3, %v2849_v50  ;;  %v2927_v29 = vsel %vm631_vm3, %v2848_v4, 0  ;;  %3188 = vmatmul.mubr.msk.bf16.vlgmr.msra.gmra.mxu1 %vm627_vm5, %v3186_v1 }
0x1510   : > { %2945 = vmatpush1.bf16.msra.mxu0 %v2927_v29  ;;  %3044 = vmatprep.mubr.bf16.mxu1 %v3616_v2 }
0x1511   : > { %v2999_v32 = vpack.c.bf16 %v2995_v25, %v2995_v25  ;;  %v3000_v9 = vpack.c.bf16 %v2996_v21, %v2996_v21  ;;  %v2825_v10 = vpop.permute.xlu1 %2824 }
0x1512   : > { %v2826_v37 = vsel %vm535_vm6, %v2823_v38, %v2825_v10  ;;  %v2827_v11 = vsel %vm535_vm6, %v2825_v10, %v2823_v38 }
0x1513   : > { %v2831_v7 = vpop.permute.xlu0 %2830  ;;  %3192 = vmatprep.subr.msk.bf16.mxu1 %vm631_vm3, %v3000_v9  ;;  %v3007_v34 = vsel %vm631_vm3, %v2999_v32, 0  ;;  %v2828_v26 = vmul.f32 %v2827_v11, %v3904_v60  ;;  %v2829_v13 = vmul.f32 %v2826_v37, %v3908_v61  ;;  %v2850_v60 = vld [vmem:[%s4884_s7] sm:$0xf] }
0x1514   : > { %3025 = vmatpush1.bf16.msra.mxu1 %v3007_v34 }
0x1515   : > { %v2833_v41 = vpop.permute.xlu1 %2832 }
0x1516   : > { %v2834_v46 = vsel %vm552_vm7, %v2831_v7, %v2833_v41  ;;  %v2835_v2 = vsel %vm552_vm7, %v2833_v41, %v2831_v7 }
0x1517   : > { %v2836_v3 = vmul.f32 %v2835_v2, %v3916_v63  ;;  %v2837_v28 = vmul.f32 %v2834_v46, %v3920_v0  ;;  %v2974_v39 = vpop.permute.xlu0 %2973 }
0x1519   : > { %v2846_v62 = vpack.c.bf16 %v2836_v3, %v2828_v26  ;;  %v2976_v47 = vpop.permute.xlu1 %2975  ;;  %v2847_v58 = vpack.c.bf16 %v2837_v28, %v2829_v13 }
0x151a   : > { %v2977_v52 = vsel %vm733_vm8, %v2974_v39, %v2976_v47  ;;  %v2978_v49 = vsel %vm733_vm8, %v2976_v47, %v2974_v39 }
0x151b   : > { %2946 = vmatprep.subr.bf16.mxu0 %v2847_v58  ;;  %v2982_v61 = vpop.permute.xlu0 %2981  ;;  %v2979_v42 = vmul.f32 %v2977_v52, %v3944_v33  ;;  %v2980_v43 = vmul.f32 %v2978_v49, %v3948_v5 }
0x151c   : > { %2947 = vmatpush1.bf16.msra.mxu0 %v2846_v62 }
0x151d   : > { %v2984_v63 = vpop.permute.xlu1 %2983 }
0x151e   : > { %v2985_v0 = vsel %vm750_vm9, %v2982_v61, %v2984_v63  ;;  %v2986_v23 = vsel %vm750_vm9, %v2984_v63, %v2982_v61 }
0x151f   : > { %v2987_v8 = vmul.f32 %v2985_v0, %v3953_v35  ;;  %v2988_v24 = vmul.f32 %v2986_v23, %v3957_v36  ;;  %3190 = vmatmul.mubr.msk.bf16.vlgmr.msra.gmra.mxu0 %vm627_vm5, %v2850_v60 }
0x1521   : > { %v2997_v53 = vpack.c.bf16 %v2987_v8, %v2979_v42  ;;  %v2998_v18 = vpack.c.bf16 %v2988_v24, %v2980_v43 }
0x1523   : > { %3026 = vmatprep.subr.bf16.mxu1 %v2998_v18 }
0x1524   : > { %3027 = vmatpush1.bf16.msra.mxu1 %v2997_v53 }
0x1527   : > { %3193 = vmatmul.mubr.msk.bf16.vlgmr.msra.gmra.mxu1 %vm627_vm5, %v3191_v6 }
0x1528   : > { %v3057_v31 = vpop.permute.xlu0 %3056 }
0x15cf   : > { %v2916_v33 = vpop.f32.mrf.mxu1 }
0x15d1   : > { %v2918_v56 = vpop.f32.mrf.mxu1 }
0x15d3   : > { %v2920_v5 = vpop.f32.mrf.mxu1 }
0x15d5   : > { %v2921_v27 = vpop.f32.mrf.mxu1 }
0x15df   : > { %v2966_v35 = vpop.f32.mrf.mxu0 }
0x15e0   : > { %v2967_v22 = vadd.f32 %v2966_v35, %v2916_v33 }
0x15e1   : > { %v2968_v55 = vpop.f32.mrf.mxu0 }
0x15e2   : > { %v2969_v59 = vadd.f32 %v2968_v55, %v2918_v56 }
0x15e3   : > { %v2970_v36 = vpop.f32.mrf.mxu0 }
0x15e5   : > { %v2971_v57 = vpop.f32.mrf.mxu0 }
0x15e7   : > { %v3046_v51 = vpop.f32.mrf.mxu1 }
0x15e8   : > { %v3053_v44 = vadd.f32 %v3046_v51, %v2967_v22 }
0x15e9   : > { %v3048_v16 = vpop.f32.mrf.mxu1 }
0x15ea   : > { %v3059_v15 = vadd.f32 %v3057_v31, %v3053_v44  ;;  %v3054_v45 = vadd.f32 %v3048_v16, %v2969_v59 }
0x15eb   : > { %v3050_v40 = vpop.f32.mrf.mxu1 }
0x15ec   : > { %3061 = vst [vmem:[%s521_s26] sm:$0xff] %v3059_v15  ;;  %v3060_v48 = vadd.f32 %v3057_v31, %v3054_v45 }
0x15ed   : > { %v3051_v54 = vpop.f32.mrf.mxu1 }
0x15ee   : > { %3062 = vst [vmem:[%s521_s26 + $0x8] sm:$0xff] %v3060_v48 }
0x15ef PF: > { %s26_s21 = sadd.s32 1, %s3612_s21  }
0x15f0   : > { %p23_p4 = scmp.ge.s32.totalorder %s26_s21, 4  }
0x15f2   :  { %25 = sbr.rel (!%p23_p4) target bundleno = 2 (0x2), region = 128 }

</bundles_post_ra>
